<compile_context>
chip_gen: v7x
topology: tpu7x:2x2x1
jax: 0.10.0
libtpu: 0.0.40
codegen_flags: <defaults>
</compile_context>

<pallas_src>
import functools

import jax
import jax.numpy as jnp
from jax.experimental import pallas as pl
from jax.experimental.pallas import tpu as pltpu

LN_EPS = 1e-5
_GELU_C = 0.7978845608028654  # sqrt(2/pi)


def _gelu(x):
    return 0.5 * x * (1.0 + jnp.tanh(_GELU_C * (x + 0.044715 * x * x * x)))


def _layernorm(x, g, b):
    mean = jnp.mean(x, axis=-1, keepdims=True)
    var = jnp.mean(jnp.square(x - mean), axis=-1, keepdims=True)
    return (x - mean) * jax.lax.rsqrt(var + LN_EPS) * g + b


def distrans_kernel(num_heads,
                    x_ref,
                    fc_w, fc_b, n1_g, n1_b,
                    q_w, k_w, v_w,
                    mu_pw, mu_pb, ls_pw, ls_pb,
                    n2_g, n2_b, n3_g, n3_b,
                    mu_w1, mu_b1, mu_w2, mu_b2,
                    ls_w1, ls_b1, ls_w2, ls_b2,
                    mu_out, ls_out, attn_out):
    x = x_ref[...]                          # (Bb, N, C) float32
    Bb, N, C = x.shape
    H = num_heads
    hd = C // H
    scale = hd ** -0.5
    bf16 = jnp.bfloat16

    # Flatten the batch block: every big matmul sees M = Bb*N rows (MXU fill).
    xf = x.reshape(Bb * N, C)

    # x_ = norm1(act(fc(x)))  -- bf16 MXU inputs, f32 accumulation & LN math.
    h = jnp.dot(xf.astype(bf16), fc_w[...],
                preferred_element_type=jnp.float32) + fc_b[...]
    x_ = _layernorm(_gelu(h), n1_g[...], n1_b[...])
    x_b = x_.astype(bf16)

    # q/k/v projections (bias=False), weights pre-split wrapper-side.
    q = jnp.dot(x_b, q_w[...], preferred_element_type=jnp.float32)
    k = jnp.dot(x_b, k_w[...], preferred_element_type=jnp.float32)
    v = jnp.dot(x_b, v_w[...], preferred_element_type=jnp.float32)

    # ---- hoisted per-head constants (built once, outside all loops) --------
    # Head isolation by zero-masking non-head channels: for C <= 128 lanes the
    # masked full-width matmul costs the same MXU passes as a sliced one and
    # avoids masked partial loads / XLU relayouts.  The 1/sqrt(hd) scale is
    # folded into the bf16 q-mask ({0, scale}); the v-mask is bf16 {0, 1}.
    col = jax.lax.broadcasted_iota(jnp.int32, (1, 1, C), 2)
    q_masks, v_masks = [], []
    for hh in range(H):
        sel = (col >= hh * hd) & (col < (hh + 1) * hd)
        q_masks.append(jnp.where(sel, scale, 0.0).astype(bf16))
        v_masks.append(jnp.where(sel, 1.0, 0.0).astype(bf16))
    # Selector matrices scattering head hh's (N, N) probabilities into lanes
    # [hh*N, (hh+1)*N) of the lane-dense attention slab via a tiny MXU matmul
    # (keeps the hot loop free of narrow masked vector stores).
    rowi = jax.lax.broadcasted_iota(jnp.int32, (N, H * N), 0)
    colj = jax.lax.broadcasted_iota(jnp.int32, (N, H * N), 1)
    sels = [(colj == rowi + hh * N).astype(jnp.float32) for hh in range(H)]

    # Cast q/k/v to bf16 exactly once (outside the head loop).
    q3 = q.reshape(Bb, N, C).astype(bf16)
    k3 = k.reshape(Bb, N, C).astype(bf16)
    v3 = v.reshape(Bb, N, C).astype(bf16)

    # ---- attention: batched over the whole batch block, short head loop ----
    ctx = jnp.zeros((Bb, N, C), jnp.float32)
    slab = jnp.zeros((Bb * N, H * N), jnp.float32)   # lane-dense attn slab
    for hh in range(H):
        q_h = q3 * q_masks[hh]                       # bf16 mul, scale folded in
        s = jnp.einsum('bqc,bkc->bqk', q_h, k3,
                       preferred_element_type=jnp.float32)
        s = s - jnp.max(s, axis=-1, keepdims=True)
        e = jnp.exp(s)
        # Exact reciprocal: returned probabilities sum to 1 per row.
        p = e * (1.0 / jnp.sum(e, axis=-1, keepdims=True))
        slab = slab + jnp.dot(p.reshape(Bb * N, N), sels[hh],
                              preferred_element_type=jnp.float32)
        v_h = v3 * v_masks[hh]
        ctx = ctx + jnp.einsum('bqk,bkc->bqc', p.astype(bf16), v_h,
                               preferred_element_type=jnp.float32)
    # Single wide (lane-dense) store of all heads' probabilities.
    attn_out[...] = slab.reshape(Bb, N, H * N).astype(attn_out.dtype)

    ctx_b16 = ctx.reshape(Bb * N, C).astype(bf16)

    # mu/logsigma projections.  The (C/2, C) weights were zero-padded to (C, C)
    # wrapper-side, so no half-channel lane slice of ctx is needed here.
    mu = jnp.dot(ctx_b16, mu_pw[...],
                 preferred_element_type=jnp.float32) + mu_pb[...]
    ls = jnp.dot(ctx_b16, ls_pw[...],
                 preferred_element_type=jnp.float32) + ls_pb[...]

    # Residual + MLP branches (dropout / drop_path are eval-mode identities).
    mu = xf + mu
    mu_n = _layernorm(mu, n2_g[...], n2_b[...])
    h1 = _gelu(jnp.dot(mu_n.astype(bf16), mu_w1[...],
                       preferred_element_type=jnp.float32) + mu_b1[...])
    mu = mu + jnp.dot(h1.astype(bf16), mu_w2[...],
                      preferred_element_type=jnp.float32) + mu_b2[...]

    ls_n = _layernorm(ls, n3_g[...], n3_b[...])
    h2 = _gelu(jnp.dot(ls_n.astype(bf16), ls_w1[...],
                       preferred_element_type=jnp.float32) + ls_b1[...])
    ls = ls + jnp.dot(h2.astype(bf16), ls_w2[...],
                      preferred_element_type=jnp.float32) + ls_b2[...]

    mu_out[...] = mu.reshape(Bb, N, C)
    ls_out[...] = ls.reshape(Bb, N, C)


def _prepare_params(params, dim):
    """Split qkv, zero-pad mu/ls proj weights to (C, C), cast matmul weights bf16."""
    (fc_w, fc_b, n1_g, n1_b, qkv_w,
     mu_pw, mu_pb, ls_pw, ls_pb,
     n2_g, n2_b, n3_g, n3_b,
     mu_w1, mu_b1, mu_w2, mu_b2,
     ls_w1, ls_b1, ls_w2, ls_b2) = params
    half = dim // 2
    bf16 = jnp.bfloat16
    q_w = qkv_w[:, :dim]
    k_w = qkv_w[:, dim:2 * dim]
    v_w = qkv_w[:, 2 * dim:]
    zpad = jnp.zeros((dim - half, dim), mu_pw.dtype)
    mu_pw_full = jnp.concatenate([mu_pw, zpad], axis=0)   # consumes ctx[:, :half]
    ls_pw_full = jnp.concatenate([zpad, ls_pw], axis=0)   # consumes ctx[:, half:]
    return [
        fc_w.astype(bf16), fc_b, n1_g, n1_b,
        q_w.astype(bf16), k_w.astype(bf16), v_w.astype(bf16),
        mu_pw_full.astype(bf16), mu_pb, ls_pw_full.astype(bf16), ls_pb,
        n2_g, n2_b, n3_g, n3_b,
        mu_w1.astype(bf16), mu_b1, mu_w2.astype(bf16), mu_b2,
        ls_w1.astype(bf16), ls_b1, ls_w2.astype(bf16), ls_b2,
    ]


def _tpu_budget():
    """(vmem_limit_bytes, target_rows, min_grid_steps) per TPU generation.

    v7x-class (64 MiB VMEM/TC, 2 TCs/chip): leave headroom below the physical
    limit, keep blocks modest, and require >= 2 grid steps so the "parallel"
    batch axis can be sharded across both TensorCores.
    v5e/v6e (128 MiB VMEM, 1 TC): larger blocks to fill the MXU and amortize
    per-grid-step overhead (~0.35 us/step).
    """
    try:
        vmem = pltpu.get_tpu_info().vmem_capacity_bytes
    except Exception:  # non-TPU backend / API drift -> assume 128 MiB class
        vmem = 128 * 1024 * 1024
    if vmem <= 64 * 1024 * 1024:
        return 48 * 1024 * 1024, 256, 2
    return 100 * 1024 * 1024, 512, 1


def _pick_batch_block(B, N, target_rows, min_steps=1):
    """Largest divisor of B with ~target_rows MXU rows and >= min_steps grid steps."""
    bb = min(B, max(1, target_rows // max(N, 1)))
    while B % bb:
        bb -= 1
    while bb > 1 and (B // bb) < min_steps:
        bb -= 1
        while B % bb:
            bb -= 1
    return bb


def _const_spec(arr):
    # Constant index_map: the block stays VMEM-resident, no re-DMA across steps.
    zeros = (0,) * arr.ndim
    return pl.BlockSpec(arr.shape, lambda b, _z=zeros: _z)


def distrans_forward(x, params, num_heads, batch_block=None,
                     attn_dtype=jnp.float32):
    B, N, C = x.shape
    H = num_heads
    assert C % H == 0 and C % 2 == 0
    kparams = _prepare_params(params, C)

    vmem_limit, target_rows, min_steps = _tpu_budget()
    Bb = batch_block or _pick_batch_block(B, N, target_rows, min_steps)
    grid = (B // Bb,)

    in_specs = [pl.BlockSpec((Bb, N, C), lambda b: (b, 0, 0))]
    in_specs += [_const_spec(p) for p in kparams]

    # attn is produced as a lane-dense (B, N, H*N) slab (last dim >= 128 at
    # H*N >= 128) and reshaped/transposed to (B, H, N, N) wrapper-side.
    out_shape = (
        jax.ShapeDtypeStruct((B, N, C), jnp.float32),          # mu
        jax.ShapeDtypeStruct((B, N, C), jnp.float32),          # logsigma
        jax.ShapeDtypeStruct((B, N, H * N), attn_dtype),       # attn slab
    )
    out_specs = [
        pl.BlockSpec((Bb, N, C), lambda b: (b, 0, 0)),
        pl.BlockSpec((Bb, N, C), lambda b: (b, 0, 0)),
        pl.BlockSpec((Bb, N, H * N), lambda b: (b, 0, 0)),
    ]

    grid_spec = pltpu.PrefetchScalarGridSpec(
        num_scalar_prefetch=0,
        grid=grid,
        in_specs=in_specs,
        out_specs=out_specs,
    )

    mu, ls, attn_slab = pl.pallas_call(
        functools.partial(distrans_kernel, num_heads),
        out_shape=out_shape,
        grid_spec=grid_spec,
        compiler_params=pltpu.CompilerParams(
            dimension_semantics=("parallel",),
            vmem_limit_bytes=vmem_limit,
        ),
    )(x, *kparams)

    attn = attn_slab.reshape(B, N, H, N).transpose(0, 2, 1, 3)
    return mu, ls, attn


def distrans_reference(x, params, num_heads):
    (fc_w, fc_b, n1_g, n1_b, qkv_w,
     mu_pw, mu_pb, ls_pw, ls_pb,
     n2_g, n2_b, n3_g, n3_b,
     mu_w1, mu_b1, mu_w2, mu_b2,
     ls_w1, ls_b1, ls_w2, ls_b2) = params
    B, N, C = x.shape
    hd = C // num_heads
    scale = hd ** -0.5

    x_ = _layernorm(_gelu(x @ fc_w + fc_b), n1_g, n1_b)
    qkv = (x_ @ qkv_w).reshape(B, N, 3, num_heads, hd).transpose(2, 0, 3, 1, 4)
    q, k, v = qkv[0], qkv[1], qkv[2]
    attn = jnp.einsum('bhqd,bhkd->bhqk', q, k) * scale
    attn = jax.nn.softmax(attn, axis=-1)
    ctx = jnp.einsum('bhqk,bhkd->bhqd', attn, v).transpose(0, 2, 1, 3).reshape(B, N, C)
    mu = ctx[..., :C // 2] @ mu_pw + mu_pb
    ls = ctx[..., C // 2:] @ ls_pw + ls_pb
    mu = x + mu
    mu = mu + (_gelu(_layernorm(mu, n2_g, n2_b) @ mu_w1 + mu_b1) @ mu_w2 + mu_b2)
    ls = ls + (_gelu(_layernorm(ls, n3_g, n3_b) @ ls_w1 + ls_b1) @ ls_w2 + ls_b2)
    return mu, ls, attn


def init_params(key, dim, num_heads, mlp_ratio=4.0):
    hidden = int(dim * mlp_ratio)
    half = dim // 2
    ks = jax.random.split(key, 16)

    def w(k, shape):
        return (0.02 * jax.random.normal(k, shape)).astype(jnp.float32)

    params = [
        w(ks[0], (dim, dim)),                 # fc_w
        w(ks[1], (1, dim)),                   # fc_b
        jnp.ones((1, dim), jnp.float32),      # norm1 gamma
        jnp.zeros((1, dim), jnp.float32),     # norm1 beta
        w(ks[2], (dim, 3 * dim)),             # qkv_w (bias=False)
        w(ks[3], (half, dim)),                # mu_proj_w
        w(ks[4], (1, dim)),                   # mu_proj_b
        w(ks[5], (half, dim)),                # logsig_proj_w
        w(ks[6], (1, dim)),                   # logsig_proj_b
        jnp.ones((1, dim), jnp.float32),      # norm2 gamma
        jnp.zeros((1, dim), jnp.float32),     # norm2 beta
        jnp.ones((1, dim), jnp.float32),      # norm3 gamma
        jnp.zeros((1, dim), jnp.float32),     # norm3 beta
        w(ks[7], (dim, hidden)),              # mu_mlp fc1 w
        w(ks[8], (1, hidden)),                # mu_mlp fc1 b
        w(ks[9], (hidden, dim)),              # mu_mlp fc2 w
        w(ks[10], (1, dim)),                  # mu_mlp fc2 b
        w(ks[11], (dim, hidden)),             # logsig_mlp fc1 w
        w(ks[12], (1, hidden)),               # logsig_mlp fc1 b
        w(ks[13], (hidden, dim)),             # logsig_mlp fc2 w
        w(ks[14], (1, dim)),                  # logsig_mlp fc2 b
    ]
    return params


if __name__ == "__main__":
    B, N, dim, num_heads = 2, 16, 64, 8
    key = jax.random.PRNGKey(0)
    kx, kp = jax.random.split(key)
    x = jax.random.normal(kx, (B, N, dim), dtype=jnp.float32)
    params = init_params(kp, dim, num_heads)

    mu, logsigma, attn = distrans_forward(x, params, num_heads)
    jax.block_until_ready((mu, logsigma, attn))

    mu_r, ls_r, attn_r = distrans_reference(x, params, num_heads)
    # bf16 MXU inputs (f32 accumulation) => looser tolerances than pure f32.
    assert jnp.allclose(mu, mu_r, atol=3e-2, rtol=3e-2)
    assert jnp.allclose(logsigma, ls_r, atol=3e-2, rtol=3e-2)
    assert jnp.allclose(attn, attn_r, atol=5e-3, rtol=1e-2)

    print("KERNEL_OK")
</pallas_src>

<mosaic_0001>
module attributes {stable_mosaic.version = 11 : i64} {
  func.func @distrans_kernel(%arg0: i32, %arg1: memref<2x16x64xf32, #tpu.memory_space<vmem>>, %arg2: memref<64x64xbf16, #tpu.memory_space<vmem>>, %arg3: memref<1x64xf32, #tpu.memory_space<vmem>>, %arg4: memref<1x64xf32, #tpu.memory_space<vmem>>, %arg5: memref<1x64xf32, #tpu.memory_space<vmem>>, %arg6: memref<64x64xbf16, #tpu.memory_space<vmem>>, %arg7: memref<64x64xbf16, #tpu.memory_space<vmem>>, %arg8: memref<64x64xbf16, #tpu.memory_space<vmem>>, %arg9: memref<64x64xbf16, #tpu.memory_space<vmem>>, %arg10: memref<1x64xf32, #tpu.memory_space<vmem>>, %arg11: memref<64x64xbf16, #tpu.memory_space<vmem>>, %arg12: memref<1x64xf32, #tpu.memory_space<vmem>>, %arg13: memref<1x64xf32, #tpu.memory_space<vmem>>, %arg14: memref<1x64xf32, #tpu.memory_space<vmem>>, %arg15: memref<1x64xf32, #tpu.memory_space<vmem>>, %arg16: memref<1x64xf32, #tpu.memory_space<vmem>>, %arg17: memref<64x256xbf16, #tpu.memory_space<vmem>>, %arg18: memref<1x256xf32, #tpu.memory_space<vmem>>, %arg19: memref<256x64xbf16, #tpu.memory_space<vmem>>, %arg20: memref<1x64xf32, #tpu.memory_space<vmem>>, %arg21: memref<64x256xbf16, #tpu.memory_space<vmem>>, %arg22: memref<1x256xf32, #tpu.memory_space<vmem>>, %arg23: memref<256x64xbf16, #tpu.memory_space<vmem>>, %arg24: memref<1x64xf32, #tpu.memory_space<vmem>>, %arg25: memref<2x16x64xf32, #tpu.memory_space<vmem>>, %arg26: memref<2x16x64xf32, #tpu.memory_space<vmem>>, %arg27: memref<2x16x128xf32, #tpu.memory_space<vmem>>) attributes {dimension_semantics = [#tpu.dimension_semantics<parallel>], iteration_bounds = array<i64: 1>, scalar_prefetch = 0 : i64, scratch_operands = 0 : i64, tpu.core_type = #tpu.core_type<tc>, window_params = [{transform_indices = @transform_0, window_bounds = array<i64: 2, 16, 64>}, {pipeline_mode = #tpu.pipeline_mode<synchronous>, transform_indices = @transform_1, window_bounds = array<i64: 64, 64>}, {pipeline_mode = #tpu.pipeline_mode<synchronous>, transform_indices = @transform_2, window_bounds = array<i64: 1, 64>}, {pipeline_mode = #tpu.pipeline_mode<synchronous>, transform_indices = @transform_3, window_bounds = array<i64: 1, 64>}, {pipeline_mode = #tpu.pipeline_mode<synchronous>, transform_indices = @transform_4, window_bounds = array<i64: 1, 64>}, {pipeline_mode = #tpu.pipeline_mode<synchronous>, transform_indices = @transform_5, window_bounds = array<i64: 64, 64>}, {pipeline_mode = #tpu.pipeline_mode<synchronous>, transform_indices = @transform_6, window_bounds = array<i64: 64, 64>}, {pipeline_mode = #tpu.pipeline_mode<synchronous>, transform_indices = @transform_7, window_bounds = array<i64: 64, 64>}, {pipeline_mode = #tpu.pipeline_mode<synchronous>, transform_indices = @transform_8, window_bounds = array<i64: 64, 64>}, {pipeline_mode = #tpu.pipeline_mode<synchronous>, transform_indices = @transform_9, window_bounds = array<i64: 1, 64>}, {pipeline_mode = #tpu.pipeline_mode<synchronous>, transform_indices = @transform_10, window_bounds = array<i64: 64, 64>}, {pipeline_mode = #tpu.pipeline_mode<synchronous>, transform_indices = @transform_11, window_bounds = array<i64: 1, 64>}, {pipeline_mode = #tpu.pipeline_mode<synchronous>, transform_indices = @transform_12, window_bounds = array<i64: 1, 64>}, {pipeline_mode = #tpu.pipeline_mode<synchronous>, transform_indices = @transform_13, window_bounds = array<i64: 1, 64>}, {pipeline_mode = #tpu.pipeline_mode<synchronous>, transform_indices = @transform_14, window_bounds = array<i64: 1, 64>}, {pipeline_mode = #tpu.pipeline_mode<synchronous>, transform_indices = @transform_15, window_bounds = array<i64: 1, 64>}, {pipeline_mode = #tpu.pipeline_mode<synchronous>, transform_indices = @transform_16, window_bounds = array<i64: 64, 256>}, {pipeline_mode = #tpu.pipeline_mode<synchronous>, transform_indices = @transform_17, window_bounds = array<i64: 1, 256>}, {pipeline_mode = #tpu.pipeline_mode<synchronous>, transform_indices = @transform_18, window_bounds = array<i64: 256, 64>}, {pipeline_mode = #tpu.pipeline_mode<synchronous>, transform_indices = @transform_19, window_bounds = array<i64: 1, 64>}, {pipeline_mode = #tpu.pipeline_mode<synchronous>, transform_indices = @transform_20, window_bounds = array<i64: 64, 256>}, {pipeline_mode = #tpu.pipeline_mode<synchronous>, transform_indices = @transform_21, window_bounds = array<i64: 1, 256>}, {pipeline_mode = #tpu.pipeline_mode<synchronous>, transform_indices = @transform_22, window_bounds = array<i64: 256, 64>}, {pipeline_mode = #tpu.pipeline_mode<synchronous>, transform_indices = @transform_23, window_bounds = array<i64: 1, 64>}, {transform_indices = @transform_24, window_bounds = array<i64: 2, 16, 64>}, {transform_indices = @transform_25, window_bounds = array<i64: 2, 16, 64>}, {transform_indices = @transform_26, window_bounds = array<i64: 2, 16, 128>}]} {
    %c0 = arith.constant 0 : index
    %c0_0 = arith.constant 0 : index
    %c0_1 = arith.constant 0 : index
    %0 = vector.load %arg1[%c0, %c0_0, %c0_1] : memref<2x16x64xf32, #tpu.memory_space<vmem>>, vector<2x16x64xf32>
    %1 = vector.shape_cast %0 : vector<2x16x64xf32> to vector<32x64xf32>
    %2 = arith.truncf %1 : vector<32x64xf32> to vector<32x64xbf16>
    %c0_2 = arith.constant 0 : index
    %c0_3 = arith.constant 0 : index
    %3 = vector.load %arg2[%c0_2, %c0_3] : memref<64x64xbf16, #tpu.memory_space<vmem>>, vector<64x64xbf16>
    %cst = arith.constant dense<0.000000e+00> : vector<32x64xf32>
    %4 = tpu.matmul %2, %3, %cst {dimension_numbers = #tpu.dot_dimension_numbers<[1], [0], [0], [1], [0, 0, 1, 1], [], []>} : vector<32x64xbf16>, vector<64x64xbf16>, vector<32x64xf32> -> vector<32x64xf32>
    %c0_4 = arith.constant 0 : index
    %c0_5 = arith.constant 0 : index
    %5 = vector.load %arg3[%c0_4, %c0_5] : memref<1x64xf32, #tpu.memory_space<vmem>>, vector<1x64xf32>
    %6 = vector.broadcast %5 : vector<1x64xf32> to vector<32x64xf32>
    %7 = arith.addf %4, %6 : vector<32x64xf32>
    %cst_6 = arith.constant 5.000000e-01 : f32
    %8 = vector.broadcast %cst_6 : f32 to vector<32x64xf32>
    %9 = arith.mulf %8, %7 : vector<32x64xf32>
    %cst_7 = arith.constant 4.471500e-02 : f32
    %10 = vector.broadcast %cst_7 : f32 to vector<32x64xf32>
    %11 = arith.mulf %10, %7 : vector<32x64xf32>
    %12 = arith.mulf %11, %7 : vector<32x64xf32>
    %13 = arith.mulf %12, %7 : vector<32x64xf32>
    %14 = arith.addf %7, %13 : vector<32x64xf32>
    %cst_8 = arith.constant 0.797884583 : f32
    %15 = vector.broadcast %cst_8 : f32 to vector<32x64xf32>
    %16 = arith.mulf %15, %14 : vector<32x64xf32>
    %17 = math.tanh %16 : vector<32x64xf32>
    %cst_9 = arith.constant 1.000000e+00 : f32
    %18 = vector.broadcast %cst_9 : f32 to vector<32x64xf32>
    %19 = arith.addf %18, %17 : vector<32x64xf32>
    %20 = arith.mulf %9, %19 : vector<32x64xf32>
    %c0_10 = arith.constant 0 : index
    %c0_11 = arith.constant 0 : index
    %21 = vector.load %arg4[%c0_10, %c0_11] : memref<1x64xf32, #tpu.memory_space<vmem>>, vector<1x64xf32>
    %c0_12 = arith.constant 0 : index
    %c0_13 = arith.constant 0 : index
    %22 = vector.load %arg5[%c0_12, %c0_13] : memref<1x64xf32, #tpu.memory_space<vmem>>, vector<1x64xf32>
    %cst_14 = arith.constant dense<0.000000e+00> : vector<32xf32>
    %23 = vector.multi_reduction <add>, %20, %cst_14 [1] : vector<32x64xf32> to vector<32xf32>
    %24 = vector.shape_cast %23 : vector<32xf32> to vector<32x1xf32>
    %cst_15 = arith.constant 6.400000e+01 : f32
    %25 = vector.broadcast %cst_15 : f32 to vector<32x1xf32>
    %26 = arith.divf %24, %25 : vector<32x1xf32>
    %27 = vector.broadcast %26 : vector<32x1xf32> to vector<32x64xf32>
    %28 = arith.subf %20, %27 : vector<32x64xf32>
    %29 = arith.mulf %28, %28 : vector<32x64xf32>
    %cst_16 = arith.constant dense<0.000000e+00> : vector<32xf32>
    %30 = vector.multi_reduction <add>, %29, %cst_16 [1] : vector<32x64xf32> to vector<32xf32>
    %31 = vector.shape_cast %30 : vector<32xf32> to vector<32x1xf32>
    %cst_17 = arith.constant 6.400000e+01 : f32
    %32 = vector.broadcast %cst_17 : f32 to vector<32x1xf32>
    %33 = arith.divf %31, %32 : vector<32x1xf32>
    %34 = vector.broadcast %26 : vector<32x1xf32> to vector<32x64xf32>
    %35 = arith.subf %20, %34 : vector<32x64xf32>
    %cst_18 = arith.constant 9.99999974E-6 : f32
    %36 = vector.broadcast %cst_18 : f32 to vector<32x1xf32>
    %37 = arith.addf %33, %36 : vector<32x1xf32>
    %38 = math.rsqrt %37 : vector<32x1xf32>
    %39 = vector.broadcast %38 : vector<32x1xf32> to vector<32x64xf32>
    %40 = arith.mulf %35, %39 : vector<32x64xf32>
    %41 = vector.broadcast %21 : vector<1x64xf32> to vector<32x64xf32>
    %42 = arith.mulf %40, %41 : vector<32x64xf32>
    %43 = vector.broadcast %22 : vector<1x64xf32> to vector<32x64xf32>
    %44 = arith.addf %42, %43 : vector<32x64xf32>
    %45 = arith.truncf %44 : vector<32x64xf32> to vector<32x64xbf16>
    %c0_19 = arith.constant 0 : index
    %c0_20 = arith.constant 0 : index
    %46 = vector.load %arg6[%c0_19, %c0_20] : memref<64x64xbf16, #tpu.memory_space<vmem>>, vector<64x64xbf16>
    %cst_21 = arith.constant dense<0.000000e+00> : vector<32x64xf32>
    %47 = tpu.matmul %45, %46, %cst_21 {dimension_numbers = #tpu.dot_dimension_numbers<[1], [0], [0], [1], [0, 0, 1, 1], [], []>} : vector<32x64xbf16>, vector<64x64xbf16>, vector<32x64xf32> -> vector<32x64xf32>
    %c0_22 = arith.constant 0 : index
    %c0_23 = arith.constant 0 : index
    %48 = vector.load %arg7[%c0_22, %c0_23] : memref<64x64xbf16, #tpu.memory_space<vmem>>, vector<64x64xbf16>
    %cst_24 = arith.constant dense<0.000000e+00> : vector<32x64xf32>
    %49 = tpu.matmul %45, %48, %cst_24 {dimension_numbers = #tpu.dot_dimension_numbers<[1], [0], [0], [1], [0, 0, 1, 1], [], []>} : vector<32x64xbf16>, vector<64x64xbf16>, vector<32x64xf32> -> vector<32x64xf32>
    %c0_25 = arith.constant 0 : index
    %c0_26 = arith.constant 0 : index
    %50 = vector.load %arg8[%c0_25, %c0_26] : memref<64x64xbf16, #tpu.memory_space<vmem>>, vector<64x64xbf16>
    %cst_27 = arith.constant dense<0.000000e+00> : vector<32x64xf32>
    %51 = tpu.matmul %45, %50, %cst_27 {dimension_numbers = #tpu.dot_dimension_numbers<[1], [0], [0], [1], [0, 0, 1, 1], [], []>} : vector<32x64xbf16>, vector<64x64xbf16>, vector<32x64xf32> -> vector<32x64xf32>
    %52 = tpu.iota {dimensions = array<i32: 2>} : vector<1x1x64xi32>
    %c0_i32 = arith.constant 0 : i32
    %53 = vector.broadcast %c0_i32 : i32 to vector<1x1x64xi32>
    %54 = arith.cmpi sge, %52, %53 : vector<1x1x64xi32>
    %c8_i32 = arith.constant 8 : i32
    %55 = vector.broadcast %c8_i32 : i32 to vector<1x1x64xi32>
    %56 = arith.cmpi slt, %52, %55 : vector<1x1x64xi32>
    %57 = arith.andi %54, %56 : vector<1x1x64xi1>
    %cst_28 = arith.constant 0.353553385 : f32
    %cst_29 = arith.constant 0.000000e+00 : f32
    %58 = vector.broadcast %cst_28 : f32 to vector<1x1x64xf32>
    %59 = vector.broadcast %cst_29 : f32 to vector<1x1x64xf32>
    %60 = arith.select %57, %58, %59 : vector<1x1x64xi1>, vector<1x1x64xf32>
    %61 = arith.truncf %60 : vector<1x1x64xf32> to vector<1x1x64xbf16>
    %cst_30 = arith.constant 1.000000e+00 : f32
    %cst_31 = arith.constant 0.000000e+00 : f32
    %62 = vector.broadcast %cst_30 : f32 to vector<1x1x64xf32>
    %63 = vector.broadcast %cst_31 : f32 to vector<1x1x64xf32>
    %64 = arith.select %57, %62, %63 : vector<1x1x64xi1>, vector<1x1x64xf32>
    %65 = arith.truncf %64 : vector<1x1x64xf32> to vector<1x1x64xbf16>
    %c8_i32_32 = arith.constant 8 : i32
    %66 = vector.broadcast %c8_i32_32 : i32 to vector<1x1x64xi32>
    %67 = arith.cmpi sge, %52, %66 : vector<1x1x64xi32>
    %c16_i32 = arith.constant 16 : i32
    %68 = vector.broadcast %c16_i32 : i32 to vector<1x1x64xi32>
    %69 = arith.cmpi slt, %52, %68 : vector<1x1x64xi32>
    %70 = arith.andi %67, %69 : vector<1x1x64xi1>
    %cst_33 = arith.constant 0.353553385 : f32
    %cst_34 = arith.constant 0.000000e+00 : f32
    %71 = vector.broadcast %cst_33 : f32 to vector<1x1x64xf32>
    %72 = vector.broadcast %cst_34 : f32 to vector<1x1x64xf32>
    %73 = arith.select %70, %71, %72 : vector<1x1x64xi1>, vector<1x1x64xf32>
    %74 = arith.truncf %73 : vector<1x1x64xf32> to vector<1x1x64xbf16>
    %cst_35 = arith.constant 1.000000e+00 : f32
    %cst_36 = arith.constant 0.000000e+00 : f32
    %75 = vector.broadcast %cst_35 : f32 to vector<1x1x64xf32>
    %76 = vector.broadcast %cst_36 : f32 to vector<1x1x64xf32>
    %77 = arith.select %70, %75, %76 : vector<1x1x64xi1>, vector<1x1x64xf32>
    %78 = arith.truncf %77 : vector<1x1x64xf32> to vector<1x1x64xbf16>
    %c16_i32_37 = arith.constant 16 : i32
    %79 = vector.broadcast %c16_i32_37 : i32 to vector<1x1x64xi32>
    %80 = arith.cmpi sge, %52, %79 : vector<1x1x64xi32>
    %c24_i32 = arith.constant 24 : i32
    %81 = vector.broadcast %c24_i32 : i32 to vector<1x1x64xi32>
    %82 = arith.cmpi slt, %52, %81 : vector<1x1x64xi32>
    %83 = arith.andi %80, %82 : vector<1x1x64xi1>
    %cst_38 = arith.constant 0.353553385 : f32
    %cst_39 = arith.constant 0.000000e+00 : f32
    %84 = vector.broadcast %cst_38 : f32 to vector<1x1x64xf32>
    %85 = vector.broadcast %cst_39 : f32 to vector<1x1x64xf32>
    %86 = arith.select %83, %84, %85 : vector<1x1x64xi1>, vector<1x1x64xf32>
    %87 = arith.truncf %86 : vector<1x1x64xf32> to vector<1x1x64xbf16>
    %cst_40 = arith.constant 1.000000e+00 : f32
    %cst_41 = arith.constant 0.000000e+00 : f32
    %88 = vector.broadcast %cst_40 : f32 to vector<1x1x64xf32>
    %89 = vector.broadcast %cst_41 : f32 to vector<1x1x64xf32>
    %90 = arith.select %83, %88, %89 : vector<1x1x64xi1>, vector<1x1x64xf32>
    %91 = arith.truncf %90 : vector<1x1x64xf32> to vector<1x1x64xbf16>
    %c24_i32_42 = arith.constant 24 : i32
    %92 = vector.broadcast %c24_i32_42 : i32 to vector<1x1x64xi32>
    %93 = arith.cmpi sge, %52, %92 : vector<1x1x64xi32>
    %c32_i32 = arith.constant 32 : i32
    %94 = vector.broadcast %c32_i32 : i32 to vector<1x1x64xi32>
    %95 = arith.cmpi slt, %52, %94 : vector<1x1x64xi32>
    %96 = arith.andi %93, %95 : vector<1x1x64xi1>
    %cst_43 = arith.constant 0.353553385 : f32
    %cst_44 = arith.constant 0.000000e+00 : f32
    %97 = vector.broadcast %cst_43 : f32 to vector<1x1x64xf32>
    %98 = vector.broadcast %cst_44 : f32 to vector<1x1x64xf32>
    %99 = arith.select %96, %97, %98 : vector<1x1x64xi1>, vector<1x1x64xf32>
    %100 = arith.truncf %99 : vector<1x1x64xf32> to vector<1x1x64xbf16>
    %cst_45 = arith.constant 1.000000e+00 : f32
    %cst_46 = arith.constant 0.000000e+00 : f32
    %101 = vector.broadcast %cst_45 : f32 to vector<1x1x64xf32>
    %102 = vector.broadcast %cst_46 : f32 to vector<1x1x64xf32>
    %103 = arith.select %96, %101, %102 : vector<1x1x64xi1>, vector<1x1x64xf32>
    %104 = arith.truncf %103 : vector<1x1x64xf32> to vector<1x1x64xbf16>
    %c32_i32_47 = arith.constant 32 : i32
    %105 = vector.broadcast %c32_i32_47 : i32 to vector<1x1x64xi32>
    %106 = arith.cmpi sge, %52, %105 : vector<1x1x64xi32>
    %c40_i32 = arith.constant 40 : i32
    %107 = vector.broadcast %c40_i32 : i32 to vector<1x1x64xi32>
    %108 = arith.cmpi slt, %52, %107 : vector<1x1x64xi32>
    %109 = arith.andi %106, %108 : vector<1x1x64xi1>
    %cst_48 = arith.constant 0.353553385 : f32
    %cst_49 = arith.constant 0.000000e+00 : f32
    %110 = vector.broadcast %cst_48 : f32 to vector<1x1x64xf32>
    %111 = vector.broadcast %cst_49 : f32 to vector<1x1x64xf32>
    %112 = arith.select %109, %110, %111 : vector<1x1x64xi1>, vector<1x1x64xf32>
    %113 = arith.truncf %112 : vector<1x1x64xf32> to vector<1x1x64xbf16>
    %cst_50 = arith.constant 1.000000e+00 : f32
    %cst_51 = arith.constant 0.000000e+00 : f32
    %114 = vector.broadcast %cst_50 : f32 to vector<1x1x64xf32>
    %115 = vector.broadcast %cst_51 : f32 to vector<1x1x64xf32>
    %116 = arith.select %109, %114, %115 : vector<1x1x64xi1>, vector<1x1x64xf32>
    %117 = arith.truncf %116 : vector<1x1x64xf32> to vector<1x1x64xbf16>
    %c40_i32_52 = arith.constant 40 : i32
    %118 = vector.broadcast %c40_i32_52 : i32 to vector<1x1x64xi32>
    %119 = arith.cmpi sge, %52, %118 : vector<1x1x64xi32>
    %c48_i32 = arith.constant 48 : i32
    %120 = vector.broadcast %c48_i32 : i32 to vector<1x1x64xi32>
    %121 = arith.cmpi slt, %52, %120 : vector<1x1x64xi32>
    %122 = arith.andi %119, %121 : vector<1x1x64xi1>
    %cst_53 = arith.constant 0.353553385 : f32
    %cst_54 = arith.constant 0.000000e+00 : f32
    %123 = vector.broadcast %cst_53 : f32 to vector<1x1x64xf32>
    %124 = vector.broadcast %cst_54 : f32 to vector<1x1x64xf32>
    %125 = arith.select %122, %123, %124 : vector<1x1x64xi1>, vector<1x1x64xf32>
    %126 = arith.truncf %125 : vector<1x1x64xf32> to vector<1x1x64xbf16>
    %cst_55 = arith.constant 1.000000e+00 : f32
    %cst_56 = arith.constant 0.000000e+00 : f32
    %127 = vector.broadcast %cst_55 : f32 to vector<1x1x64xf32>
    %128 = vector.broadcast %cst_56 : f32 to vector<1x1x64xf32>
    %129 = arith.select %122, %127, %128 : vector<1x1x64xi1>, vector<1x1x64xf32>
    %130 = arith.truncf %129 : vector<1x1x64xf32> to vector<1x1x64xbf16>
    %c48_i32_57 = arith.constant 48 : i32
    %131 = vector.broadcast %c48_i32_57 : i32 to vector<1x1x64xi32>
    %132 = arith.cmpi sge, %52, %131 : vector<1x1x64xi32>
    %c56_i32 = arith.constant 56 : i32
    %133 = vector.broadcast %c56_i32 : i32 to vector<1x1x64xi32>
    %134 = arith.cmpi slt, %52, %133 : vector<1x1x64xi32>
    %135 = arith.andi %132, %134 : vector<1x1x64xi1>
    %cst_58 = arith.constant 0.353553385 : f32
    %cst_59 = arith.constant 0.000000e+00 : f32
    %136 = vector.broadcast %cst_58 : f32 to vector<1x1x64xf32>
    %137 = vector.broadcast %cst_59 : f32 to vector<1x1x64xf32>
    %138 = arith.select %135, %136, %137 : vector<1x1x64xi1>, vector<1x1x64xf32>
    %139 = arith.truncf %138 : vector<1x1x64xf32> to vector<1x1x64xbf16>
    %cst_60 = arith.constant 1.000000e+00 : f32
    %cst_61 = arith.constant 0.000000e+00 : f32
    %140 = vector.broadcast %cst_60 : f32 to vector<1x1x64xf32>
    %141 = vector.broadcast %cst_61 : f32 to vector<1x1x64xf32>
    %142 = arith.select %135, %140, %141 : vector<1x1x64xi1>, vector<1x1x64xf32>
    %143 = arith.truncf %142 : vector<1x1x64xf32> to vector<1x1x64xbf16>
    %c56_i32_62 = arith.constant 56 : i32
    %144 = vector.broadcast %c56_i32_62 : i32 to vector<1x1x64xi32>
    %145 = arith.cmpi sge, %52, %144 : vector<1x1x64xi32>
    %c64_i32 = arith.constant 64 : i32
    %146 = vector.broadcast %c64_i32 : i32 to vector<1x1x64xi32>
    %147 = arith.cmpi slt, %52, %146 : vector<1x1x64xi32>
    %148 = arith.andi %145, %147 : vector<1x1x64xi1>
    %cst_63 = arith.constant 0.353553385 : f32
    %cst_64 = arith.constant 0.000000e+00 : f32
    %149 = vector.broadcast %cst_63 : f32 to vector<1x1x64xf32>
    %150 = vector.broadcast %cst_64 : f32 to vector<1x1x64xf32>
    %151 = arith.select %148, %149, %150 : vector<1x1x64xi1>, vector<1x1x64xf32>
    %152 = arith.truncf %151 : vector<1x1x64xf32> to vector<1x1x64xbf16>
    %cst_65 = arith.constant 1.000000e+00 : f32
    %cst_66 = arith.constant 0.000000e+00 : f32
    %153 = vector.broadcast %cst_65 : f32 to vector<1x1x64xf32>
    %154 = vector.broadcast %cst_66 : f32 to vector<1x1x64xf32>
    %155 = arith.select %148, %153, %154 : vector<1x1x64xi1>, vector<1x1x64xf32>
    %156 = arith.truncf %155 : vector<1x1x64xf32> to vector<1x1x64xbf16>
    %157 = tpu.iota {dimensions = array<i32: 0>} : vector<16x128xi32>
    %158 = tpu.iota {dimensions = array<i32: 1>} : vector<16x128xi32>
    %c0_i32_67 = arith.constant 0 : i32
    %159 = vector.broadcast %c0_i32_67 : i32 to vector<16x128xi32>
    %160 = arith.addi %157, %159 : vector<16x128xi32>
    %161 = arith.cmpi eq, %158, %160 : vector<16x128xi32>
    %162 = arith.extui %161 : vector<16x128xi1> to vector<16x128xi32>
    %163 = arith.sitofp %162 : vector<16x128xi32> to vector<16x128xf32>
    %c16_i32_68 = arith.constant 16 : i32
    %164 = vector.broadcast %c16_i32_68 : i32 to vector<16x128xi32>
    %165 = arith.addi %157, %164 : vector<16x128xi32>
    %166 = arith.cmpi eq, %158, %165 : vector<16x128xi32>
    %167 = arith.extui %166 : vector<16x128xi1> to vector<16x128xi32>
    %168 = arith.sitofp %167 : vector<16x128xi32> to vector<16x128xf32>
    %c32_i32_69 = arith.constant 32 : i32
    %169 = vector.broadcast %c32_i32_69 : i32 to vector<16x128xi32>
    %170 = arith.addi %157, %169 : vector<16x128xi32>
    %171 = arith.cmpi eq, %158, %170 : vector<16x128xi32>
    %172 = arith.extui %171 : vector<16x128xi1> to vector<16x128xi32>
    %173 = arith.sitofp %172 : vector<16x128xi32> to vector<16x128xf32>
    %c48_i32_70 = arith.constant 48 : i32
    %174 = vector.broadcast %c48_i32_70 : i32 to vector<16x128xi32>
    %175 = arith.addi %157, %174 : vector<16x128xi32>
    %176 = arith.cmpi eq, %158, %175 : vector<16x128xi32>
    %177 = arith.extui %176 : vector<16x128xi1> to vector<16x128xi32>
    %178 = arith.sitofp %177 : vector<16x128xi32> to vector<16x128xf32>
    %c64_i32_71 = arith.constant 64 : i32
    %179 = vector.broadcast %c64_i32_71 : i32 to vector<16x128xi32>
    %180 = arith.addi %157, %179 : vector<16x128xi32>
    %181 = arith.cmpi eq, %158, %180 : vector<16x128xi32>
    %182 = arith.extui %181 : vector<16x128xi1> to vector<16x128xi32>
    %183 = arith.sitofp %182 : vector<16x128xi32> to vector<16x128xf32>
    %c80_i32 = arith.constant 80 : i32
    %184 = vector.broadcast %c80_i32 : i32 to vector<16x128xi32>
    %185 = arith.addi %157, %184 : vector<16x128xi32>
    %186 = arith.cmpi eq, %158, %185 : vector<16x128xi32>
    %187 = arith.extui %186 : vector<16x128xi1> to vector<16x128xi32>
    %188 = arith.sitofp %187 : vector<16x128xi32> to vector<16x128xf32>
    %c96_i32 = arith.constant 96 : i32
    %189 = vector.broadcast %c96_i32 : i32 to vector<16x128xi32>
    %190 = arith.addi %157, %189 : vector<16x128xi32>
    %191 = arith.cmpi eq, %158, %190 : vector<16x128xi32>
    %192 = arith.extui %191 : vector<16x128xi1> to vector<16x128xi32>
    %193 = arith.sitofp %192 : vector<16x128xi32> to vector<16x128xf32>
    %c112_i32 = arith.constant 112 : i32
    %194 = vector.broadcast %c112_i32 : i32 to vector<16x128xi32>
    %195 = arith.addi %157, %194 : vector<16x128xi32>
    %196 = arith.cmpi eq, %158, %195 : vector<16x128xi32>
    %197 = arith.extui %196 : vector<16x128xi1> to vector<16x128xi32>
    %198 = arith.sitofp %197 : vector<16x128xi32> to vector<16x128xf32>
    %199 = vector.shape_cast %47 : vector<32x64xf32> to vector<2x16x64xf32>
    %200 = arith.truncf %199 : vector<2x16x64xf32> to vector<2x16x64xbf16>
    %201 = vector.shape_cast %49 : vector<32x64xf32> to vector<2x16x64xf32>
    %202 = arith.truncf %201 : vector<2x16x64xf32> to vector<2x16x64xbf16>
    %203 = vector.shape_cast %51 : vector<32x64xf32> to vector<2x16x64xf32>
    %204 = arith.truncf %203 : vector<2x16x64xf32> to vector<2x16x64xbf16>
    %cst_72 = arith.constant 0.000000e+00 : f32
    %205 = vector.broadcast %cst_72 : f32 to vector<2x16x64xf32>
    %cst_73 = arith.constant 0.000000e+00 : f32
    %206 = vector.broadcast %cst_73 : f32 to vector<32x128xf32>
    %207 = vector.broadcast %61 : vector<1x1x64xbf16> to vector<2x16x64xbf16>
    %208 = arith.mulf %200, %207 : vector<2x16x64xbf16>
    "tpu.trace_start"() <{level = 10 : i32, message = "bqc,bkc->bqk"}> : () -> ()
    %cst_74 = arith.constant dense<0.000000e+00> : vector<2x16x16xf32>
    %209 = tpu.matmul %208, %202, %cst_74 {dimension_numbers = #tpu.dot_dimension_numbers<[2], [2], [1], [1], [0, 0, 0, 1, 1, 1], [0], [0]>} : vector<2x16x64xbf16>, vector<2x16x64xbf16>, vector<2x16x16xf32> -> vector<2x16x16xf32>
    "tpu.trace_stop"() : () -> ()
    %cst_75 = arith.constant dense<0xFF800000> : vector<2x16xf32>
    %210 = vector.multi_reduction <maximumf>, %209, %cst_75 [2] : vector<2x16x16xf32> to vector<2x16xf32>
    %211 = vector.shape_cast %210 : vector<2x16xf32> to vector<2x16x1xf32>
    %212 = vector.broadcast %211 : vector<2x16x1xf32> to vector<2x16x16xf32>
    %213 = arith.subf %209, %212 : vector<2x16x16xf32>
    %214 = math.exp %213 : vector<2x16x16xf32>
    %cst_76 = arith.constant dense<0.000000e+00> : vector<2x16xf32>
    %215 = vector.multi_reduction <add>, %214, %cst_76 [2] : vector<2x16x16xf32> to vector<2x16xf32>
    %216 = vector.shape_cast %215 : vector<2x16xf32> to vector<2x16x1xf32>
    %cst_77 = arith.constant 1.000000e+00 : f32
    %217 = vector.broadcast %cst_77 : f32 to vector<2x16x1xf32>
    %218 = arith.divf %217, %216 : vector<2x16x1xf32>
    %219 = vector.broadcast %218 : vector<2x16x1xf32> to vector<2x16x16xf32>
    %220 = arith.mulf %214, %219 : vector<2x16x16xf32>
    %221 = vector.shape_cast %220 : vector<2x16x16xf32> to vector<32x16xf32>
    %cst_78 = arith.constant dense<0.000000e+00> : vector<32x128xf32>
    %222 = tpu.matmul %221, %163, %cst_78 {dimension_numbers = #tpu.dot_dimension_numbers<[1], [0], [0], [1], [0, 0, 1, 1], [], []>} : vector<32x16xf32>, vector<16x128xf32>, vector<32x128xf32> -> vector<32x128xf32>
    %223 = arith.addf %206, %222 : vector<32x128xf32>
    %224 = vector.broadcast %65 : vector<1x1x64xbf16> to vector<2x16x64xbf16>
    %225 = arith.mulf %204, %224 : vector<2x16x64xbf16>
    %226 = arith.truncf %220 : vector<2x16x16xf32> to vector<2x16x16xbf16>
    "tpu.trace_start"() <{level = 10 : i32, message = "bqk,bkc->bqc"}> : () -> ()
    %cst_79 = arith.constant dense<0.000000e+00> : vector<2x16x64xf32>
    %227 = tpu.matmul %226, %225, %cst_79 {dimension_numbers = #tpu.dot_dimension_numbers<[2], [1], [1], [2], [0, 0, 0, 1, 1, 2], [0], [0]>} : vector<2x16x16xbf16>, vector<2x16x64xbf16>, vector<2x16x64xf32> -> vector<2x16x64xf32>
    "tpu.trace_stop"() : () -> ()
    %228 = arith.addf %205, %227 : vector<2x16x64xf32>
    %229 = vector.broadcast %74 : vector<1x1x64xbf16> to vector<2x16x64xbf16>
    %230 = arith.mulf %200, %229 : vector<2x16x64xbf16>
    "tpu.trace_start"() <{level = 10 : i32, message = "bqc,bkc->bqk"}> : () -> ()
    %cst_80 = arith.constant dense<0.000000e+00> : vector<2x16x16xf32>
    %231 = tpu.matmul %230, %202, %cst_80 {dimension_numbers = #tpu.dot_dimension_numbers<[2], [2], [1], [1], [0, 0, 0, 1, 1, 1], [0], [0]>} : vector<2x16x64xbf16>, vector<2x16x64xbf16>, vector<2x16x16xf32> -> vector<2x16x16xf32>
    "tpu.trace_stop"() : () -> ()
    %cst_81 = arith.constant dense<0xFF800000> : vector<2x16xf32>
    %232 = vector.multi_reduction <maximumf>, %231, %cst_81 [2] : vector<2x16x16xf32> to vector<2x16xf32>
    %233 = vector.shape_cast %232 : vector<2x16xf32> to vector<2x16x1xf32>
    %234 = vector.broadcast %233 : vector<2x16x1xf32> to vector<2x16x16xf32>
    %235 = arith.subf %231, %234 : vector<2x16x16xf32>
    %236 = math.exp %235 : vector<2x16x16xf32>
    %cst_82 = arith.constant dense<0.000000e+00> : vector<2x16xf32>
    %237 = vector.multi_reduction <add>, %236, %cst_82 [2] : vector<2x16x16xf32> to vector<2x16xf32>
    %238 = vector.shape_cast %237 : vector<2x16xf32> to vector<2x16x1xf32>
    %cst_83 = arith.constant 1.000000e+00 : f32
    %239 = vector.broadcast %cst_83 : f32 to vector<2x16x1xf32>
    %240 = arith.divf %239, %238 : vector<2x16x1xf32>
    %241 = vector.broadcast %240 : vector<2x16x1xf32> to vector<2x16x16xf32>
    %242 = arith.mulf %236, %241 : vector<2x16x16xf32>
    %243 = vector.shape_cast %242 : vector<2x16x16xf32> to vector<32x16xf32>
    %cst_84 = arith.constant dense<0.000000e+00> : vector<32x128xf32>
    %244 = tpu.matmul %243, %168, %cst_84 {dimension_numbers = #tpu.dot_dimension_numbers<[1], [0], [0], [1], [0, 0, 1, 1], [], []>} : vector<32x16xf32>, vector<16x128xf32>, vector<32x128xf32> -> vector<32x128xf32>
    %245 = arith.addf %223, %244 : vector<32x128xf32>
    %246 = vector.broadcast %78 : vector<1x1x64xbf16> to vector<2x16x64xbf16>
    %247 = arith.mulf %204, %246 : vector<2x16x64xbf16>
    %248 = arith.truncf %242 : vector<2x16x16xf32> to vector<2x16x16xbf16>
    "tpu.trace_start"() <{level = 10 : i32, message = "bqk,bkc->bqc"}> : () -> ()
    %cst_85 = arith.constant dense<0.000000e+00> : vector<2x16x64xf32>
    %249 = tpu.matmul %248, %247, %cst_85 {dimension_numbers = #tpu.dot_dimension_numbers<[2], [1], [1], [2], [0, 0, 0, 1, 1, 2], [0], [0]>} : vector<2x16x16xbf16>, vector<2x16x64xbf16>, vector<2x16x64xf32> -> vector<2x16x64xf32>
    "tpu.trace_stop"() : () -> ()
    %250 = arith.addf %228, %249 : vector<2x16x64xf32>
    %251 = vector.broadcast %87 : vector<1x1x64xbf16> to vector<2x16x64xbf16>
    %252 = arith.mulf %200, %251 : vector<2x16x64xbf16>
    "tpu.trace_start"() <{level = 10 : i32, message = "bqc,bkc->bqk"}> : () -> ()
    %cst_86 = arith.constant dense<0.000000e+00> : vector<2x16x16xf32>
    %253 = tpu.matmul %252, %202, %cst_86 {dimension_numbers = #tpu.dot_dimension_numbers<[2], [2], [1], [1], [0, 0, 0, 1, 1, 1], [0], [0]>} : vector<2x16x64xbf16>, vector<2x16x64xbf16>, vector<2x16x16xf32> -> vector<2x16x16xf32>
    "tpu.trace_stop"() : () -> ()
    %cst_87 = arith.constant dense<0xFF800000> : vector<2x16xf32>
    %254 = vector.multi_reduction <maximumf>, %253, %cst_87 [2] : vector<2x16x16xf32> to vector<2x16xf32>
    %255 = vector.shape_cast %254 : vector<2x16xf32> to vector<2x16x1xf32>
    %256 = vector.broadcast %255 : vector<2x16x1xf32> to vector<2x16x16xf32>
    %257 = arith.subf %253, %256 : vector<2x16x16xf32>
    %258 = math.exp %257 : vector<2x16x16xf32>
    %cst_88 = arith.constant dense<0.000000e+00> : vector<2x16xf32>
    %259 = vector.multi_reduction <add>, %258, %cst_88 [2] : vector<2x16x16xf32> to vector<2x16xf32>
    %260 = vector.shape_cast %259 : vector<2x16xf32> to vector<2x16x1xf32>
    %cst_89 = arith.constant 1.000000e+00 : f32
    %261 = vector.broadcast %cst_89 : f32 to vector<2x16x1xf32>
    %262 = arith.divf %261, %260 : vector<2x16x1xf32>
    %263 = vector.broadcast %262 : vector<2x16x1xf32> to vector<2x16x16xf32>
    %264 = arith.mulf %258, %263 : vector<2x16x16xf32>
    %265 = vector.shape_cast %264 : vector<2x16x16xf32> to vector<32x16xf32>
    %cst_90 = arith.constant dense<0.000000e+00> : vector<32x128xf32>
    %266 = tpu.matmul %265, %173, %cst_90 {dimension_numbers = #tpu.dot_dimension_numbers<[1], [0], [0], [1], [0, 0, 1, 1], [], []>} : vector<32x16xf32>, vector<16x128xf32>, vector<32x128xf32> -> vector<32x128xf32>
    %267 = arith.addf %245, %266 : vector<32x128xf32>
    %268 = vector.broadcast %91 : vector<1x1x64xbf16> to vector<2x16x64xbf16>
    %269 = arith.mulf %204, %268 : vector<2x16x64xbf16>
    %270 = arith.truncf %264 : vector<2x16x16xf32> to vector<2x16x16xbf16>
    "tpu.trace_start"() <{level = 10 : i32, message = "bqk,bkc->bqc"}> : () -> ()
    %cst_91 = arith.constant dense<0.000000e+00> : vector<2x16x64xf32>
    %271 = tpu.matmul %270, %269, %cst_91 {dimension_numbers = #tpu.dot_dimension_numbers<[2], [1], [1], [2], [0, 0, 0, 1, 1, 2], [0], [0]>} : vector<2x16x16xbf16>, vector<2x16x64xbf16>, vector<2x16x64xf32> -> vector<2x16x64xf32>
    "tpu.trace_stop"() : () -> ()
    %272 = arith.addf %250, %271 : vector<2x16x64xf32>
    %273 = vector.broadcast %100 : vector<1x1x64xbf16> to vector<2x16x64xbf16>
    %274 = arith.mulf %200, %273 : vector<2x16x64xbf16>
    "tpu.trace_start"() <{level = 10 : i32, message = "bqc,bkc->bqk"}> : () -> ()
    %cst_92 = arith.constant dense<0.000000e+00> : vector<2x16x16xf32>
    %275 = tpu.matmul %274, %202, %cst_92 {dimension_numbers = #tpu.dot_dimension_numbers<[2], [2], [1], [1], [0, 0, 0, 1, 1, 1], [0], [0]>} : vector<2x16x64xbf16>, vector<2x16x64xbf16>, vector<2x16x16xf32> -> vector<2x16x16xf32>
    "tpu.trace_stop"() : () -> ()
    %cst_93 = arith.constant dense<0xFF800000> : vector<2x16xf32>
    %276 = vector.multi_reduction <maximumf>, %275, %cst_93 [2] : vector<2x16x16xf32> to vector<2x16xf32>
    %277 = vector.shape_cast %276 : vector<2x16xf32> to vector<2x16x1xf32>
    %278 = vector.broadcast %277 : vector<2x16x1xf32> to vector<2x16x16xf32>
    %279 = arith.subf %275, %278 : vector<2x16x16xf32>
    %280 = math.exp %279 : vector<2x16x16xf32>
    %cst_94 = arith.constant dense<0.000000e+00> : vector<2x16xf32>
    %281 = vector.multi_reduction <add>, %280, %cst_94 [2] : vector<2x16x16xf32> to vector<2x16xf32>
    %282 = vector.shape_cast %281 : vector<2x16xf32> to vector<2x16x1xf32>
    %cst_95 = arith.constant 1.000000e+00 : f32
    %283 = vector.broadcast %cst_95 : f32 to vector<2x16x1xf32>
    %284 = arith.divf %283, %282 : vector<2x16x1xf32>
    %285 = vector.broadcast %284 : vector<2x16x1xf32> to vector<2x16x16xf32>
    %286 = arith.mulf %280, %285 : vector<2x16x16xf32>
    %287 = vector.shape_cast %286 : vector<2x16x16xf32> to vector<32x16xf32>
    %cst_96 = arith.constant dense<0.000000e+00> : vector<32x128xf32>
    %288 = tpu.matmul %287, %178, %cst_96 {dimension_numbers = #tpu.dot_dimension_numbers<[1], [0], [0], [1], [0, 0, 1, 1], [], []>} : vector<32x16xf32>, vector<16x128xf32>, vector<32x128xf32> -> vector<32x128xf32>
    %289 = arith.addf %267, %288 : vector<32x128xf32>
    %290 = vector.broadcast %104 : vector<1x1x64xbf16> to vector<2x16x64xbf16>
    %291 = arith.mulf %204, %290 : vector<2x16x64xbf16>
    %292 = arith.truncf %286 : vector<2x16x16xf32> to vector<2x16x16xbf16>
    "tpu.trace_start"() <{level = 10 : i32, message = "bqk,bkc->bqc"}> : () -> ()
    %cst_97 = arith.constant dense<0.000000e+00> : vector<2x16x64xf32>
    %293 = tpu.matmul %292, %291, %cst_97 {dimension_numbers = #tpu.dot_dimension_numbers<[2], [1], [1], [2], [0, 0, 0, 1, 1, 2], [0], [0]>} : vector<2x16x16xbf16>, vector<2x16x64xbf16>, vector<2x16x64xf32> -> vector<2x16x64xf32>
    "tpu.trace_stop"() : () -> ()
    %294 = arith.addf %272, %293 : vector<2x16x64xf32>
    %295 = vector.broadcast %113 : vector<1x1x64xbf16> to vector<2x16x64xbf16>
    %296 = arith.mulf %200, %295 : vector<2x16x64xbf16>
    "tpu.trace_start"() <{level = 10 : i32, message = "bqc,bkc->bqk"}> : () -> ()
    %cst_98 = arith.constant dense<0.000000e+00> : vector<2x16x16xf32>
    %297 = tpu.matmul %296, %202, %cst_98 {dimension_numbers = #tpu.dot_dimension_numbers<[2], [2], [1], [1], [0, 0, 0, 1, 1, 1], [0], [0]>} : vector<2x16x64xbf16>, vector<2x16x64xbf16>, vector<2x16x16xf32> -> vector<2x16x16xf32>
    "tpu.trace_stop"() : () -> ()
    %cst_99 = arith.constant dense<0xFF800000> : vector<2x16xf32>
    %298 = vector.multi_reduction <maximumf>, %297, %cst_99 [2] : vector<2x16x16xf32> to vector<2x16xf32>
    %299 = vector.shape_cast %298 : vector<2x16xf32> to vector<2x16x1xf32>
    %300 = vector.broadcast %299 : vector<2x16x1xf32> to vector<2x16x16xf32>
    %301 = arith.subf %297, %300 : vector<2x16x16xf32>
    %302 = math.exp %301 : vector<2x16x16xf32>
    %cst_100 = arith.constant dense<0.000000e+00> : vector<2x16xf32>
    %303 = vector.multi_reduction <add>, %302, %cst_100 [2] : vector<2x16x16xf32> to vector<2x16xf32>
    %304 = vector.shape_cast %303 : vector<2x16xf32> to vector<2x16x1xf32>
    %cst_101 = arith.constant 1.000000e+00 : f32
    %305 = vector.broadcast %cst_101 : f32 to vector<2x16x1xf32>
    %306 = arith.divf %305, %304 : vector<2x16x1xf32>
    %307 = vector.broadcast %306 : vector<2x16x1xf32> to vector<2x16x16xf32>
    %308 = arith.mulf %302, %307 : vector<2x16x16xf32>
    %309 = vector.shape_cast %308 : vector<2x16x16xf32> to vector<32x16xf32>
    %cst_102 = arith.constant dense<0.000000e+00> : vector<32x128xf32>
    %310 = tpu.matmul %309, %183, %cst_102 {dimension_numbers = #tpu.dot_dimension_numbers<[1], [0], [0], [1], [0, 0, 1, 1], [], []>} : vector<32x16xf32>, vector<16x128xf32>, vector<32x128xf32> -> vector<32x128xf32>
    %311 = arith.addf %289, %310 : vector<32x128xf32>
    %312 = vector.broadcast %117 : vector<1x1x64xbf16> to vector<2x16x64xbf16>
    %313 = arith.mulf %204, %312 : vector<2x16x64xbf16>
    %314 = arith.truncf %308 : vector<2x16x16xf32> to vector<2x16x16xbf16>
    "tpu.trace_start"() <{level = 10 : i32, message = "bqk,bkc->bqc"}> : () -> ()
    %cst_103 = arith.constant dense<0.000000e+00> : vector<2x16x64xf32>
    %315 = tpu.matmul %314, %313, %cst_103 {dimension_numbers = #tpu.dot_dimension_numbers<[2], [1], [1], [2], [0, 0, 0, 1, 1, 2], [0], [0]>} : vector<2x16x16xbf16>, vector<2x16x64xbf16>, vector<2x16x64xf32> -> vector<2x16x64xf32>
    "tpu.trace_stop"() : () -> ()
    %316 = arith.addf %294, %315 : vector<2x16x64xf32>
    %317 = vector.broadcast %126 : vector<1x1x64xbf16> to vector<2x16x64xbf16>
    %318 = arith.mulf %200, %317 : vector<2x16x64xbf16>
    "tpu.trace_start"() <{level = 10 : i32, message = "bqc,bkc->bqk"}> : () -> ()
    %cst_104 = arith.constant dense<0.000000e+00> : vector<2x16x16xf32>
    %319 = tpu.matmul %318, %202, %cst_104 {dimension_numbers = #tpu.dot_dimension_numbers<[2], [2], [1], [1], [0, 0, 0, 1, 1, 1], [0], [0]>} : vector<2x16x64xbf16>, vector<2x16x64xbf16>, vector<2x16x16xf32> -> vector<2x16x16xf32>
    "tpu.trace_stop"() : () -> ()
    %cst_105 = arith.constant dense<0xFF800000> : vector<2x16xf32>
    %320 = vector.multi_reduction <maximumf>, %319, %cst_105 [2] : vector<2x16x16xf32> to vector<2x16xf32>
    %321 = vector.shape_cast %320 : vector<2x16xf32> to vector<2x16x1xf32>
    %322 = vector.broadcast %321 : vector<2x16x1xf32> to vector<2x16x16xf32>
    %323 = arith.subf %319, %322 : vector<2x16x16xf32>
    %324 = math.exp %323 : vector<2x16x16xf32>
    %cst_106 = arith.constant dense<0.000000e+00> : vector<2x16xf32>
    %325 = vector.multi_reduction <add>, %324, %cst_106 [2] : vector<2x16x16xf32> to vector<2x16xf32>
    %326 = vector.shape_cast %325 : vector<2x16xf32> to vector<2x16x1xf32>
    %cst_107 = arith.constant 1.000000e+00 : f32
    %327 = vector.broadcast %cst_107 : f32 to vector<2x16x1xf32>
    %328 = arith.divf %327, %326 : vector<2x16x1xf32>
    %329 = vector.broadcast %328 : vector<2x16x1xf32> to vector<2x16x16xf32>
    %330 = arith.mulf %324, %329 : vector<2x16x16xf32>
    %331 = vector.shape_cast %330 : vector<2x16x16xf32> to vector<32x16xf32>
    %cst_108 = arith.constant dense<0.000000e+00> : vector<32x128xf32>
    %332 = tpu.matmul %331, %188, %cst_108 {dimension_numbers = #tpu.dot_dimension_numbers<[1], [0], [0], [1], [0, 0, 1, 1], [], []>} : vector<32x16xf32>, vector<16x128xf32>, vector<32x128xf32> -> vector<32x128xf32>
    %333 = arith.addf %311, %332 : vector<32x128xf32>
    %334 = vector.broadcast %130 : vector<1x1x64xbf16> to vector<2x16x64xbf16>
    %335 = arith.mulf %204, %334 : vector<2x16x64xbf16>
    %336 = arith.truncf %330 : vector<2x16x16xf32> to vector<2x16x16xbf16>
    "tpu.trace_start"() <{level = 10 : i32, message = "bqk,bkc->bqc"}> : () -> ()
    %cst_109 = arith.constant dense<0.000000e+00> : vector<2x16x64xf32>
    %337 = tpu.matmul %336, %335, %cst_109 {dimension_numbers = #tpu.dot_dimension_numbers<[2], [1], [1], [2], [0, 0, 0, 1, 1, 2], [0], [0]>} : vector<2x16x16xbf16>, vector<2x16x64xbf16>, vector<2x16x64xf32> -> vector<2x16x64xf32>
    "tpu.trace_stop"() : () -> ()
    %338 = arith.addf %316, %337 : vector<2x16x64xf32>
    %339 = vector.broadcast %139 : vector<1x1x64xbf16> to vector<2x16x64xbf16>
    %340 = arith.mulf %200, %339 : vector<2x16x64xbf16>
    "tpu.trace_start"() <{level = 10 : i32, message = "bqc,bkc->bqk"}> : () -> ()
    %cst_110 = arith.constant dense<0.000000e+00> : vector<2x16x16xf32>
    %341 = tpu.matmul %340, %202, %cst_110 {dimension_numbers = #tpu.dot_dimension_numbers<[2], [2], [1], [1], [0, 0, 0, 1, 1, 1], [0], [0]>} : vector<2x16x64xbf16>, vector<2x16x64xbf16>, vector<2x16x16xf32> -> vector<2x16x16xf32>
    "tpu.trace_stop"() : () -> ()
    %cst_111 = arith.constant dense<0xFF800000> : vector<2x16xf32>
    %342 = vector.multi_reduction <maximumf>, %341, %cst_111 [2] : vector<2x16x16xf32> to vector<2x16xf32>
    %343 = vector.shape_cast %342 : vector<2x16xf32> to vector<2x16x1xf32>
    %344 = vector.broadcast %343 : vector<2x16x1xf32> to vector<2x16x16xf32>
    %345 = arith.subf %341, %344 : vector<2x16x16xf32>
    %346 = math.exp %345 : vector<2x16x16xf32>
    %cst_112 = arith.constant dense<0.000000e+00> : vector<2x16xf32>
    %347 = vector.multi_reduction <add>, %346, %cst_112 [2] : vector<2x16x16xf32> to vector<2x16xf32>
    %348 = vector.shape_cast %347 : vector<2x16xf32> to vector<2x16x1xf32>
    %cst_113 = arith.constant 1.000000e+00 : f32
    %349 = vector.broadcast %cst_113 : f32 to vector<2x16x1xf32>
    %350 = arith.divf %349, %348 : vector<2x16x1xf32>
    %351 = vector.broadcast %350 : vector<2x16x1xf32> to vector<2x16x16xf32>
    %352 = arith.mulf %346, %351 : vector<2x16x16xf32>
    %353 = vector.shape_cast %352 : vector<2x16x16xf32> to vector<32x16xf32>
    %cst_114 = arith.constant dense<0.000000e+00> : vector<32x128xf32>
    %354 = tpu.matmul %353, %193, %cst_114 {dimension_numbers = #tpu.dot_dimension_numbers<[1], [0], [0], [1], [0, 0, 1, 1], [], []>} : vector<32x16xf32>, vector<16x128xf32>, vector<32x128xf32> -> vector<32x128xf32>
    %355 = arith.addf %333, %354 : vector<32x128xf32>
    %356 = vector.broadcast %143 : vector<1x1x64xbf16> to vector<2x16x64xbf16>
    %357 = arith.mulf %204, %356 : vector<2x16x64xbf16>
    %358 = arith.truncf %352 : vector<2x16x16xf32> to vector<2x16x16xbf16>
    "tpu.trace_start"() <{level = 10 : i32, message = "bqk,bkc->bqc"}> : () -> ()
    %cst_115 = arith.constant dense<0.000000e+00> : vector<2x16x64xf32>
    %359 = tpu.matmul %358, %357, %cst_115 {dimension_numbers = #tpu.dot_dimension_numbers<[2], [1], [1], [2], [0, 0, 0, 1, 1, 2], [0], [0]>} : vector<2x16x16xbf16>, vector<2x16x64xbf16>, vector<2x16x64xf32> -> vector<2x16x64xf32>
    "tpu.trace_stop"() : () -> ()
    %360 = arith.addf %338, %359 : vector<2x16x64xf32>
    %361 = vector.broadcast %152 : vector<1x1x64xbf16> to vector<2x16x64xbf16>
    %362 = arith.mulf %200, %361 : vector<2x16x64xbf16>
    "tpu.trace_start"() <{level = 10 : i32, message = "bqc,bkc->bqk"}> : () -> ()
    %cst_116 = arith.constant dense<0.000000e+00> : vector<2x16x16xf32>
    %363 = tpu.matmul %362, %202, %cst_116 {dimension_numbers = #tpu.dot_dimension_numbers<[2], [2], [1], [1], [0, 0, 0, 1, 1, 1], [0], [0]>} : vector<2x16x64xbf16>, vector<2x16x64xbf16>, vector<2x16x16xf32> -> vector<2x16x16xf32>
    "tpu.trace_stop"() : () -> ()
    %cst_117 = arith.constant dense<0xFF800000> : vector<2x16xf32>
    %364 = vector.multi_reduction <maximumf>, %363, %cst_117 [2] : vector<2x16x16xf32> to vector<2x16xf32>
    %365 = vector.shape_cast %364 : vector<2x16xf32> to vector<2x16x1xf32>
    %366 = vector.broadcast %365 : vector<2x16x1xf32> to vector<2x16x16xf32>
    %367 = arith.subf %363, %366 : vector<2x16x16xf32>
    %368 = math.exp %367 : vector<2x16x16xf32>
    %cst_118 = arith.constant dense<0.000000e+00> : vector<2x16xf32>
    %369 = vector.multi_reduction <add>, %368, %cst_118 [2] : vector<2x16x16xf32> to vector<2x16xf32>
    %370 = vector.shape_cast %369 : vector<2x16xf32> to vector<2x16x1xf32>
    %cst_119 = arith.constant 1.000000e+00 : f32
    %371 = vector.broadcast %cst_119 : f32 to vector<2x16x1xf32>
    %372 = arith.divf %371, %370 : vector<2x16x1xf32>
    %373 = vector.broadcast %372 : vector<2x16x1xf32> to vector<2x16x16xf32>
    %374 = arith.mulf %368, %373 : vector<2x16x16xf32>
    %375 = vector.shape_cast %374 : vector<2x16x16xf32> to vector<32x16xf32>
    %cst_120 = arith.constant dense<0.000000e+00> : vector<32x128xf32>
    %376 = tpu.matmul %375, %198, %cst_120 {dimension_numbers = #tpu.dot_dimension_numbers<[1], [0], [0], [1], [0, 0, 1, 1], [], []>} : vector<32x16xf32>, vector<16x128xf32>, vector<32x128xf32> -> vector<32x128xf32>
    %377 = arith.addf %355, %376 : vector<32x128xf32>
    %378 = vector.broadcast %156 : vector<1x1x64xbf16> to vector<2x16x64xbf16>
    %379 = arith.mulf %204, %378 : vector<2x16x64xbf16>
    %380 = arith.truncf %374 : vector<2x16x16xf32> to vector<2x16x16xbf16>
    "tpu.trace_start"() <{level = 10 : i32, message = "bqk,bkc->bqc"}> : () -> ()
    %cst_121 = arith.constant dense<0.000000e+00> : vector<2x16x64xf32>
    %381 = tpu.matmul %380, %379, %cst_121 {dimension_numbers = #tpu.dot_dimension_numbers<[2], [1], [1], [2], [0, 0, 0, 1, 1, 2], [0], [0]>} : vector<2x16x16xbf16>, vector<2x16x64xbf16>, vector<2x16x64xf32> -> vector<2x16x64xf32>
    "tpu.trace_stop"() : () -> ()
    %382 = arith.addf %360, %381 : vector<2x16x64xf32>
    %383 = vector.shape_cast %377 : vector<32x128xf32> to vector<2x16x128xf32>
    %c0_122 = arith.constant 0 : index
    %c0_123 = arith.constant 0 : index
    %c0_124 = arith.constant 0 : index
    %384 = vector.load %arg27[%c0_122, %c0_123, %c0_124] : memref<2x16x128xf32, #tpu.memory_space<vmem>>, vector<2x16x128xf32>
    tpu.vector_store %arg27[%c0_122, %c0_123, %c0_124], %383 {strides = array<i32>} : memref<2x16x128xf32, #tpu.memory_space<vmem>>, vector<2x16x128xf32>,
    %385 = vector.shape_cast %382 : vector<2x16x64xf32> to vector<32x64xf32>
    %386 = arith.truncf %385 : vector<32x64xf32> to vector<32x64xbf16>
    %c0_125 = arith.constant 0 : index
    %c0_126 = arith.constant 0 : index
    %387 = vector.load %arg9[%c0_125, %c0_126] : memref<64x64xbf16, #tpu.memory_space<vmem>>, vector<64x64xbf16>
    %cst_127 = arith.constant dense<0.000000e+00> : vector<32x64xf32>
    %388 = tpu.matmul %386, %387, %cst_127 {dimension_numbers = #tpu.dot_dimension_numbers<[1], [0], [0], [1], [0, 0, 1, 1], [], []>} : vector<32x64xbf16>, vector<64x64xbf16>, vector<32x64xf32> -> vector<32x64xf32>
    %c0_128 = arith.constant 0 : index
    %c0_129 = arith.constant 0 : index
    %389 = vector.load %arg10[%c0_128, %c0_129] : memref<1x64xf32, #tpu.memory_space<vmem>>, vector<1x64xf32>
    %390 = vector.broadcast %389 : vector<1x64xf32> to vector<32x64xf32>
    %391 = arith.addf %388, %390 : vector<32x64xf32>
    %c0_130 = arith.constant 0 : index
    %c0_131 = arith.constant 0 : index
    %392 = vector.load %arg11[%c0_130, %c0_131] : memref<64x64xbf16, #tpu.memory_space<vmem>>, vector<64x64xbf16>
    %cst_132 = arith.constant dense<0.000000e+00> : vector<32x64xf32>
    %393 = tpu.matmul %386, %392, %cst_132 {dimension_numbers = #tpu.dot_dimension_numbers<[1], [0], [0], [1], [0, 0, 1, 1], [], []>} : vector<32x64xbf16>, vector<64x64xbf16>, vector<32x64xf32> -> vector<32x64xf32>
    %c0_133 = arith.constant 0 : index
    %c0_134 = arith.constant 0 : index
    %394 = vector.load %arg12[%c0_133, %c0_134] : memref<1x64xf32, #tpu.memory_space<vmem>>, vector<1x64xf32>
    %395 = vector.broadcast %394 : vector<1x64xf32> to vector<32x64xf32>
    %396 = arith.addf %393, %395 : vector<32x64xf32>
    %397 = arith.addf %1, %391 : vector<32x64xf32>
    %c0_135 = arith.constant 0 : index
    %c0_136 = arith.constant 0 : index
    %398 = vector.load %arg13[%c0_135, %c0_136] : memref<1x64xf32, #tpu.memory_space<vmem>>, vector<1x64xf32>
    %c0_137 = arith.constant 0 : index
    %c0_138 = arith.constant 0 : index
    %399 = vector.load %arg14[%c0_137, %c0_138] : memref<1x64xf32, #tpu.memory_space<vmem>>, vector<1x64xf32>
    %cst_139 = arith.constant dense<0.000000e+00> : vector<32xf32>
    %400 = vector.multi_reduction <add>, %397, %cst_139 [1] : vector<32x64xf32> to vector<32xf32>
    %401 = vector.shape_cast %400 : vector<32xf32> to vector<32x1xf32>
    %cst_140 = arith.constant 6.400000e+01 : f32
    %402 = vector.broadcast %cst_140 : f32 to vector<32x1xf32>
    %403 = arith.divf %401, %402 : vector<32x1xf32>
    %404 = vector.broadcast %403 : vector<32x1xf32> to vector<32x64xf32>
    %405 = arith.subf %397, %404 : vector<32x64xf32>
    %406 = arith.mulf %405, %405 : vector<32x64xf32>
    %cst_141 = arith.constant dense<0.000000e+00> : vector<32xf32>
    %407 = vector.multi_reduction <add>, %406, %cst_141 [1] : vector<32x64xf32> to vector<32xf32>
    %408 = vector.shape_cast %407 : vector<32xf32> to vector<32x1xf32>
    %cst_142 = arith.constant 6.400000e+01 : f32
    %409 = vector.broadcast %cst_142 : f32 to vector<32x1xf32>
    %410 = arith.divf %408, %409 : vector<32x1xf32>
    %411 = vector.broadcast %403 : vector<32x1xf32> to vector<32x64xf32>
    %412 = arith.subf %397, %411 : vector<32x64xf32>
    %cst_143 = arith.constant 9.99999974E-6 : f32
    %413 = vector.broadcast %cst_143 : f32 to vector<32x1xf32>
    %414 = arith.addf %410, %413 : vector<32x1xf32>
    %415 = math.rsqrt %414 : vector<32x1xf32>
    %416 = vector.broadcast %415 : vector<32x1xf32> to vector<32x64xf32>
    %417 = arith.mulf %412, %416 : vector<32x64xf32>
    %418 = vector.broadcast %398 : vector<1x64xf32> to vector<32x64xf32>
    %419 = arith.mulf %417, %418 : vector<32x64xf32>
    %420 = vector.broadcast %399 : vector<1x64xf32> to vector<32x64xf32>
    %421 = arith.addf %419, %420 : vector<32x64xf32>
    %422 = arith.truncf %421 : vector<32x64xf32> to vector<32x64xbf16>
    %c0_144 = arith.constant 0 : index
    %c0_145 = arith.constant 0 : index
    %423 = vector.load %arg17[%c0_144, %c0_145] : memref<64x256xbf16, #tpu.memory_space<vmem>>, vector<64x256xbf16>
    %cst_146 = arith.constant dense<0.000000e+00> : vector<32x256xf32>
    %424 = tpu.matmul %422, %423, %cst_146 {dimension_numbers = #tpu.dot_dimension_numbers<[1], [0], [0], [1], [0, 0, 1, 1], [], []>} : vector<32x64xbf16>, vector<64x256xbf16>, vector<32x256xf32> -> vector<32x256xf32>
    %c0_147 = arith.constant 0 : index
    %c0_148 = arith.constant 0 : index
    %425 = vector.load %arg18[%c0_147, %c0_148] : memref<1x256xf32, #tpu.memory_space<vmem>>, vector<1x256xf32>
    %426 = vector.broadcast %425 : vector<1x256xf32> to vector<32x256xf32>
    %427 = arith.addf %424, %426 : vector<32x256xf32>
    %cst_149 = arith.constant 5.000000e-01 : f32
    %428 = vector.broadcast %cst_149 : f32 to vector<32x256xf32>
    %429 = arith.mulf %428, %427 : vector<32x256xf32>
    %cst_150 = arith.constant 4.471500e-02 : f32
    %430 = vector.broadcast %cst_150 : f32 to vector<32x256xf32>
    %431 = arith.mulf %430, %427 : vector<32x256xf32>
    %432 = arith.mulf %431, %427 : vector<32x256xf32>
    %433 = arith.mulf %432, %427 : vector<32x256xf32>
    %434 = arith.addf %427, %433 : vector<32x256xf32>
    %cst_151 = arith.constant 0.797884583 : f32
    %435 = vector.broadcast %cst_151 : f32 to vector<32x256xf32>
    %436 = arith.mulf %435, %434 : vector<32x256xf32>
    %437 = math.tanh %436 : vector<32x256xf32>
    %cst_152 = arith.constant 1.000000e+00 : f32
    %438 = vector.broadcast %cst_152 : f32 to vector<32x256xf32>
    %439 = arith.addf %438, %437 : vector<32x256xf32>
    %440 = arith.mulf %429, %439 : vector<32x256xf32>
    %441 = arith.truncf %440 : vector<32x256xf32> to vector<32x256xbf16>
    %c0_153 = arith.constant 0 : index
    %c0_154 = arith.constant 0 : index
    %442 = vector.load %arg19[%c0_153, %c0_154] : memref<256x64xbf16, #tpu.memory_space<vmem>>, vector<256x64xbf16>
    %cst_155 = arith.constant dense<0.000000e+00> : vector<32x64xf32>
    %443 = tpu.matmul %441, %442, %cst_155 {dimension_numbers = #tpu.dot_dimension_numbers<[1], [0], [0], [1], [0, 0, 1, 1], [], []>} : vector<32x256xbf16>, vector<256x64xbf16>, vector<32x64xf32> -> vector<32x64xf32>
    %444 = arith.addf %397, %443 : vector<32x64xf32>
    %c0_156 = arith.constant 0 : index
    %c0_157 = arith.constant 0 : index
    %445 = vector.load %arg20[%c0_156, %c0_157] : memref<1x64xf32, #tpu.memory_space<vmem>>, vector<1x64xf32>
    %446 = vector.broadcast %445 : vector<1x64xf32> to vector<32x64xf32>
    %447 = arith.addf %444, %446 : vector<32x64xf32>
    %c0_158 = arith.constant 0 : index
    %c0_159 = arith.constant 0 : index
    %448 = vector.load %arg15[%c0_158, %c0_159] : memref<1x64xf32, #tpu.memory_space<vmem>>, vector<1x64xf32>
    %c0_160 = arith.constant 0 : index
    %c0_161 = arith.constant 0 : index
    %449 = vector.load %arg16[%c0_160, %c0_161] : memref<1x64xf32, #tpu.memory_space<vmem>>, vector<1x64xf32>
    %cst_162 = arith.constant dense<0.000000e+00> : vector<32xf32>
    %450 = vector.multi_reduction <add>, %396, %cst_162 [1] : vector<32x64xf32> to vector<32xf32>
    %451 = vector.shape_cast %450 : vector<32xf32> to vector<32x1xf32>
    %cst_163 = arith.constant 6.400000e+01 : f32
    %452 = vector.broadcast %cst_163 : f32 to vector<32x1xf32>
    %453 = arith.divf %451, %452 : vector<32x1xf32>
    %454 = vector.broadcast %453 : vector<32x1xf32> to vector<32x64xf32>
    %455 = arith.subf %396, %454 : vector<32x64xf32>
    %456 = arith.mulf %455, %455 : vector<32x64xf32>
    %cst_164 = arith.constant dense<0.000000e+00> : vector<32xf32>
    %457 = vector.multi_reduction <add>, %456, %cst_164 [1] : vector<32x64xf32> to vector<32xf32>
    %458 = vector.shape_cast %457 : vector<32xf32> to vector<32x1xf32>
    %cst_165 = arith.constant 6.400000e+01 : f32
    %459 = vector.broadcast %cst_165 : f32 to vector<32x1xf32>
    %460 = arith.divf %458, %459 : vector<32x1xf32>
    %461 = vector.broadcast %453 : vector<32x1xf32> to vector<32x64xf32>
    %462 = arith.subf %396, %461 : vector<32x64xf32>
    %cst_166 = arith.constant 9.99999974E-6 : f32
    %463 = vector.broadcast %cst_166 : f32 to vector<32x1xf32>
    %464 = arith.addf %460, %463 : vector<32x1xf32>
    %465 = math.rsqrt %464 : vector<32x1xf32>
    %466 = vector.broadcast %465 : vector<32x1xf32> to vector<32x64xf32>
    %467 = arith.mulf %462, %466 : vector<32x64xf32>
    %468 = vector.broadcast %448 : vector<1x64xf32> to vector<32x64xf32>
    %469 = arith.mulf %467, %468 : vector<32x64xf32>
    %470 = vector.broadcast %449 : vector<1x64xf32> to vector<32x64xf32>
    %471 = arith.addf %469, %470 : vector<32x64xf32>
    %472 = arith.truncf %471 : vector<32x64xf32> to vector<32x64xbf16>
    %c0_167 = arith.constant 0 : index
    %c0_168 = arith.constant 0 : index
    %473 = vector.load %arg21[%c0_167, %c0_168] : memref<64x256xbf16, #tpu.memory_space<vmem>>, vector<64x256xbf16>
    %cst_169 = arith.constant dense<0.000000e+00> : vector<32x256xf32>
    %474 = tpu.matmul %472, %473, %cst_169 {dimension_numbers = #tpu.dot_dimension_numbers<[1], [0], [0], [1], [0, 0, 1, 1], [], []>} : vector<32x64xbf16>, vector<64x256xbf16>, vector<32x256xf32> -> vector<32x256xf32>
    %c0_170 = arith.constant 0 : index
    %c0_171 = arith.constant 0 : index
    %475 = vector.load %arg22[%c0_170, %c0_171] : memref<1x256xf32, #tpu.memory_space<vmem>>, vector<1x256xf32>
    %476 = vector.broadcast %475 : vector<1x256xf32> to vector<32x256xf32>
    %477 = arith.addf %474, %476 : vector<32x256xf32>
    %cst_172 = arith.constant 5.000000e-01 : f32
    %478 = vector.broadcast %cst_172 : f32 to vector<32x256xf32>
    %479 = arith.mulf %478, %477 : vector<32x256xf32>
    %cst_173 = arith.constant 4.471500e-02 : f32
    %480 = vector.broadcast %cst_173 : f32 to vector<32x256xf32>
    %481 = arith.mulf %480, %477 : vector<32x256xf32>
    %482 = arith.mulf %481, %477 : vector<32x256xf32>
    %483 = arith.mulf %482, %477 : vector<32x256xf32>
    %484 = arith.addf %477, %483 : vector<32x256xf32>
    %cst_174 = arith.constant 0.797884583 : f32
    %485 = vector.broadcast %cst_174 : f32 to vector<32x256xf32>
    %486 = arith.mulf %485, %484 : vector<32x256xf32>
    %487 = math.tanh %486 : vector<32x256xf32>
    %cst_175 = arith.constant 1.000000e+00 : f32
    %488 = vector.broadcast %cst_175 : f32 to vector<32x256xf32>
    %489 = arith.addf %488, %487 : vector<32x256xf32>
    %490 = arith.mulf %479, %489 : vector<32x256xf32>
    %491 = arith.truncf %490 : vector<32x256xf32> to vector<32x256xbf16>
    %c0_176 = arith.constant 0 : index
    %c0_177 = arith.constant 0 : index
    %492 = vector.load %arg23[%c0_176, %c0_177] : memref<256x64xbf16, #tpu.memory_space<vmem>>, vector<256x64xbf16>
    %cst_178 = arith.constant dense<0.000000e+00> : vector<32x64xf32>
    %493 = tpu.matmul %491, %492, %cst_178 {dimension_numbers = #tpu.dot_dimension_numbers<[1], [0], [0], [1], [0, 0, 1, 1], [], []>} : vector<32x256xbf16>, vector<256x64xbf16>, vector<32x64xf32> -> vector<32x64xf32>
    %494 = arith.addf %396, %493 : vector<32x64xf32>
    %c0_179 = arith.constant 0 : index
    %c0_180 = arith.constant 0 : index
    %495 = vector.load %arg24[%c0_179, %c0_180] : memref<1x64xf32, #tpu.memory_space<vmem>>, vector<1x64xf32>
    %496 = vector.broadcast %495 : vector<1x64xf32> to vector<32x64xf32>
    %497 = arith.addf %494, %496 : vector<32x64xf32>
    %498 = vector.shape_cast %447 : vector<32x64xf32> to vector<2x16x64xf32>
    %c0_181 = arith.constant 0 : index
    %c0_182 = arith.constant 0 : index
    %c0_183 = arith.constant 0 : index
    %499 = vector.load %arg25[%c0_181, %c0_182, %c0_183] : memref<2x16x64xf32, #tpu.memory_space<vmem>>, vector<2x16x64xf32>
    tpu.vector_store %arg25[%c0_181, %c0_182, %c0_183], %498 {strides = array<i32>} : memref<2x16x64xf32, #tpu.memory_space<vmem>>, vector<2x16x64xf32>,
    %500 = vector.shape_cast %497 : vector<32x64xf32> to vector<2x16x64xf32>
    %c0_184 = arith.constant 0 : index
    %c0_185 = arith.constant 0 : index
    %c0_186 = arith.constant 0 : index
    %501 = vector.load %arg26[%c0_184, %c0_185, %c0_186] : memref<2x16x64xf32, #tpu.memory_space<vmem>>, vector<2x16x64xf32>
    tpu.vector_store %arg26[%c0_184, %c0_185, %c0_186], %500 {strides = array<i32>} : memref<2x16x64xf32, #tpu.memory_space<vmem>>, vector<2x16x64xf32>,
    return
  }
  func.func @transform_0(%arg0: i32) -> (i32, i32, i32) {
    %c0_i32 = arith.constant 0 : i32
    %c0_i32_0 = arith.constant 0 : i32
    %c0_i32_1 = arith.constant 0 : i32
    return %arg0, %c0_i32, %c0_i32_0 : i32, i32, i32
  }
  func.func @transform_1(%arg0: i32) -> (i32, i32) {
    %c0_i32 = arith.constant 0 : i32
    %c0_i32_0 = arith.constant 0 : i32
    %c0_i32_1 = arith.constant 0 : i32
    return %c0_i32, %c0_i32_0 : i32, i32
  }
  func.func @transform_2(%arg0: i32) -> (i32, i32) {
    %c0_i32 = arith.constant 0 : i32
    %c0_i32_0 = arith.constant 0 : i32
    %c0_i32_1 = arith.constant 0 : i32
    return %c0_i32, %c0_i32_0 : i32, i32
  }
  func.func @transform_3(%arg0: i32) -> (i32, i32) {
    %c0_i32 = arith.constant 0 : i32
    %c0_i32_0 = arith.constant 0 : i32
    %c0_i32_1 = arith.constant 0 : i32
    return %c0_i32, %c0_i32_0 : i32, i32
  }
  func.func @transform_4(%arg0: i32) -> (i32, i32) {
    %c0_i32 = arith.constant 0 : i32
    %c0_i32_0 = arith.constant 0 : i32
    %c0_i32_1 = arith.constant 0 : i32
    return %c0_i32, %c0_i32_0 : i32, i32
  }
  func.func @transform_5(%arg0: i32) -> (i32, i32) {
    %c0_i32 = arith.constant 0 : i32
    %c0_i32_0 = arith.constant 0 : i32
    %c0_i32_1 = arith.constant 0 : i32
    return %c0_i32, %c0_i32_0 : i32, i32
  }
  func.func @transform_6(%arg0: i32) -> (i32, i32) {
    %c0_i32 = arith.constant 0 : i32
    %c0_i32_0 = arith.constant 0 : i32
    %c0_i32_1 = arith.constant 0 : i32
    return %c0_i32, %c0_i32_0 : i32, i32
  }
  func.func @transform_7(%arg0: i32) -> (i32, i32) {
    %c0_i32 = arith.constant 0 : i32
    %c0_i32_0 = arith.constant 0 : i32
    %c0_i32_1 = arith.constant 0 : i32
    return %c0_i32, %c0_i32_0 : i32, i32
  }
  func.func @transform_8(%arg0: i32) -> (i32, i32) {
    %c0_i32 = arith.constant 0 : i32
    %c0_i32_0 = arith.constant 0 : i32
    %c0_i32_1 = arith.constant 0 : i32
    return %c0_i32, %c0_i32_0 : i32, i32
  }
  func.func @transform_9(%arg0: i32) -> (i32, i32) {
    %c0_i32 = arith.constant 0 : i32
    %c0_i32_0 = arith.constant 0 : i32
    %c0_i32_1 = arith.constant 0 : i32
    return %c0_i32, %c0_i32_0 : i32, i32
  }
  func.func @transform_10(%arg0: i32) -> (i32, i32) {
    %c0_i32 = arith.constant 0 : i32
    %c0_i32_0 = arith.constant 0 : i32
    %c0_i32_1 = arith.constant 0 : i32
    return %c0_i32, %c0_i32_0 : i32, i32
  }
  func.func @transform_11(%arg0: i32) -> (i32, i32) {
    %c0_i32 = arith.constant 0 : i32
    %c0_i32_0 = arith.constant 0 : i32
    %c0_i32_1 = arith.constant 0 : i32
    return %c0_i32, %c0_i32_0 : i32, i32
  }
  func.func @transform_12(%arg0: i32) -> (i32, i32) {
    %c0_i32 = arith.constant 0 : i32
    %c0_i32_0 = arith.constant 0 : i32
    %c0_i32_1 = arith.constant 0 : i32
    return %c0_i32, %c0_i32_0 : i32, i32
  }
  func.func @transform_13(%arg0: i32) -> (i32, i32) {
    %c0_i32 = arith.constant 0 : i32
    %c0_i32_0 = arith.constant 0 : i32
    %c0_i32_1 = arith.constant 0 : i32
    return %c0_i32, %c0_i32_0 : i32, i32
  }
  func.func @transform_14(%arg0: i32) -> (i32, i32) {
    %c0_i32 = arith.constant 0 : i32
    %c0_i32_0 = arith.constant 0 : i32
    %c0_i32_1 = arith.constant 0 : i32
    return %c0_i32, %c0_i32_0 : i32, i32
  }
  func.func @transform_15(%arg0: i32) -> (i32, i32) {
    %c0_i32 = arith.constant 0 : i32
    %c0_i32_0 = arith.constant 0 : i32
    %c0_i32_1 = arith.constant 0 : i32
    return %c0_i32, %c0_i32_0 : i32, i32
  }
  func.func @transform_16(%arg0: i32) -> (i32, i32) {
    %c0_i32 = arith.constant 0 : i32
    %c0_i32_0 = arith.constant 0 : i32
    %c0_i32_1 = arith.constant 0 : i32
    return %c0_i32, %c0_i32_0 : i32, i32
  }
  func.func @transform_17(%arg0: i32) -> (i32, i32) {
    %c0_i32 = arith.constant 0 : i32
    %c0_i32_0 = arith.constant 0 : i32
    %c0_i32_1 = arith.constant 0 : i32
    return %c0_i32, %c0_i32_0 : i32, i32
  }
  func.func @transform_18(%arg0: i32) -> (i32, i32) {
    %c0_i32 = arith.constant 0 : i32
    %c0_i32_0 = arith.constant 0 : i32
    %c0_i32_1 = arith.constant 0 : i32
    return %c0_i32, %c0_i32_0 : i32, i32
  }
  func.func @transform_19(%arg0: i32) -> (i32, i32) {
    %c0_i32 = arith.constant 0 : i32
    %c0_i32_0 = arith.constant 0 : i32
    %c0_i32_1 = arith.constant 0 : i32
    return %c0_i32, %c0_i32_0 : i32, i32
  }
  func.func @transform_20(%arg0: i32) -> (i32, i32) {
    %c0_i32 = arith.constant 0 : i32
    %c0_i32_0 = arith.constant 0 : i32
    %c0_i32_1 = arith.constant 0 : i32
    return %c0_i32, %c0_i32_0 : i32, i32
  }
  func.func @transform_21(%arg0: i32) -> (i32, i32) {
    %c0_i32 = arith.constant 0 : i32
    %c0_i32_0 = arith.constant 0 : i32
    %c0_i32_1 = arith.constant 0 : i32
    return %c0_i32, %c0_i32_0 : i32, i32
  }
  func.func @transform_22(%arg0: i32) -> (i32, i32) {
    %c0_i32 = arith.constant 0 : i32
    %c0_i32_0 = arith.constant 0 : i32
    %c0_i32_1 = arith.constant 0 : i32
    return %c0_i32, %c0_i32_0 : i32, i32
  }
  func.func @transform_23(%arg0: i32) -> (i32, i32) {
    %c0_i32 = arith.constant 0 : i32
    %c0_i32_0 = arith.constant 0 : i32
    %c0_i32_1 = arith.constant 0 : i32
    return %c0_i32, %c0_i32_0 : i32, i32
  }
  func.func @transform_24(%arg0: i32) -> (i32, i32, i32) {
    %c0_i32 = arith.constant 0 : i32
    %c0_i32_0 = arith.constant 0 : i32
    %c0_i32_1 = arith.constant 0 : i32
    return %arg0, %c0_i32, %c0_i32_0 : i32, i32, i32
  }
  func.func @transform_25(%arg0: i32) -> (i32, i32, i32) {
    %c0_i32 = arith.constant 0 : i32
    %c0_i32_0 = arith.constant 0 : i32
    %c0_i32_1 = arith.constant 0 : i32
    return %arg0, %c0_i32, %c0_i32_0 : i32, i32, i32
  }
  func.func @transform_26(%arg0: i32) -> (i32, i32, i32) {
    %c0_i32 = arith.constant 0 : i32
    %c0_i32_0 = arith.constant 0 : i32
    %c0_i32_1 = arith.constant 0 : i32
    return %arg0, %c0_i32, %c0_i32_0 : i32, i32, i32
  }
}

</mosaic_0001>

<bundles_post_ra>
// kernel: tpu_custom_call.1
= control target key start
LH: loop header
LB: loop body
LE: loop exit
PB: predicated region body
PF: predicated region fallthrough
CT: control target
= control target key end

     0   :  { %s7949_s0 = inlined_call_operand.hbm [shape: f32[2,16,64], index: 0, kind: input, shape index: {}]   ;;  %s7950_s1 = inlined_call_operand.hbm [shape: bf16[64,64], index: 1, kind: input, shape index: {}]   ;;  %s7951_s2 = inlined_call_operand.hbm [shape: f32[1,64], index: 2, kind: input, shape index: {}]   ;;  %s7952_s3 = inlined_call_operand.hbm [shape: f32[1,64], index: 3, kind: input, shape index: {}]   ;;  %s7953_s4 = inlined_call_operand.hbm [shape: f32[1,64], index: 4, kind: input, shape index: {}]   ;;  %s7954_s5 = inlined_call_operand.hbm [shape: bf16[64,64], index: 5, kind: input, shape index: {}]   ;;  %s7955_s6 = inlined_call_operand.hbm [shape: bf16[64,64], index: 6, kind: input, shape index: {}]   ;;  %s7956_s7 = inlined_call_operand.hbm [shape: bf16[64,64], index: 7, kind: input, shape index: {}]   ;;  %s7957_s8 = inlined_call_operand.hbm [shape: bf16[64,64], index: 8, kind: input, shape index: {}]   ;;  %s7958_s9 = inlined_call_operand.hbm [shape: f32[1,64], index: 9, kind: input, shape index: {}]   ;;  %s7959_s10 = inlined_call_operand.hbm [shape: bf16[64,64], index: 10, kind: input, shape index: {}]   ;;  %s7960_s11 = inlined_call_operand.hbm [shape: f32[1,64], index: 11, kind: input, shape index: {}]   ;;  %s7961_s12 = inlined_call_operand.hbm [shape: f32[1,64], index: 12, kind: input, shape index: {}]   ;;  %s7962_s13 = inlined_call_operand.hbm [shape: f32[1,64], index: 13, kind: input, shape index: {}]   ;;  %s7963_s14 = inlined_call_operand.hbm [shape: f32[1,64], index: 14, kind: input, shape index: {}]   ;;  %s7964_s15 = inlined_call_operand.hbm [shape: f32[1,64], index: 15, kind: input, shape index: {}]   ;;  %s7965_s16 = inlined_call_operand.hbm [shape: bf16[64,256], index: 16, kind: input, shape index: {}]   ;;  %s7966_s17 = inlined_call_operand.hbm [shape: f32[1,256], index: 17, kind: input, shape index: {}]   ;;  %s7967_s18 = inlined_call_operand.hbm [shape: bf16[256,64], index: 18, kind: input, shape index: {}]   ;;  %s7968_s19 = inlined_call_operand.hbm [shape: f32[1,64], index: 19, kind: input, shape index: {}]   ;;  %s7969_s20 = inlined_call_operand.hbm [shape: bf16[64,256], index: 20, kind: input, shape index: {}]   ;;  %s7970_s21 = inlined_call_operand.hbm [shape: f32[1,256], index: 21, kind: input, shape index: {}]   ;;  %s7971_s22 = inlined_call_operand.hbm [shape: bf16[256,64], index: 22, kind: input, shape index: {}]   ;;  %s7972_s23 = inlined_call_operand.hbm [shape: f32[1,64], index: 23, kind: input, shape index: {}]   ;;  %s7973_s24 = inlined_call_operand.hbm [shape: f32[2,16,64], index: 24, kind: output, shape index: {0}]   ;;  %s7974_s25 = inlined_call_operand.hbm [shape: f32[2,16,64], index: 25, kind: output, shape index: {1}]   ;;  %s7975_s26 = inlined_call_operand.hbm [shape: f32[2,16,128], index: 26, kind: output, shape index: {2}]  }
   0x1   :  { %7990 = sst [smem:[#allocation59_spill]] %s7949_s0 }
   0x2   :  { %7991 = sst [smem:[#allocation60_spill]] %s7950_s1 }
   0x3   :  { %7992 = sst [smem:[#allocation61_spill]] %s7951_s2 }
   0x4   :  { %7993 = sst [smem:[#allocation62_spill]] %s7952_s3 }
   0x5   :  { %7994 = sst [smem:[#allocation63_spill]] %s7953_s4 }
   0x6   :  { %7995 = sst [smem:[#allocation64_spill]] %s7954_s5 }
   0x7   :  { %7996 = sst [smem:[#allocation65_spill]] %s7955_s6 }
   0x8   :  { %7997 = sst [smem:[#allocation66_spill]] %s7956_s7 }
   0x9   :  { %7998 = sst [smem:[#allocation67_spill]] %s7957_s8 }
   0xa   :  { %7999 = sst [smem:[#allocation68_spill]] %s7958_s9 }
   0xb   :  { %8000 = sst [smem:[#allocation69_spill]] %s7959_s10 }
   0xc   :  { %8001 = sst [smem:[#allocation70_spill]] %s7973_s24 }
   0xd   :  { %8002 = sst [smem:[#allocation71_spill]] %s7974_s25 }
   0xe   :  { %8003 = sst [smem:[#allocation72_spill]] %s7975_s26 }
   0xf   :  { %32 = vsyncpa [#allocation3], 0 }
  0x10   :  { %33 = vsyncpa [#allocation6], 0 }
  0x11   :  { %34 = vsyncpa [#allocation9], 0 }
  0x12   :  { %35 = vsyncpa [#allocation12], 0 }
  0x13   :  { %36 = vsyncpa [#allocation15], 0 }
  0x14   :  { %37 = vsyncpa [#allocation18], 0 }
  0x15   :  { %38 = vsyncpa [#allocation21], 0 }
  0x16   :  { %39 = vsyncpa [#allocation24], 0 }
  0x17   :  { %40 = vsyncpa [#allocation27], 0 }
  0x18   :  { %41 = vsyncpa [#allocation30], 0 }
  0x19   :  { %42 = vsyncpa [#allocation33], 0 }
  0x1a   :  { %43 = vsyncpa [#allocation36], 0 }
  0x1b   :  { %44 = vsyncpa [#allocation39], 0 }
  0x1c   :  { %45 = vsyncpa [#allocation4], 0 }
  0x1d   :  { %46 = vsyncpa [#allocation42], 0  ;;  %s6625_s27 = smov [#allocation5]   ;;  %s8004_s8 = sld [smem:[#allocation60_spill]] }
  0x1e   :  { %s64_s3 = sshll.u32 %s6625_s27, 4  ;;  %s65_s3 = int_to_ptr.vmem [resolvable:$true] %s64_s3 }
  0x23   :  { %s6001_s4 = scalar_lea.hbm %s8004_s8, 512 }
  0x24   :  { %p6002_p0 = scmp.ne.s32.totalorder %s8004_s8, %s6001_s4  ;;  %p6005_p1 = scmp.lt.u32.totalorder %s6001_s4, %s8004_s8 }
  0x26   :  { %p6007_p2 = pnand %p6005_p1, %p6002_p0 }
  0x28   :  { %6010 = shalt.err (!%p6007_p2)
}
  0x29   :  { %s6011_s2 = scalar_lea.vmem %s65_s3, 512  ;;  %p6016_p4 = scmp.lt.s32.totalorder %s65_s3, %s65_s3 }
  0x2a   :  { %p6012_p3 = scmp.ne.s32.totalorder %s65_s3, %s6011_s2  ;;  %p6017_p5 = scmp.lt.s32.totalorder %s6011_s2, %s6011_s2 }
  0x2c   :  { %p6018_p6 = por %p6017_p5, %p6016_p4 }
  0x2e   :  { %p6019_p7 = pnand %p6018_p6, %p6012_p3 }
  0x30   :  { %6022 = shalt.err (!%p6019_p7)
}
  0x31   :  { %s6626_s5 = smov 64   ;;  %s6627_s10 = smov 4  }
  0x32   :  { %70 = dma.hbm_to_vmem [thread:$0]  %s8004_s8, 512, %s65_s3, [#allocation6], %s6626_s5, %s6626_s5, %s6627_s10  }
  0x33   :  { %s6628_s27 = smov [#allocation8]   ;;  %s6629_s28 = smov [#allocation11]  }
  0x34   :  { %s87_s7 = sshll.u32 %s6628_s27, 4  ;;  %s106_s4 = sshll.u32 %s6629_s28, 4  ;;  %s88_s7 = int_to_ptr.vmem [resolvable:$true] %s87_s7  ;;  %s107_s4 = int_to_ptr.vmem [resolvable:$true] %s106_s4 }
  0x35   :  { %s8005_s9 = sld [smem:[#allocation62_spill]] }
  0x3b   :  { %s6023_s30 = scalar_lea.hbm %s8005_s9, 16 }
  0x3c   :  { %p6024_p8 = scmp.ne.s32.totalorder %s8005_s9, %s6023_s30  ;;  %p6027_p9 = scmp.lt.u32.totalorder %s6023_s30, %s8005_s9 }
  0x3e   :  { %p6029_p10 = pnand %p6027_p9, %p6024_p8 }
  0x40   :  { %6032 = shalt.err (!%p6029_p10)
}
  0x41   :  { %s6033_s3 = scalar_lea.vmem %s88_s7, 16  ;;  %s6037_s8 = scalar_lea.vmem %s88_s7, 32 }
  0x42   :  { %p6034_p11 = scmp.ne.s32.totalorder %s88_s7, %s6033_s3  ;;  %p6038_p12 = scmp.lt.s32.totalorder %s88_s7, %s88_s7 }
  0x43   :  { %p6039_p13 = scmp.lt.s32.totalorder %s6037_s8, %s6033_s3 }
  0x45   :  { %p6040_p0 = por %p6039_p13, %p6038_p12 }
  0x47   :  { %p6041_p1 = pnand %p6040_p0, %p6034_p11 }
  0x49   :  { %6044 = shalt.err (!%p6041_p1)
}
  0x4a   :  { %90 = dma.hbm_to_vmem [thread:$0]  %s8005_s9, 16, %s88_s7, [#allocation9]  }
  0x4b   :  { %s8006_s28 = sld [smem:[#allocation64_spill]] }
  0x51   :  { %s6045_s24 = scalar_lea.hbm %s8006_s28, 512 }
  0x52   :  { %p6046_p2 = scmp.ne.s32.totalorder %s8006_s28, %s6045_s24  ;;  %p6049_p3 = scmp.lt.u32.totalorder %s6045_s24, %s8006_s28 }
  0x54   :  { %p6051_p4 = pnand %p6049_p3, %p6046_p2 }
  0x56   :  { %6054 = shalt.err (!%p6051_p4)
}
  0x57   :  { %s6055_s2 = scalar_lea.vmem %s107_s4, 512  ;;  %p6060_p6 = scmp.lt.s32.totalorder %s107_s4, %s107_s4 }
  0x58   :  { %p6056_p5 = scmp.ne.s32.totalorder %s107_s4, %s6055_s2  ;;  %p6061_p7 = scmp.lt.s32.totalorder %s6055_s2, %s6055_s2 }
  0x5a   :  { %p6062_p8 = por %p6061_p7, %p6060_p6 }
  0x5c   :  { %p6063_p9 = pnand %p6062_p8, %p6056_p5 }
  0x5e   :  { %6066 = shalt.err (!%p6063_p9)
}
  0x5f   :  { %112 = dma.hbm_to_vmem [thread:$0]  %s8006_s28, 512, %s107_s4, [#allocation12], %s6626_s5, %s6626_s5, %s6627_s10  }
  0x60   :  { %s6630_s3 = smov [#allocation14]   ;;  %s6631_s6 = smov [#allocation17]  }
  0x61   :  { %s130_s8 = sshll.u32 %s6630_s3, 4  ;;  %s155_s1 = sshll.u32 %s6631_s6, 4  ;;  %s131_s8 = int_to_ptr.vmem [resolvable:$true] %s130_s8  ;;  %s156_s1 = int_to_ptr.vmem [resolvable:$true] %s155_s1 }
  0x62   :  { %s8007_s24 = sld [smem:[#allocation66_spill]] }
  0x68   :  { %s6067_s25 = scalar_lea.hbm %s8007_s24, 512 }
  0x69   :  { %p6068_p10 = scmp.ne.s32.totalorder %s8007_s24, %s6067_s25  ;;  %p6071_p11 = scmp.lt.u32.totalorder %s6067_s25, %s8007_s24 }
  0x6b   :  { %p6073_p12 = pnand %p6071_p11, %p6068_p10 }
  0x6d   :  { %6076 = shalt.err (!%p6073_p12)
}
  0x6e   :  { %s6077_s4 = scalar_lea.vmem %s131_s8, 512  ;;  %p6082_p0 = scmp.lt.s32.totalorder %s131_s8, %s131_s8 }
  0x6f   :  { %p6078_p13 = scmp.ne.s32.totalorder %s131_s8, %s6077_s4  ;;  %p6083_p1 = scmp.lt.s32.totalorder %s6077_s4, %s6077_s4 }
  0x71   :  { %p6084_p2 = por %p6083_p1, %p6082_p0 }
  0x73   :  { %p6085_p3 = pnand %p6084_p2, %p6078_p13 }
  0x75   :  { %6088 = shalt.err (!%p6085_p3)
}
  0x76   :  { %136 = dma.hbm_to_vmem [thread:$0]  %s8007_s24, 512, %s131_s8, [#allocation15], %s6626_s5, %s6626_s5, %s6627_s10  }
  0x77   :  { %s8008_s6 = sld [smem:[#allocation68_spill]] }
  0x7d   :  { %s6089_s26 = scalar_lea.hbm %s8008_s6, 16 }
  0x7e   :  { %p6090_p4 = scmp.ne.s32.totalorder %s8008_s6, %s6089_s26  ;;  %p6093_p5 = scmp.lt.u32.totalorder %s6089_s26, %s8008_s6 }
  0x80   :  { %p6095_p6 = pnand %p6093_p5, %p6090_p4 }
  0x82   :  { %6098 = shalt.err (!%p6095_p6)
}
  0x83   :  { %s6099_s30 = scalar_lea.vmem %s156_s1, 16  ;;  %s6103_s2 = scalar_lea.vmem %s156_s1, 32 }
  0x84   :  { %p6100_p7 = scmp.ne.s32.totalorder %s156_s1, %s6099_s30  ;;  %p6104_p8 = scmp.lt.s32.totalorder %s156_s1, %s156_s1 }
  0x85   :  { %p6105_p9 = scmp.lt.s32.totalorder %s6103_s2, %s6099_s30 }
  0x87   :  { %p6106_p10 = por %p6105_p9, %p6104_p8 }
  0x89   :  { %p6107_p11 = pnand %p6106_p10, %p6100_p7 }
  0x8b   :  { %6110 = shalt.err (!%p6107_p11)
}
  0x8c   :  { %158 = dma.hbm_to_vmem [thread:$0]  %s8008_s6, 16, %s156_s1, [#allocation18]  }
  0x8d   :  { %s6632_s4 = smov [#allocation20]   ;;  %s6633_s7 = smov [#allocation23]  }
  0x8e   :  { %s177_s28 = sshll.u32 %s6632_s4, 4  ;;  %s197_s9 = sshll.u32 %s6633_s7, 4  ;;  %s178_s28 = int_to_ptr.vmem [resolvable:$true] %s177_s28  ;;  %s198_s9 = int_to_ptr.vmem [resolvable:$true] %s197_s9 }
  0x8f   :  { %s6111_s27 = scalar_lea.hbm %s7960_s11, 16 }
  0x90   :  { %p6112_p12 = scmp.ne.s32.totalorder %s7960_s11, %s6111_s27  ;;  %p6115_p13 = scmp.lt.u32.totalorder %s6111_s27, %s7960_s11 }
  0x92   :  { %p6117_p0 = pnand %p6115_p13, %p6112_p12 }
  0x94   :  { %6120 = shalt.err (!%p6117_p0)
}
  0x95   :  { %s6121_s1 = scalar_lea.vmem %s178_s28, 16  ;;  %s6125_s6 = scalar_lea.vmem %s178_s28, 32 }
  0x96   :  { %p6122_p1 = scmp.ne.s32.totalorder %s178_s28, %s6121_s1  ;;  %p6126_p2 = scmp.lt.s32.totalorder %s178_s28, %s178_s28 }
  0x97   :  { %p6127_p3 = scmp.lt.s32.totalorder %s6125_s6, %s6121_s1 }
  0x99   :  { %p6128_p4 = por %p6127_p3, %p6126_p2 }
  0x9b   :  { %p6129_p5 = pnand %p6128_p4, %p6122_p1 }
  0x9d   :  { %6132 = shalt.err (!%p6129_p5)
}
  0x9e   :  { %180 = dma.hbm_to_vmem [thread:$0]  %s7960_s11, 16, %s178_s28, [#allocation21]  }
  0x9f   :  { %s6133_s7 = scalar_lea.hbm %s7962_s13, 16 }
  0xa0   :  { %p6134_p6 = scmp.ne.s32.totalorder %s7962_s13, %s6133_s7  ;;  %p6137_p7 = scmp.lt.u32.totalorder %s6133_s7, %s7962_s13 }
  0xa2   :  { %p6139_p8 = pnand %p6137_p7, %p6134_p6 }
  0xa4   :  { %6142 = shalt.err (!%p6139_p8)
}
  0xa5   :  { %s6143_s29 = scalar_lea.vmem %s198_s9, 16  ;;  %s6147_s0 = scalar_lea.vmem %s198_s9, 32 }
  0xa6   :  { %p6144_p9 = scmp.ne.s32.totalorder %s198_s9, %s6143_s29  ;;  %p6148_p10 = scmp.lt.s32.totalorder %s198_s9, %s198_s9 }
  0xa7   :  { %p6149_p11 = scmp.lt.s32.totalorder %s6147_s0, %s6143_s29 }
  0xa9   :  { %p6150_p12 = por %p6149_p11, %p6148_p10 }
  0xab   :  { %p6151_p13 = pnand %p6150_p12, %p6144_p9 }
  0xad   :  { %6154 = shalt.err (!%p6151_p13)
}
  0xae   :  { %200 = dma.hbm_to_vmem [thread:$0]  %s7962_s13, 16, %s198_s9, [#allocation24]  }
  0xaf   :  { %s6634_s30 = smov [#allocation26]   ;;  %s6635_s6 = smov [#allocation29]  }
  0xb0   :  { %s217_s1 = sshll.u32 %s6634_s30, 4  ;;  %s239_s2 = sshll.u32 %s6635_s6, 4  ;;  %s218_s1 = int_to_ptr.vmem [resolvable:$true] %s217_s1  ;;  %s240_s2 = int_to_ptr.vmem [resolvable:$true] %s239_s2 }
  0xb1   :  { %s6155_s4 = scalar_lea.hbm %s7964_s15, 16 }
  0xb2   :  { %p6156_p0 = scmp.ne.s32.totalorder %s7964_s15, %s6155_s4  ;;  %p6159_p1 = scmp.lt.u32.totalorder %s6155_s4, %s7964_s15 }
  0xb4   :  { %p6161_p2 = pnand %p6159_p1, %p6156_p0 }
  0xb6   :  { %6164 = shalt.err (!%p6161_p2)
}
  0xb7   :  { %s6165_s13 = scalar_lea.vmem %s218_s1, 16  ;;  %s6169_s9 = scalar_lea.vmem %s218_s1, 32 }
  0xb8   :  { %p6166_p3 = scmp.ne.s32.totalorder %s218_s1, %s6165_s13  ;;  %p6170_p4 = scmp.lt.s32.totalorder %s218_s1, %s218_s1 }
  0xb9   :  { %p6171_p5 = scmp.lt.s32.totalorder %s6169_s9, %s6165_s13 }
  0xbb   :  { %p6172_p6 = por %p6171_p5, %p6170_p4 }
  0xbd   :  { %p6173_p7 = pnand %p6172_p6, %p6166_p3 }
  0xbf   :  { %6176 = shalt.err (!%p6173_p7)
}
  0xc0   :  { %220 = dma.hbm_to_vmem [thread:$0]  %s7964_s15, 16, %s218_s1, [#allocation27]  }
  0xc1   :  { %s6177_s28 = scalar_lea.hbm %s7966_s17, 32 }
  0xc2   :  { %p6178_p8 = scmp.ne.s32.totalorder %s7966_s17, %s6177_s28  ;;  %p6181_p9 = scmp.lt.u32.totalorder %s6177_s28, %s7966_s17 }
  0xc4   :  { %p6183_p10 = pnand %p6181_p9, %p6178_p8 }
  0xc6   :  { %6186 = shalt.err (!%p6183_p10)
}
  0xc7   :  { %s6187_s4 = scalar_lea.vmem %s240_s2, 32  ;;  %p6192_p12 = scmp.lt.s32.totalorder %s240_s2, %s240_s2 }
  0xc8   :  { %p6188_p11 = scmp.ne.s32.totalorder %s240_s2, %s6187_s4  ;;  %p6193_p13 = scmp.lt.s32.totalorder %s6187_s4, %s6187_s4 }
  0xca   :  { %p6194_p0 = por %p6193_p13, %p6192_p12 }
  0xcc   :  { %p6195_p1 = pnand %p6194_p0, %p6188_p11 }
  0xce   :  { %6198 = shalt.err (!%p6195_p1)
}
  0xcf   :  { %242 = dma.hbm_to_vmem [thread:$0]  %s7966_s17, 32, %s240_s2, [#allocation30]  }
  0xd0   :  { %s6636_s7 = smov [#allocation32]   ;;  %s6637_s26 = smov [#allocation35]  }
  0xd1   :  { %s261_s3 = sshll.u32 %s6636_s7, 4  ;;  %s283_s27 = sshll.u32 %s6637_s26, 4  ;;  %s262_s3 = int_to_ptr.vmem [resolvable:$true] %s261_s3  ;;  %s284_s27 = int_to_ptr.vmem [resolvable:$true] %s283_s27 }
  0xd2   :  { %s6199_s25 = scalar_lea.hbm %s7968_s19, 16 }
  0xd3   :  { %p6200_p2 = scmp.ne.s32.totalorder %s7968_s19, %s6199_s25  ;;  %p6203_p3 = scmp.lt.u32.totalorder %s6199_s25, %s7968_s19 }
  0xd5   :  { %p6205_p4 = pnand %p6203_p3, %p6200_p2 }
  0xd7   :  { %6208 = shalt.err (!%p6205_p4)
}
  0xd8   :  { %s6209_s17 = scalar_lea.vmem %s262_s3, 16  ;;  %s6213_s2 = scalar_lea.vmem %s262_s3, 32 }
  0xd9   :  { %p6210_p5 = scmp.ne.s32.totalorder %s262_s3, %s6209_s17  ;;  %p6214_p6 = scmp.lt.s32.totalorder %s262_s3, %s262_s3 }
  0xda   :  { %p6215_p7 = scmp.lt.s32.totalorder %s6213_s2, %s6209_s17 }
  0xdc   :  { %p6216_p8 = por %p6215_p7, %p6214_p6 }
  0xde   :  { %p6217_p9 = pnand %p6216_p8, %p6210_p5 }
  0xe0   :  { %6220 = shalt.err (!%p6217_p9)
}
  0xe1   :  { %264 = dma.hbm_to_vmem [thread:$0]  %s7968_s19, 16, %s262_s3, [#allocation33]  }
  0xe2   :  { %s6221_s4 = scalar_lea.hbm %s7970_s21, 32 }
  0xe3   :  { %p6222_p10 = scmp.ne.s32.totalorder %s7970_s21, %s6221_s4  ;;  %p6225_p11 = scmp.lt.u32.totalorder %s6221_s4, %s7970_s21 }
  0xe5   :  { %p6227_p12 = pnand %p6225_p11, %p6222_p10 }
  0xe7   :  { %6230 = shalt.err (!%p6227_p12)
}
  0xe8   :  { %s6231_s13 = scalar_lea.vmem %s284_s27, 32  ;;  %p6236_p0 = scmp.lt.s32.totalorder %s284_s27, %s284_s27 }
  0xe9   :  { %p6232_p13 = scmp.ne.s32.totalorder %s284_s27, %s6231_s13  ;;  %p6237_p1 = scmp.lt.s32.totalorder %s6231_s13, %s6231_s13 }
  0xeb   :  { %p6238_p2 = por %p6237_p1, %p6236_p0 }
  0xed   :  { %p6239_p3 = pnand %p6238_p2, %p6232_p13 }
  0xef   :  { %6242 = shalt.err (!%p6239_p3)
}
  0xf0   :  { %286 = dma.hbm_to_vmem [thread:$0]  %s7970_s21, 32, %s284_s27, [#allocation36]  }
  0xf1   :  { %s6638_s9 = smov [#allocation2]   ;;  %s8009_s11 = sld [smem:[#allocation59_spill]] }
  0xf2   :  { %s52_s25 = sshll.u32 %s6638_s9, 4  ;;  %s53_s25 = int_to_ptr.vmem [resolvable:$true] %s52_s25 }
  0xf7   :  { %s6243_s28 = scalar_lea.hbm %s8009_s11, 512 }
  0xf8   :  { %p6244_p4 = scmp.ne.s32.totalorder %s8009_s11, %s6243_s28  ;;  %p6247_p5 = scmp.lt.u32.totalorder %s6243_s28, %s8009_s11 }
  0xfa   :  { %p6249_p6 = pnand %p6247_p5, %p6244_p4 }
  0xfc   :  { %6252 = shalt.err (!%p6249_p6)
}
  0xfd   :  { %s6253_s8 = scalar_lea.vmem %s53_s25, 512  ;;  %p6258_p8 = scmp.lt.s32.totalorder %s53_s25, %s53_s25 }
  0xfe   :  { %p6254_p7 = scmp.ne.s32.totalorder %s53_s25, %s6253_s8  ;;  %p6259_p9 = scmp.lt.s32.totalorder %s6253_s8, %s6253_s8 }
 0x100   :  { %p6260_p10 = por %p6259_p9, %p6258_p8 }
 0x102   :  { %p6261_p11 = pnand %p6260_p10, %p6254_p7 }
 0x104   :  { %6264 = shalt.err (!%p6261_p11)
}
 0x105   :  { %s6639_s21 = smov 128   ;;  %s6640_s27 = smov 8  }
 0x106   :  { %58 = dma.hbm_to_vmem [thread:$0]  %s8009_s11, 512, %s53_s25, [#allocation3], %s6639_s21, %s6639_s21, %s6640_s27  }
 0x107   :  { %s6641_s15 = smov [#allocation7]   ;;  %s6642_s7 = smov [#allocation10]  }
 0x108   :  { %s77_s1 = sshll.u32 %s6641_s15, 4  ;;  %s97_s26 = sshll.u32 %s6642_s7, 4  ;;  %s78_s1 = int_to_ptr.vmem [resolvable:$true] %s77_s1  ;;  %s98_s26 = int_to_ptr.vmem [resolvable:$true] %s97_s26 }
 0x109   :  { %s8010_s3 = sld [smem:[#allocation61_spill]] }
 0x10f   :  { %s6265_s9 = scalar_lea.hbm %s8010_s3, 16 }
 0x110   :  { %p6266_p12 = scmp.ne.s32.totalorder %s8010_s3, %s6265_s9  ;;  %p6269_p13 = scmp.lt.u32.totalorder %s6265_s9, %s8010_s3 }
 0x112   :  { %p6271_p0 = pnand %p6269_p13, %p6266_p12 }
 0x114   :  { %6274 = shalt.err (!%p6271_p0)
}
 0x115   :  { %s6275_s25 = scalar_lea.vmem %s78_s1, 16  ;;  %s6279_s11 = scalar_lea.vmem %s78_s1, 32 }
 0x116   :  { %p6276_p1 = scmp.ne.s32.totalorder %s78_s1, %s6275_s25  ;;  %p6280_p2 = scmp.lt.s32.totalorder %s78_s1, %s78_s1 }
 0x117   :  { %p6281_p3 = scmp.lt.s32.totalorder %s6279_s11, %s6275_s25 }
 0x119   :  { %p6282_p4 = por %p6281_p3, %p6280_p2 }
 0x11b   :  { %p6283_p5 = pnand %p6282_p4, %p6276_p1 }
 0x11d   :  { %6286 = shalt.err (!%p6283_p5)
}
 0x11e   :  { %80 = dma.hbm_to_vmem [thread:$0]  %s8010_s3, 16, %s78_s1, [#allocation6]  }
 0x11f   :  { %s8011_s24 = sld [smem:[#allocation63_spill]] }
 0x125   :  { %s6287_s4 = scalar_lea.hbm %s8011_s24, 16 }
 0x126   :  { %p6288_p6 = scmp.ne.s32.totalorder %s8011_s24, %s6287_s4  ;;  %p6291_p7 = scmp.lt.u32.totalorder %s6287_s4, %s8011_s24 }
 0x128   :  { %p6293_p8 = pnand %p6291_p7, %p6288_p6 }
 0x12a   :  { %6296 = shalt.err (!%p6293_p8)
}
 0x12b   :  { %s6297_s9 = scalar_lea.vmem %s98_s26, 16  ;;  %s6301_s29 = scalar_lea.vmem %s98_s26, 32 }
 0x12c   :  { %p6298_p9 = scmp.ne.s32.totalorder %s98_s26, %s6297_s9  ;;  %p6302_p10 = scmp.lt.s32.totalorder %s98_s26, %s98_s26 }
 0x12d   :  { %p6303_p11 = scmp.lt.s32.totalorder %s6301_s29, %s6297_s9 }
 0x12f   :  { %p6304_p12 = por %p6303_p11, %p6302_p10 }
 0x131   :  { %p6305_p13 = pnand %p6304_p12, %p6298_p9 }
 0x133   :  { %6308 = shalt.err (!%p6305_p13)
}
 0x134   :  { %100 = dma.hbm_to_vmem [thread:$0]  %s8011_s24, 16, %s98_s26, [#allocation9]  }
 0x135   :  { %s6643_s0 = smov [#allocation13]   ;;  %s6644_s17 = smov [#allocation16]  }
 0x136   :  { %s118_s28 = sshll.u32 %s6643_s0, 4  ;;  %s142_s25 = sshll.u32 %s6644_s17, 4  ;;  %s119_s28 = int_to_ptr.vmem [resolvable:$true] %s118_s28  ;;  %s6975_s25 = int_to_ptr.vmem [resolvable:$true] %s142_s25 }
 0x137   :  { %s8012_s30 = sld [smem:[#allocation65_spill]] }
 0x13d   :  { %s6309_s6 = scalar_lea.hbm %s8012_s30, 512 }
 0x13e   :  { %p6310_p0 = scmp.ne.s32.totalorder %s8012_s30, %s6309_s6  ;;  %p6313_p1 = scmp.lt.u32.totalorder %s6309_s6, %s8012_s30 }
 0x140   :  { %p6315_p2 = pnand %p6313_p1, %p6310_p0 }
 0x142   :  { %6318 = shalt.err (!%p6315_p2)
}
 0x143   :  { %s6319_s26 = scalar_lea.vmem %s119_s28, 512  ;;  %p6324_p4 = scmp.lt.s32.totalorder %s119_s28, %s119_s28 }
 0x144   :  { %p6320_p3 = scmp.ne.s32.totalorder %s119_s28, %s6319_s26  ;;  %p6325_p5 = scmp.lt.s32.totalorder %s6319_s26, %s6319_s26 }
 0x146   :  { %p6326_p6 = por %p6325_p5, %p6324_p4 }
 0x148   :  { %p6327_p7 = pnand %p6326_p6, %p6320_p3 }
 0x14a   :  { %6330 = shalt.err (!%p6327_p7)
}
 0x14b   :  { %124 = dma.hbm_to_vmem [thread:$0]  %s8012_s30, 512, %s119_s28, [#allocation12], %s6626_s5, %s6626_s5, %s6627_s10  }
 0x14c   :  { %s8013_s29 = sld [smem:[#allocation67_spill]] }
 0x152   :  { %s6331_s1 = scalar_lea.hbm %s8013_s29, 512 }
 0x153   :  { %p6332_p8 = scmp.ne.s32.totalorder %s8013_s29, %s6331_s1  ;;  %p6335_p9 = scmp.lt.u32.totalorder %s6331_s1, %s8013_s29 }
 0x155   :  { %p6337_p10 = pnand %p6335_p9, %p6332_p8 }
 0x157   :  { %6340 = shalt.err (!%p6337_p10)
}
 0x158   :  { %s6341_s2 = scalar_lea.vmem %s6975_s25, 512  ;;  %p6346_p12 = scmp.lt.s32.totalorder %s6975_s25, %s6975_s25 }
 0x159   :  { %p6342_p11 = scmp.ne.s32.totalorder %s6975_s25, %s6341_s2  ;;  %p6347_p13 = scmp.lt.s32.totalorder %s6341_s2, %s6341_s2 }
 0x15b   :  { %p6348_p0 = por %p6347_p13, %p6346_p12 }
 0x15d   :  { %p6349_p1 = pnand %p6348_p0, %p6342_p11 }
 0x15f   :  { %6352 = shalt.err (!%p6349_p1)
}
 0x160   :  { %148 = dma.hbm_to_vmem [thread:$0]  %s8013_s29, 512, %s6975_s25, [#allocation15], %s6626_s5, %s6626_s5, %s6627_s10  }
 0x161   :  { %s6645_s6 = smov [#allocation19]   ;;  %s6646_s4 = smov [#allocation22]  }
 0x162   :  { %s164_s8 = sshll.u32 %s6645_s6, 4  ;;  %s187_s15 = sshll.u32 %s6646_s4, 4  ;;  %s165_s8 = int_to_ptr.vmem [resolvable:$true] %s164_s8  ;;  %s188_s15 = int_to_ptr.vmem [resolvable:$true] %s187_s15 }
 0x163   :  { %s8014_s24 = sld [smem:[#allocation69_spill]] }
 0x169   :  { %s6353_s13 = scalar_lea.hbm %s8014_s24, 512 }
 0x16a   :  { %p6354_p2 = scmp.ne.s32.totalorder %s8014_s24, %s6353_s13  ;;  %p6357_p3 = scmp.lt.u32.totalorder %s6353_s13, %s8014_s24 }
 0x16c   :  { %p6359_p4 = pnand %p6357_p3, %p6354_p2 }
 0x16e   :  { %6362 = shalt.err (!%p6359_p4)
}
 0x16f   :  { %s6363_s25 = scalar_lea.vmem %s165_s8, 512  ;;  %p6368_p6 = scmp.lt.s32.totalorder %s165_s8, %s165_s8 }
 0x170   :  { %p6364_p5 = scmp.ne.s32.totalorder %s165_s8, %s6363_s25  ;;  %p6369_p7 = scmp.lt.s32.totalorder %s6363_s25, %s6363_s25 }
 0x172   :  { %p6370_p8 = por %p6369_p7, %p6368_p6 }
 0x174   :  { %p6371_p9 = pnand %p6370_p8, %p6364_p5 }
 0x176   :  { %6374 = shalt.err (!%p6371_p9)
}
 0x177   :  { %170 = dma.hbm_to_vmem [thread:$0]  %s8014_s24, 512, %s165_s8, [#allocation18], %s6626_s5, %s6626_s5, %s6627_s10  }
 0x178   :  { %s6375_s2 = scalar_lea.hbm %s7961_s12, 16 }
 0x179   :  { %p6376_p10 = scmp.ne.s32.totalorder %s7961_s12, %s6375_s2  ;;  %p6379_p11 = scmp.lt.u32.totalorder %s6375_s2, %s7961_s12 }
 0x17b   :  { %p6381_p12 = pnand %p6379_p11, %p6376_p10 }
 0x17d   :  { %6384 = shalt.err (!%p6381_p12)
}
 0x17e   :  { %s6385_s7 = scalar_lea.vmem %s188_s15, 16  ;;  %s6389_s26 = scalar_lea.vmem %s188_s15, 32 }
 0x17f   :  { %p6386_p13 = scmp.ne.s32.totalorder %s188_s15, %s6385_s7  ;;  %p6390_p0 = scmp.lt.s32.totalorder %s188_s15, %s188_s15 }
 0x180   :  { %p6391_p1 = scmp.lt.s32.totalorder %s6389_s26, %s6385_s7 }
 0x182   :  { %p6392_p2 = por %p6391_p1, %p6390_p0 }
 0x184   :  { %p6393_p3 = pnand %p6392_p2, %p6386_p13 }
 0x186   :  { %6396 = shalt.err (!%p6393_p3)
}
 0x187   :  { %190 = dma.hbm_to_vmem [thread:$0]  %s7961_s12, 16, %s188_s15, [#allocation21]  }
 0x188   :  { %s6647_s13 = smov [#allocation25]   ;;  %s6648_s9 = smov [#allocation28]  }
 0x189   :  { %s207_s19 = sshll.u32 %s6647_s13, 4  ;;  %s226_s1 = sshll.u32 %s6648_s9, 4  ;;  %s208_s19 = int_to_ptr.vmem [resolvable:$true] %s207_s19  ;;  %s7039_s1 = int_to_ptr.vmem [resolvable:$true] %s226_s1 }
 0x18a   :  { %s6397_s29 = scalar_lea.hbm %s7963_s14, 16 }
 0x18b   :  { %p6398_p4 = scmp.ne.s32.totalorder %s7963_s14, %s6397_s29  ;;  %p6401_p5 = scmp.lt.u32.totalorder %s6397_s29, %s7963_s14 }
 0x18d   :  { %p6403_p6 = pnand %p6401_p5, %p6398_p4 }
 0x18f   :  { %6406 = shalt.err (!%p6403_p6)
}
 0x190   :  { %s6407_s12 = scalar_lea.vmem %s208_s19, 16  ;;  %s6411_s15 = scalar_lea.vmem %s208_s19, 32 }
 0x191   :  { %p6408_p7 = scmp.ne.s32.totalorder %s208_s19, %s6407_s12  ;;  %p6412_p8 = scmp.lt.s32.totalorder %s208_s19, %s208_s19 }
 0x192   :  { %p6413_p9 = scmp.lt.s32.totalorder %s6411_s15, %s6407_s12 }
 0x194   :  { %p6414_p10 = por %p6413_p9, %p6412_p8 }
 0x196   :  { %p6415_p11 = pnand %p6414_p10, %p6408_p7 }
 0x198   :  { %6418 = shalt.err (!%p6415_p11)
}
 0x199   :  { %210 = dma.hbm_to_vmem [thread:$0]  %s7963_s14, 16, %s208_s19, [#allocation24]  }
 0x19a   :  { %s6419_s7 = scalar_lea.hbm %s7965_s16, 1024 }
 0x19b   :  { %p6420_p12 = scmp.ne.s32.totalorder %s7965_s16, %s6419_s7  ;;  %p6423_p13 = scmp.lt.u32.totalorder %s6419_s7, %s7965_s16 }
 0x19d   :  { %p6425_p0 = pnand %p6423_p13, %p6420_p12 }
 0x19f   :  { %6428 = shalt.err (!%p6425_p0)
}
 0x1a0   :  { %s6429_s9 = scalar_lea.vmem %s7039_s1, 1024  ;;  %p6434_p2 = scmp.lt.s32.totalorder %s7039_s1, %s7039_s1 }
 0x1a1   :  { %p6430_p1 = scmp.ne.s32.totalorder %s7039_s1, %s6429_s9  ;;  %p6435_p3 = scmp.lt.s32.totalorder %s6429_s9, %s6429_s9 }
 0x1a3   :  { %p6436_p4 = por %p6435_p3, %p6434_p2 }
 0x1a5   :  { %p6437_p5 = pnand %p6436_p4, %p6430_p1 }
 0x1a7   :  { %6440 = shalt.err (!%p6437_p5)
}
 0x1a8   :  { %232 = dma.hbm_to_vmem [thread:$0]  %s7965_s16, 1024, %s7039_s1, [#allocation27], %s6639_s21, %s6639_s21, %s6640_s27  }
 0x1a9   :  { %s6649_s3 = smov [#allocation31]   ;;  %s6650_s29 = smov [#allocation34]  }
 0x1aa   :  { %s248_s25 = sshll.u32 %s6649_s3, 4  ;;  %s270_s0 = sshll.u32 %s6650_s29, 4  ;;  %s249_s25 = int_to_ptr.vmem [resolvable:$true] %s248_s25  ;;  %s7073_s0 = int_to_ptr.vmem [resolvable:$true] %s270_s0 }
 0x1ab   :  { %s6441_s2 = scalar_lea.hbm %s7967_s18, 2048 }
 0x1ac   :  { %p6442_p6 = scmp.ne.s32.totalorder %s7967_s18, %s6441_s2  ;;  %p6445_p7 = scmp.lt.u32.totalorder %s6441_s2, %s7967_s18 }
 0x1ae   :  { %p6447_p8 = pnand %p6445_p7, %p6442_p6 }
 0x1b0   :  { %6450 = shalt.err (!%p6447_p8)
}
 0x1b1   :  { %s6451_s16 = scalar_lea.vmem %s249_s25, 2048  ;;  %p6456_p10 = scmp.lt.s32.totalorder %s249_s25, %s249_s25 }
 0x1b2   :  { %p6452_p9 = scmp.ne.s32.totalorder %s249_s25, %s6451_s16  ;;  %p6457_p11 = scmp.lt.s32.totalorder %s6451_s16, %s6451_s16 }
 0x1b4   :  { %p6458_p12 = por %p6457_p11, %p6456_p10 }
 0x1b6   :  { %p6459_p13 = pnand %p6458_p12, %p6452_p9 }
 0x1b8   :  { %6462 = shalt.err (!%p6459_p13)
}
 0x1b9   :  { %254 = dma.hbm_to_vmem [thread:$0]  %s7967_s18, 2048, %s249_s25, [#allocation30], %s6626_s5, %s6626_s5, %s6627_s10  }
 0x1ba   :  { %s6463_s26 = scalar_lea.hbm %s7969_s20, 1024 }
 0x1bb   :  { %p6464_p0 = scmp.ne.s32.totalorder %s7969_s20, %s6463_s26  ;;  %p6467_p1 = scmp.lt.u32.totalorder %s6463_s26, %s7969_s20 }
 0x1bd   :  { %p6469_p2 = pnand %p6467_p1, %p6464_p0 }
 0x1bf   :  { %6472 = shalt.err (!%p6469_p2)
}
 0x1c0   :  { %s6473_s14 = scalar_lea.vmem %s7073_s0, 1024  ;;  %p6478_p4 = scmp.lt.s32.totalorder %s7073_s0, %s7073_s0 }
 0x1c1   :  { %p6474_p3 = scmp.ne.s32.totalorder %s7073_s0, %s6473_s14  ;;  %p6479_p5 = scmp.lt.s32.totalorder %s6473_s14, %s6473_s14 }
 0x1c3   :  { %p6480_p6 = por %p6479_p5, %p6478_p4 }
 0x1c5   :  { %p6481_p7 = pnand %p6480_p6, %p6474_p3 }
 0x1c7   :  { %6484 = shalt.err (!%p6481_p7)
}
 0x1c8   :  { %276 = dma.hbm_to_vmem [thread:$0]  %s7969_s20, 1024, %s7073_s0, [#allocation33], %s6639_s21, %s6639_s21, %s6640_s27  }
 0x1c9   :  { %s6651_s3 = smov [#allocation37]   ;;  %s6652_s29 = smov [#allocation38]  }
 0x1ca   :  { %s292_s25 = sshll.u32 %s6651_s3, 4  ;;  %s305_s17 = sshll.u32 %s6652_s29, 4  ;;  %s293_s25 = int_to_ptr.vmem [resolvable:$true] %s292_s25  ;;  %s306_s17 = int_to_ptr.vmem [resolvable:$true] %s305_s17 }
 0x1cb   :  { %s6485_s12 = scalar_lea.hbm %s7971_s22, 2048 }
 0x1cc   :  { %p6486_p8 = scmp.ne.s32.totalorder %s7971_s22, %s6485_s12  ;;  %p6489_p9 = scmp.lt.u32.totalorder %s6485_s12, %s7971_s22 }
 0x1ce   :  { %p6491_p10 = pnand %p6489_p9, %p6486_p8 }
 0x1d0   :  { %6494 = shalt.err (!%p6491_p10)
}
 0x1d1   :  { %s6495_s20 = scalar_lea.vmem %s293_s25, 2048  ;;  %p6500_p12 = scmp.lt.s32.totalorder %s293_s25, %s293_s25 }
 0x1d2   :  { %p6496_p11 = scmp.ne.s32.totalorder %s293_s25, %s6495_s20  ;;  %p6501_p13 = scmp.lt.s32.totalorder %s6495_s20, %s6495_s20 }
 0x1d4   :  { %p6502_p0 = por %p6501_p13, %p6500_p12 }
 0x1d6   :  { %p6503_p1 = pnand %p6502_p0, %p6496_p11 }
 0x1d8   :  { %6506 = shalt.err (!%p6503_p1)
}
 0x1d9   :  { %298 = dma.hbm_to_vmem [thread:$0]  %s7971_s22, 2048, %s293_s25, [#allocation36], %s6626_s5, %s6626_s5, %s6627_s10  }
 0x1da   :  { %s6507_s7 = scalar_lea.hbm %s7972_s23, 16 }
 0x1db   :  { %p6508_p2 = scmp.ne.s32.totalorder %s7972_s23, %s6507_s7  ;;  %p6511_p3 = scmp.lt.u32.totalorder %s6507_s7, %s7972_s23 }
 0x1dd   :  { %p6513_p4 = pnand %p6511_p3, %p6508_p2 }
 0x1df   :  { %6516 = shalt.err (!%p6513_p4)
}
 0x1e0   :  { %s6517_s9 = scalar_lea.vmem %s306_s17, 16  ;;  %s6521_s14 = scalar_lea.vmem %s306_s17, 32 }
 0x1e1   :  { %p6518_p5 = scmp.ne.s32.totalorder %s306_s17, %s6517_s9  ;;  %p6522_p6 = scmp.lt.s32.totalorder %s306_s17, %s306_s17 }
 0x1e2   :  { %p6523_p7 = scmp.lt.s32.totalorder %s6521_s14, %s6517_s9 }
 0x1e4   :  { %p6524_p8 = por %p6523_p7, %p6522_p6 }
 0x1e6   :  { %p6525_p9 = pnand %p6524_p8, %p6518_p5 }
 0x1e8   :  { %6528 = shalt.err (!%p6525_p9)
}
 0x1e9   :  { %308 = dma.hbm_to_vmem [thread:$0]  %s7972_s23, 16, %s306_s17, [#allocation39]  }
 0x1ea   :  { %6595 = dma.done.wait [#allocation3], 512  }
 0x1eb   :  { %6596 = vsyncadd [#allocation3], 4294966784 }
 0x1ec   :  { %6597 = dma.done.wait [#allocation6], 528  }
 0x1ed   :  { %6598 = vsyncadd [#allocation6], 4294966768 }
 0x1ee   :  { %6599 = dma.done.wait [#allocation9], 32  }
 0x1ef   :  { %6600 = vsyncadd [#allocation9], 4294967264 }
 0x1f0   :  { %6601 = dma.done.wait [#allocation12], 1024  }
 0x1f1   :  { %6602 = vsyncadd [#allocation12], 4294966272 }
 0x1f2   :  { %6603 = dma.done.wait [#allocation15], 1024  }
 0x1f3   :  { %6604 = vsyncadd [#allocation15], 4294966272 }
 0x1f4   :  { %6605 = dma.done.wait [#allocation18], 528  }
 0x1f5   :  { %6606 = vsyncadd [#allocation18], 4294966768 }
 0x1f6   :  { %6607 = dma.done.wait [#allocation21], 32  }
 0x1f7   :  { %6608 = vsyncadd [#allocation21], 4294967264 }
 0x1f8   :  { %6609 = dma.done.wait [#allocation24], 32  }
 0x1f9   :  { %6610 = vsyncadd [#allocation24], 4294967264 }
 0x1fa   :  { %6611 = dma.done.wait [#allocation27], 1040  }
 0x1fb   :  { %6612 = vsyncadd [#allocation27], 4294966256 }
 0x1fc   :  { %6613 = dma.done.wait [#allocation30], 2080  }
 0x1fd   :  { %6614 = vsyncadd [#allocation30], 4294965216 }
 0x1fe   :  { %6615 = dma.done.wait [#allocation33], 1040  }
 0x1ff   :  { %6616 = vsyncadd [#allocation33], 4294966256 }
 0x200   :  { %6617 = dma.done.wait [#allocation36], 2080  }
 0x201   :  { %6618 = vsyncadd [#allocation36], 4294965216 }
 0x202   :  { %6619 = dma.done.wait [#allocation39], 16  }
 0x203   :  { %6620 = vsyncadd [#allocation39], 4294967280  ;;  %v5725_v0 = vld [vmem:[#allocation5] sm:$0xff]   ;;  %v5726_v1 = vld [vmem:[#allocation5 + $0x8] sm:$0xff]   ;;  %vm427_vm0 = vcmask 523264   ;;  %vm6654_vm1 = vmmov 0  }
 0x204   :  { %5230 = vmatprep.subr.bf16.mxu1 %v5725_v0  ;;  %v5727_v2 = vld [vmem:[#allocation5 + $0x10] sm:$0xff]   ;;  %v382_v3 = vld [vmem:[#allocation2] sm:$0xff]  ;;  %v383_v4 = vld [vmem:[#allocation2 + $0x8] sm:$0xff]  ;;  %s6657_s23 = smov [#allocation40]  }
 0x205   :  { %5231 = vmatpush3.bf16.msra.mxu1 %v5725_v0  ;;  %v386_v5 = vpack.c.bf16 %v383_v4, %v382_v3  ;;  %v5728_v6 = vld [vmem:[#allocation5 + $0x18] sm:$0xff]   ;;  %v384_v7 = vld [vmem:[#allocation2 + $0x10] sm:$0xff]  ;;  %v4831_v10 = vld [vmem:[#allocation7] ss:$0 sm:$0xff]  ;;  %s4776_s10 = sshll.u32 %s6657_s23, 4  ;;  %s4777_s10 = int_to_ptr.vmem [resolvable:$true] %s4776_s10 }
 0x206   :  { %5232 = vmatprep.subr.bf16.mxu1 %v5726_v1  ;;  %v385_v8 = vld [vmem:[#allocation2 + $0x18] sm:$0xff]  ;;  %s6529_s18 = scalar_lea.vmem %s4777_s10, 512  ;;  %p6534_p11 = scmp.lt.s32.totalorder %s4777_s10, %s4777_s10 }
 0x207   :  { %5238 = vmatprep.mubr.msk.bf16.mxu1 %vm427_vm0, %v386_v5  ;;  %v387_v9 = vpack.c.bf16 %v385_v8, %v384_v7  ;;  %p6530_p10 = scmp.ne.s32.totalorder %s4777_s10, %s6529_s18  ;;  %p6535_p12 = scmp.lt.s32.totalorder %s6529_s18, %s6529_s18 }
 0x209   :  { %5233 = vmatpush3.bf16.msra.mxu1 %v5726_v1  ;;  %p6536_p13 = por %p6535_p12, %p6534_p11 }
 0x20a   :  { %5234 = vmatprep.subr.bf16.mxu1 %v5727_v2 }
 0x20b   :  { %p6537_p0 = pnand %p6536_p13, %p6530_p10 }
 0x20d   :  { %5235 = vmatpush3.bf16.msra.mxu1 %v5727_v2 }
 0x20e   :  { %5236 = vmatprep.subr.bf16.mxu1 %v5728_v6 }
 0x211   :  { %5237 = vmatpush3.bf16.msra.mxu1 %v5728_v6 }
 0x214   :  { %5239 = vmatmul.mubr.msk.bf16.vlgmr.msra.gmra.mrb[0].mxu1 %vm427_vm0, %v387_v9 }
 0x2e7   :  { %v5240_v11 = vpop.f32.mrb[0].mxu1 }
 0x2e8   :  { %v477_v12 = vadd.f32 %v5240_v11, %v4831_v10  ;;  %v468_v13 = vpop.f32.mrb[1].mxu1 }
 0x2e9   :  { %v469_v14 = vadd.f32 %v4831_v10, %v468_v13  ;;  %v5241_v15 = vpop.f32.mrb[2].mxu1 }
 0x2ea   :  { %v489_v16 = vmul.f32 0.044715, %v477_v12  ;;  %v480_v17 = vadd.f32 %v5241_v15, %v4831_v10  ;;  %v471_v18 = vpop.f32.mrb[3].mxu1  ;;  %v485_v41 = vmul.f32 0.5, %v477_v12  ;;  %v5729_v15 = vld [vmem:[#allocation11] sm:$0xff]  }
 0x2eb   :  { %v487_v19 = vmul.f32 0.044715, %v469_v14  ;;  %v472_v20 = vadd.f32 %v4831_v10, %v471_v18  ;;  %v483_v44 = vmul.f32 0.5, %v469_v14  ;;  %5242 = vmatprep.subr.bf16.mxu1 %v5729_v15  ;;  %v5732_v18 = vld [vmem:[#allocation13 + $0x8] sm:$0xff]  }
 0x2ec   :  { %v490_v21 = vmul.f32 0.044715, %v480_v17  ;;  %v493_v22 = vmul.f32 %v489_v16, %v477_v12  ;;  %v486_v48 = vmul.f32 0.5, %v480_v17  ;;  %v5730_v16 = vld [vmem:[#allocation13] sm:$0xff]   ;;  %5243 = vmatpush3.bf16.msra.mxu1 %v5729_v15 }
 0x2ed   :  { %v488_v23 = vmul.f32 0.044715, %v472_v20  ;;  %v491_v24 = vmul.f32 %v487_v19, %v469_v14  ;;  %v484_v51 = vmul.f32 0.5, %v472_v20  ;;  %5254 = vmatprep.subr.bf16.mxu0 %v5730_v16  ;;  %v5733_v19 = vld [vmem:[#allocation11 + $0x10] sm:$0xff]  }
 0x2ee   :  { %v497_v25 = vmul.f32 %v493_v22, %v477_v12  ;;  %v494_v26 = vmul.f32 %v490_v21, %v480_v17  ;;  %5255 = vmatpush3.bf16.msra.mxu0 %v5730_v16  ;;  %v5735_v21 = vld [vmem:[#allocation11 + $0x18] sm:$0xff]  }
 0x2ef   :  { %v495_v27 = vmul.f32 %v491_v24, %v469_v14  ;;  %v492_v28 = vmul.f32 %v488_v23, %v472_v20  ;;  %5256 = vmatprep.subr.bf16.mxu0 %v5732_v18  ;;  %v5736_v22 = vld [vmem:[#allocation13 + $0x18] sm:$0xff]   ;;  %v5737_v23 = vld [vmem:[#allocation14] sm:$0xff]  }
 0x2f0   :  { %v501_v29 = vadd.f32 %v497_v25, %v477_v12  ;;  %v498_v30 = vmul.f32 %v494_v26, %v480_v17 }
 0x2f1   :  { %v499_v31 = vadd.f32 %v495_v27, %v469_v14  ;;  %v496_v32 = vmul.f32 %v492_v28, %v472_v20 }
 0x2f2   :  { %v505_v33 = vmul.f32 0.7978846, %v501_v29  ;;  %v502_v34 = vadd.f32 %v498_v30, %v480_v17  ;;  %v5731_v17 = vld [vmem:[#allocation11 + $0x8] sm:$0xff]   ;;  %5257 = vmatpush3.bf16.msra.mxu0 %v5732_v18 }
 0x2f3   :  { %v503_v35 = vmul.f32 0.7978846, %v499_v31  ;;  %v500_v36 = vadd.f32 %v496_v32, %v472_v20  ;;  %5244 = vmatprep.subr.bf16.mxu1 %v5731_v17  ;;  %v5734_v20 = vld [vmem:[#allocation13 + $0x10] sm:$0xff]  }
 0x2f4   :  { %5805 = vtanh.f32 %v505_v33  ;;  %v506_v37 = vmul.f32 0.7978846, %v502_v34  ;;  %5245 = vmatpush3.bf16.msra.mxu1 %v5731_v17  ;;  %5258 = vmatprep.subr.bf16.mxu0 %v5734_v20 }
 0x2f5   :  { %5807 = vtanh.f32 %v503_v35  ;;  %v504_v38 = vmul.f32 0.7978846, %v500_v36  ;;  %5246 = vmatprep.subr.bf16.mxu1 %v5733_v19 }
 0x2f6   :  { %5809 = vtanh.f32 %v506_v37  ;;  %5259 = vmatpush3.bf16.msra.mxu0 %v5734_v20 }
 0x2f7   :  { %5811 = vtanh.f32 %v504_v38  ;;  %5260 = vmatprep.subr.bf16.mxu0 %v5736_v22  ;;  %v4838_v38 = vld [vmem:[#allocation8] ss:$0 sm:$0xff] }
 0x2f8   :  { %5247 = vmatpush3.bf16.msra.mxu1 %v5733_v19 }
 0x2f9   :  { %5248 = vmatprep.subr.bf16.mxu1 %v5735_v21 }
 0x2fa   :  { %5261 = vmatpush3.bf16.msra.mxu0 %v5736_v22 }
 0x2fc   :  { %5249 = vmatpush3.bf16.msra.mxu1 %v5735_v21 }
 0x2fd   :  { %5266 = vmatprep.subr.bf16.mxu1 %v5737_v23 }
 0x2fe   :  { %v5806_v39 = vpop.eup %5805 }
 0x2ff   :  { %v5808_v40 = vpop.eup %5807  ;;  %v513_v42 = vadd.f32 1.0, %v5806_v39 }
 0x300   :  { %v5810_v43 = vpop.eup %5809  ;;  %v511_v45 = vadd.f32 1.0, %v5808_v40 }
 0x301   :  { %v5812_v46 = vpop.eup %5811  ;;  %v517_v47 = vmul.f32 %v513_v42, %v485_v41  ;;  %v514_v49 = vadd.f32 1.0, %v5810_v43 }
 0x302   :  { %v515_v50 = vmul.f32 %v511_v45, %v483_v44  ;;  %v512_v52 = vadd.f32 1.0, %v5812_v46  ;;  %v4839_v44 = vld [vmem:[#allocation10] ss:$0 sm:$0xff] }
 0x303   :  { %v527_v53 = vsel %vm427_vm0, %v517_v47, 0.0  ;;  %v518_v54 = vmul.f32 %v514_v49, %v486_v48 }
 0x304   :  { %528 = vadd.xlane.f32.xlu1 %v527_v53  ;;  %v521_v55 = vsel %vm427_vm0, %v515_v50, 0.0  ;;  %v516_v56 = vmul.f32 %v512_v52, %v484_v51 }
 0x305   :  { %522 = vadd.xlane.f32.xlu0 %v521_v55  ;;  %v530_v57 = vsel %vm427_vm0, %v518_v54, 0.0 }
 0x306   :  { %v524_v58 = vsel %vm427_vm0, %v516_v56, 0.0 }
 0x308   :  { %531 = vadd.xlane.f32.xlu1 %v530_v57  ;;  %v5739_v57 = vld [vmem:[#allocation14 + $0x10] sm:$0xff]  }
 0x309   :  { %525 = vadd.xlane.f32.xlu0 %v524_v58  ;;  %v5740_v58 = vld [vmem:[#allocation14 + $0x18] sm:$0xff]  }
 0x391   :  { %v529_v59 = vpop.xlane.xlu1 %528 }
 0x392   :  { %v536_v60 = vmul.f32 0.015625, %v529_v59  ;;  %v523_v61 = vpop.xlane.xlu0 %522  ;;  %v6653_v59 = vmov 0.0  }
 0x393   :  { %v534_v62 = vmul.f32 0.015625, %v523_v61  ;;  %5278 = vmatprep.subr.bf16.mxu0 %v6653_v59 }
 0x394   :  { %v7143_v63 = vsub.f32 %v517_v47, %v536_v60  ;;  %v845_v60 = vlaneseq }
 0x395   :  { %v538_v0 = vsub.f32 %v515_v50, %v534_v62  ;;  %v532_v1 = vpop.xlane.xlu1 %531 }
 0x396   :  { %v537_v2 = vmul.f32 0.015625, %v532_v1  ;;  %v526_v3 = vpop.xlane.xlu0 %525  ;;  %v544_v9 = vmul.f32 %v7143_v63, %v7143_v63  ;;  %v7170_v61 = vand.u32 127, %v845_v60 }
 0x397   :  { %v535_v4 = vmul.f32 0.015625, %v526_v3  ;;  %v542_v5 = vmul.f32 %v538_v0, %v538_v0 }
 0x398   :  { %v7145_v6 = vsub.f32 %v518_v54, %v537_v2  ;;  %v552_v11 = vsel %vm427_vm0, %v544_v9, 0.0  ;;  %vm848_vm2 = vcmp.lt.s32.totalorder %v7170_v61, 8  ;;  %vm854_vm3 = vcmp.ge.s32.totalorder %v7170_v61, 8 }
 0x399   :  { %v539_v7 = vsub.f32 %v516_v56, %v535_v4  ;;  %v546_v8 = vsel %vm427_vm0, %v542_v5, 0.0  ;;  %v5738_v56 = vld [vmem:[#allocation14 + $0x8] sm:$0xff]   ;;  %vm855_vm4 = vcmp.lt.s32.totalorder %v7170_v61, 16  ;;  %vm861_vm5 = vcmp.ge.s32.totalorder %v7170_v61, 16 }
 0x39a   :  { %547 = vadd.xlane.f32.xlu0 %v546_v8  ;;  %v545_v13 = vmul.f32 %v7145_v6, %v7145_v6  ;;  %vm862_vm6 = vcmp.lt.s32.totalorder %v7170_v61, 24  ;;  %vm856_vm7 = vmand %vm854_vm3, %vm855_vm4  ;;  %vm868_vm8 = vcmp.ge.s32.totalorder %v7170_v61, 24  ;;  %vm869_vm9 = vcmp.lt.s32.totalorder %v7170_v61, 32 }
 0x39b   :  { %v543_v10 = vmul.f32 %v539_v7, %v539_v7  ;;  %vm875_vm10 = vcmp.ge.s32.totalorder %v7170_v61, 32  ;;  %vm876_vm11 = vcmp.lt.s32.totalorder %v7170_v61, 40  ;;  %vm7199_vm12 = vmand %vm861_vm5, %vm862_vm6  ;;  %vm882_vm13 = vcmp.ge.s32.totalorder %v7170_v61, 40 }
 0x39c   :  { %v555_v14 = vsel %vm427_vm0, %v545_v13, 0.0  ;;  %vm883_vm14 = vcmp.lt.s32.totalorder %v7170_v61, 48  ;;  %v857_v17 = vsel %vm856_vm7, 0.35355338, %v6653_v59  ;;  %vm7207_vm15 = vmand %vm868_vm8, %vm869_vm9  ;;  %vm889_vm3 = vcmp.ge.s32.totalorder %v7170_v61, 48 }
 0x39d   :  { %v549_v12 = vsel %vm427_vm0, %v543_v10, 0.0  ;;  %v850_v10 = vsel %vm848_vm2, 0.35355338, %v6653_v59  ;;  %vm890_vm4 = vcmp.lt.s32.totalorder %v7170_v61, 56  ;;  %v859_v19 = vsel %vm856_vm7, 1.0, %v6653_v59  ;;  %vm7218_vm5 = vmand %vm875_vm10, %vm876_vm11 }
 0x39e   :  { %553 = vadd.xlane.f32.xlu0 %v552_v11  ;;  %550 = vadd.xlane.f32.xlu1 %v549_v12  ;;  %v851_v13 = vpack.c.bf16 %v850_v10, %v850_v10  ;;  %v852_v20 = vsel %vm848_vm2, 1.0, %v6653_v59  ;;  %vm896_vm6 = vcmp.ge.s32.totalorder %v7170_v61, 56  ;;  %vm897_vm8 = vcmp.lt.s32.totalorder %v7170_v61, 64  ;;  %vm7236_vm2 = vmand %vm882_vm13, %vm883_vm14 }
 0x39f   :  { %v866_v22 = vsel %vm7199_vm12, 1.0, %v6653_v59  ;;  %vm7247_vm7 = vmand %vm889_vm3, %vm890_vm4  ;;  %vm1070_vm10 = vcmask 130048  }
 0x3a0   :  { %vm7268_vm9 = vmand %vm896_vm6, %vm897_vm8 }
 0x3a2   :  { %556 = vadd.xlane.f32.xlu1 %v555_v14 }
 0x427   :  { %v548_v24 = vpop.xlane.xlu0 %547 }
 0x428   :  { %v558_v25 = vmul.f32 0.015625, %v548_v24 }
 0x42a   :  { %v562_v26 = vadd.f32 1e-05, %v558_v25  ;;  %v858_v25 = vpack.c.bf16 %v857_v17, %v857_v17 }
 0x42b   :  { %v551_v27 = vpop.xlane.xlu1 %550  ;;  %v554_v28 = vpop.xlane.xlu0 %553 }
 0x42c   :  { %5813 = vrsqrt.f32 %v562_v26  ;;  %v559_v29 = vmul.f32 0.015625, %v551_v27  ;;  %v560_v30 = vmul.f32 0.015625, %v554_v28  ;;  %v7254_v28 = vpack.c.bf16 %v859_v19, %v859_v19 }
 0x42e   :  { %v563_v31 = vadd.f32 1e-05, %v559_v29  ;;  %v564_v32 = vadd.f32 1e-05, %v560_v30  ;;  %v7256_v29 = vpack.c.bf16 %v852_v20, %v852_v20  ;;  %v880_v30 = vsel %vm7218_vm5, 1.0, %v6653_v59 }
 0x42f   :  { %v557_v33 = vpop.xlane.xlu1 %556 }
 0x430   :  { %5815 = vrsqrt.f32 %v563_v31  ;;  %v561_v34 = vmul.f32 0.015625, %v557_v33  ;;  %v887_v31 = vsel %vm7236_vm2, 1.0, %v6653_v59 }
 0x431   :  { %5817 = vrsqrt.f32 %v564_v32 }
 0x432   :  { %v565_v35 = vadd.f32 1e-05, %v561_v34  ;;  %v7272_v34 = vpack.c.bf16 %v866_v22, %v866_v22 }
 0x434   :  { %5819 = vrsqrt.f32 %v565_v35 }
 0x436   :  { %v5814_v36 = vpop.eup %5813 }
 0x437   :  { %v570_v37 = vmul.f32 %v5814_v36, %v538_v0  ;;  %v894_v36 = vsel %vm7247_vm7, 1.0, %v6653_v59 }
 0x439   :  { %v580_v42 = vmul.f32 %v4838_v38, %v570_v37  ;;  %v901_v37 = vsel %vm7268_vm9, 1.0, %v6653_v59 }
 0x43a   :  { %v5816_v39 = vpop.eup %5815 }
 0x43b   :  { %v5818_v40 = vpop.eup %5817  ;;  %v571_v41 = vmul.f32 %v5816_v39, %v539_v7  ;;  %v590_v49 = vadd.f32 %v4839_v44, %v580_v42  ;;  %v7285_v42 = vpack.c.bf16 %v880_v30, %v880_v30 }
 0x43c   :  { %v572_v43 = vmul.f32 %v5818_v40, %v7143_v63 }
 0x43d   :  { %v581_v45 = vmul.f32 %v4838_v38, %v571_v41 }
 0x43e   :  { %v5820_v46 = vpop.eup %5819  ;;  %v582_v47 = vmul.f32 %v4838_v38, %v572_v43  ;;  %v7287_v43 = vpack.c.bf16 %v887_v31, %v887_v31 }
 0x43f   :  { %v573_v48 = vmul.f32 %v5820_v46, %v7145_v6  ;;  %v591_v50 = vadd.f32 %v4839_v44, %v581_v45  ;;  %v7292_v46 = vpack.c.bf16 %v894_v36, %v894_v36 }
 0x440   :  { %v592_v53 = vadd.f32 %v4839_v44, %v582_v47  ;;  %v7294_v47 = vpack.c.bf16 %v901_v37, %v901_v37 }
 0x441   :  { %v583_v51 = vmul.f32 %v4838_v38, %v573_v48  ;;  %v594_v52 = vpack.c.bf16 %v591_v50, %v590_v49 }
 0x443   :  { %5250 = vmatprep.mubr.msk.bf16.mxu1 %vm427_vm0, %v594_v52  ;;  %5262 = vmatprep.mubr.msk.bf16.mxu0 %vm427_vm0, %v594_v52  ;;  %v593_v54 = vadd.f32 %v4839_v44, %v583_v51 }
 0x445   :  { %v595_v55 = vpack.c.bf16 %v593_v54, %v592_v53 }
 0x447   :  { %5251 = vmatmul.mubr.msk.bf16.vlgmr.msra.gmra.mrb[4].mxu1 %vm427_vm0, %v595_v55  ;;  %5263 = vmatmul.mubr.msk.bf16.vlgmr.msra.gmra.mrb[0].mxu0 %vm427_vm0, %v595_v55 }
 0x448   :  { %5267 = vmatpush3.bf16.msra.mxu1 %v5737_v23  ;;  %5274 = vmatprep.mubr.msk.bf16.mxu1 %vm427_vm0, %v594_v52  ;;  %v873_v23 = vsel %vm7207_vm15, 1.0, %v6653_v59 }
 0x449   :  { %5268 = vmatprep.subr.bf16.mxu1 %v5738_v56  ;;  %5280 = vmatprep.mubr.msk.bf16.mxu0 %vm6654_vm1, %v6653_v59  ;;  %v7274_v35 = vpack.c.bf16 %v873_v23, %v873_v23 }
 0x44c   :  { %5269 = vmatpush3.bf16.msra.mxu1 %v5738_v56 }
 0x44d   :  { %5270 = vmatprep.subr.bf16.mxu1 %v5739_v57 }
 0x450   :  { %5271 = vmatpush3.bf16.msra.mxu1 %v5739_v57 }
 0x451   :  { %5272 = vmatprep.subr.bf16.mxu1 %v5740_v58 }
 0x454   :  { %5273 = vmatpush3.bf16.msra.mxu1 %v5740_v58 }
 0x455   :  { %5284 = vmatprep.subr.bf16.mxu1 %v6653_v59 }
 0x457   :  { %5275 = vmatmul.mubr.msk.bf16.vlgmr.msra.gmra.mrb[8].mxu1 %vm427_vm0, %v595_v55 }
 0x458   :  { %5286 = vmatprep.mubr.msk.bf16.mxu1 %vm6654_vm1, %v6653_v59 }
 0x51a   :  { %v5252_v62 = vpop.f32.mrb[4].mxu1  ;;  %v5264_v63 = vpop.f32.mrb[0].mxu0 }
 0x51b   :  { %v668_v0 = vpop.f32.mrb[5].mxu1  ;;  %v749_v1 = vpop.f32.mrb[1].mxu0 }
 0x51c   :  { %v5253_v2 = vpop.f32.mrb[6].mxu1  ;;  %v5265_v3 = vpop.f32.mrb[2].mxu0 }
 0x51d   :  { %v7173_v4 = vpack.c.bf16 %v5253_v2, %v5252_v62  ;;  %v971_v5 = vpack.c.bf16 %v5265_v3, %v5264_v63  ;;  %v671_v6 = vpop.f32.mrb[7].mxu1  ;;  %v752_v7 = vpop.f32.mrb[3].mxu0 }
 0x51e   :  { %v7175_v8 = vpack.c.bf16 %v671_v6, %v668_v0  ;;  %v970_v9 = vpack.c.bf16 %v752_v7, %v749_v1 }
 0x51f   :  { %v7181_v11 = vsel %vm427_vm0, %v971_v5, 0  ;;  %v975_v14 = vmul.bf16 %v7173_v4, %v851_v13  ;;  %v1124_v41 = vmul.bf16 %v7173_v4, %v858_v25 }
 0x520   :  { %v7184_v12 = vsel %vm427_vm0, %v970_v9, 0  ;;  %5285 = vmatpush3.bf16.xpose.msra.mxu1 %v7181_v11  ;;  %v974_v16 = vmul.bf16 %v7175_v8, %v851_v13  ;;  %v1123_v45 = vmul.bf16 %v7175_v8, %v858_v25 }
 0x521   :  { %5279 = vmatpush3.bf16.xpose.msra.mxu0 %v7184_v12  ;;  %5296 = vmatprep.subr.bf16.mxu1 %v6653_v59 }
 0x522   :  { %5290 = vmatprep.subr.bf16.mxu0 %v6653_v59 }
 0x527   :  { %5287 = vmatmul.mubr.msk.bf16.vlgmr.msra.gmra.mrb[12].mxu1 %vm427_vm0, %v975_v14 }
 0x528   :  { %5281 = vmatmul.mubr.msk.bf16.vlgmr.msra.gmra.mrb[4].mxu0 %vm427_vm0, %v974_v16  ;;  %5297 = vmatpush3.bf16.xpose.msra.mxu1 %v7181_v11 }
 0x529   :  { %5291 = vmatpush3.bf16.xpose.msra.mxu0 %v7184_v12  ;;  %5298 = vmatprep.mubr.msk.bf16.mxu1 %vm6654_vm1, %v6653_v59 }
 0x52a   :  { %v5276_v27 = vpop.f32.mrb[8].mxu1  ;;  %5292 = vmatprep.mubr.msk.bf16.mxu0 %vm6654_vm1, %v6653_v59  ;;  %5322 = vmatprep.subr.bf16.mxu1 %v6653_v59 }
 0x52b   :  { %v830_v33 = vpop.f32.mrb[9].mxu1 }
 0x52c   :  { %v5277_v38 = vpop.f32.mrb[10].mxu1 }
 0x52d   :  { %v7282_v39 = vpack.c.bf16 %v5277_v38, %v5276_v27  ;;  %v833_v40 = vpop.f32.mrb[11].mxu1 }
 0x52e   :  { %v7289_v44 = vpack.c.bf16 %v833_v40, %v830_v33 }
 0x52f   :  { %5299 = vmatmul.mubr.msk.bf16.vlgmr.msra.gmra.mrb[16].mxu1 %vm427_vm0, %v1124_v41  ;;  %v1456_v48 = vmul.bf16 %v7282_v39, %v7254_v28  ;;  %v1120_v49 = vmul.bf16 %v7282_v39, %v7256_v29  ;;  %v1875_v50 = vmul.bf16 %v7282_v39, %v7272_v34  ;;  %v2210_v51 = vmul.bf16 %v7282_v39, %v7274_v35 }
 0x530   :  { %5293 = vmatmul.mubr.msk.bf16.vlgmr.msra.gmra.mrb[8].mxu0 %vm427_vm0, %v1123_v45  ;;  %v1455_v52 = vmul.bf16 %v7289_v44, %v7254_v28  ;;  %5324 = vmatprep.mubr.msk.bf16.mxu1 %vm6654_vm1, %v6653_v59  ;;  %v1119_v53 = vmul.bf16 %v7289_v44, %v7256_v29  ;;  %v2545_v54 = vmul.bf16 %v7282_v39, %v7285_v42 }
 0x531   :  { %v2880_v55 = vmul.bf16 %v7282_v39, %v7287_v43  ;;  %v3215_v56 = vmul.bf16 %v7282_v39, %v7292_v46  ;;  %v3550_v57 = vmul.bf16 %v7282_v39, %v7294_v47  ;;  %v5745_v39 = vld [vmem:[#allocation16 + $0x10] sm:$0xff]  }
 0x532   :  { %5323 = vmatpush3.bf16.msra.mxu1 %v1455_v52 }
 0x533   :  { %5328 = vmatprep.subr.bf16.mxu1 %v6653_v59 }
 0x5fa   :  { %v1063_v58 = vpop.f32.mrb[12].mxu1 }
 0x5fb   :  { %v1016_v62 = vpop.f32.mrb[4].mxu0  ;;  %v5288_v63 = vpop.f32.mrb[13].mxu1  ;;  %v1077_v30 = vsel %vm1070_vm10, %v1063_v58, -inf }
 0x5fc   :  { %v5282_v0 = vpop.f32.mrb[5].mxu0  ;;  %v1066_v1 = vpop.f32.mrb[14].mxu1  ;;  %v1071_v25 = vsel %vm1070_vm10, %v1016_v62, -inf }
 0x5fd   :  { %v1019_v2 = vpop.f32.mrb[6].mxu0  ;;  %v5289_v3 = vpop.f32.mrb[15].mxu1  ;;  %v1080_v31 = vsel %vm1070_vm10, %v1066_v1, -inf }
 0x5fe   :  { %v5283_v5 = vpop.f32.mrb[7].mxu0  ;;  %v1074_v27 = vsel %vm1070_vm10, %v1019_v2, -inf }
 0x602   :  { %v1206_v6 = vpop.f32.mrb[16].mxu1 }
 0x603   :  { %v1162_v7 = vpop.f32.mrb[8].mxu0  ;;  %v5300_v9 = vpop.f32.mrb[17].mxu1  ;;  %v1219_v22 = vsel %vm1070_vm10, %v1206_v6, -inf }
 0x604   :  { %v5294_v10 = vpop.f32.mrb[9].mxu0  ;;  %v1209_v13 = vpop.f32.mrb[18].mxu1  ;;  %v1213_v14 = vsel %vm1070_vm10, %v1162_v7, -inf }
 0x605   :  { %1214 = vmax.xlane.f32.xlu0 %v1213_v14  ;;  %v1165_v16 = vpop.f32.mrb[10].mxu0  ;;  %v5301_v17 = vpop.f32.mrb[19].mxu1  ;;  %v1222_v23 = vsel %vm1070_vm10, %v1209_v13, -inf }
 0x606   :  { %v5295_v19 = vpop.f32.mrb[11].mxu0  ;;  %v1216_v20 = vsel %vm1070_vm10, %v1165_v16, -inf }
 0x607   :  { %1217 = vmax.xlane.f32.xlu1 %v1216_v20 }
 0x609   :  { %1220 = vmax.xlane.f32.xlu0 %v1219_v22 }
 0x60b   :  { %1223 = vmax.xlane.f32.xlu1 %v1222_v23 }
 0x60d   :  { %1072 = vmax.xlane.f32.xlu0 %v1071_v25 }
 0x60f   :  { %1075 = vmax.xlane.f32.xlu1 %v1074_v27 }
 0x611   :  { %1078 = vmax.xlane.f32.xlu0 %v1077_v30 }
 0x613   :  { %1081 = vmax.xlane.f32.xlu1 %v1080_v31 }
 0x692   :  { %v1215_v33 = vpop.xlane.xlu0 %1214 }
 0x693   :  { %v1225_v36 = vsub.f32 %v1162_v7, %v1215_v33 }
 0x694   :  { %v1218_v37 = vpop.xlane.xlu1 %1217 }
 0x695   :  { %v1229_v38 = vmul.f32 1.442695, %v1225_v36  ;;  %v1226_v40 = vsub.f32 %v1165_v16, %v1218_v37 }
 0x696   :  { %v1221_v41 = vpop.xlane.xlu0 %1220 }
 0x697   :  { %5821 = vpow2.f32 %v1229_v38  ;;  %v1231_v45 = vmul.f32 1.442695, %v1226_v40  ;;  %v1227_v52 = vsub.f32 %v1206_v6, %v1221_v41 }
 0x698   :  { %v1224_v63 = vpop.xlane.xlu1 %1223 }
 0x699   :  { %5823 = vpow2.f32 %v1231_v45  ;;  %v1233_v0 = vmul.f32 1.442695, %v1227_v52  ;;  %v1228_v3 = vsub.f32 %v1209_v13, %v1224_v63  ;;  %v7344_v63 = vshrl.u32 %v845_v60, 7 }
 0x69a   :  { %v1073_v5 = vpop.xlane.xlu0 %1072 }
 0x69b   :  { %5825 = vpow2.f32 %v1233_v0  ;;  %v1235_v9 = vmul.f32 1.442695, %v1228_v3  ;;  %v1083_v10 = vsub.f32 %v1016_v62, %v1073_v5  ;;  %v7347_v0 = vadd.s32 8, %v7344_v63 }
 0x69c   :  { %v1076_v14 = vpop.xlane.xlu1 %1075  ;;  %v912_v3 = vadd.s32 16, %v7344_v63  ;;  %vm906_vm3 = vcmp.eq.s32.totalorder %v7170_v61, %v7344_v63 }
 0x69d   :  { %5827 = vpow2.f32 %v1235_v9  ;;  %v1087_v17 = vmul.f32 1.442695, %v1083_v10  ;;  %v1084_v19 = vsub.f32 %v1019_v2, %v1076_v14  ;;  %v913_v5 = vadd.s32 16, %v7347_v0 }
 0x69e   :  { %v1079_v7 = vpop.xlane.xlu0 %1078  ;;  %vm914_vm11 = vcmp.eq.s32.totalorder %v7170_v61, %v912_v3  ;;  %v6655_v9 = vmov 1.0|1.0   ;;  %vm907_vm4 = vcmp.eq.s32.totalorder %v7170_v61, %v7347_v0 }
 0x69f   :  { %5829 = vpow2.f32 %v1087_v17  ;;  %v1089_v20 = vmul.f32 1.442695, %v1084_v19  ;;  %v1085_v16 = vsub.f32 %v1063_v58, %v1079_v7  ;;  %vm915_vm13 = vcmp.eq.s32.totalorder %v7170_v61, %v913_v5  ;;  %vm7359_vm6 = vmpackc.low %vm907_vm4, %vm906_vm3 }
 0x6a0   :  { %v1082_v22 = vpop.xlane.xlu1 %1081  ;;  %vm5574_vm14 = vmpackc.low %vm915_vm13, %vm914_vm11  ;;  %v1874_v5 = vmul.bf16 %v7289_v44, %v7272_v34  ;;  %v2209_v34 = vmul.bf16 %v7289_v44, %v7274_v35 }
 0x6a1   :  { %v5822_v23 = vpop.eup %5821  ;;  %5831 = vpow2.f32 %v1089_v20  ;;  %v1091_v6 = vmul.f32 1.442695, %v1085_v16  ;;  %v1086_v25 = vsub.f32 %v1066_v1, %v1082_v22  ;;  %5575 = vmatprep.subr.msk.bf16.mxu0 %vm5574_vm14, %v6655_v9 }
 0x6a2   :  { %v1237_v27 = vsel %vm1070_vm10, %v5822_v23, 0.0  ;;  %5577 = vmatpush3.bf16.msk.msra.mxu0 %vm5574_vm14, %v6655_v9 }
 0x6a3   :  { %v5824_v13 = vpop.eup %5823  ;;  %5833 = vpow2.f32 %v1091_v6  ;;  %v1093_v30 = vmul.f32 1.442695, %v1086_v25  ;;  %1238 = vadd.xlane.f32.xlu0 %v1237_v27  ;;  %5579 = vmatprep.subr.msk.bf16.mxu0 %vm7359_vm6, %v6655_v9 }
 0x6a4   :  { %v1240_v62 = vsel %vm1070_vm10, %v5824_v13, 0.0 }
 0x6a5   :  { %v5826_v31 = vpop.eup %5825  ;;  %5835 = vpow2.f32 %v1093_v30  ;;  %1241 = vadd.xlane.f32.xlu1 %v1240_v62 }
 0x6a6   :  { %v1243_v2 = vsel %vm1070_vm10, %v5826_v31, 0.0 }
 0x6a7   :  { %v5828_v33 = vpop.eup %5827  ;;  %1244 = vadd.xlane.f32.xlu0 %v1243_v2 }
 0x6a8   :  { %v1246_v58 = vsel %vm1070_vm10, %v5828_v33, 0.0 }
 0x6a9   :  { %v5830_v36 = vpop.eup %5829  ;;  %1247 = vadd.xlane.f32.xlu1 %v1246_v58 }
 0x6aa   :  { %v1095_v1 = vsel %vm1070_vm10, %v5830_v36, 0.0 }
 0x6ab   :  { %v5832_v37 = vpop.eup %5831  ;;  %1096 = vadd.xlane.f32.xlu0 %v1095_v1 }
 0x6ac   :  { %v1098_v38 = vsel %vm1070_vm10, %v5832_v37, 0.0 }
 0x6ad   :  { %v7335_v40 = vpop.eup %5833  ;;  %1099 = vadd.xlane.f32.xlu1 %v1098_v38 }
 0x6ae   :  { %v1101_v41 = vsel %vm1070_vm10, %v7335_v40, 0.0 }
 0x6af   :  { %v7339_v45 = vpop.eup %5835  ;;  %1102 = vadd.xlane.f32.xlu0 %v1101_v41 }
 0x6b0   :  { %v1104_v52 = vsel %vm1070_vm10, %v7339_v45, 0.0 }
 0x6b1   :  { %1105 = vadd.xlane.f32.xlu1 %v1104_v52 }
 0x730   :  { %v1239_v10 = vpop.xlane.xlu0 %1238 }
 0x731   :  { %5837 = vrcp.f32 %v1239_v10 }
 0x732   :  { %v1242_v14 = vpop.xlane.xlu1 %1241 }
 0x733   :  { %5839 = vrcp.f32 %v1242_v14 }
 0x734   :  { %v1245_v17 = vpop.xlane.xlu0 %1244 }
 0x735   :  { %5841 = vrcp.f32 %v1245_v17 }
 0x736   :  { %v1248_v19 = vpop.xlane.xlu1 %1247 }
 0x737   :  { %5843 = vrcp.f32 %v1248_v19 }
 0x738   :  { %v1097_v7 = vpop.xlane.xlu0 %1096 }
 0x739   :  { %5845 = vrcp.f32 %v1097_v7 }
 0x73a   :  { %v1100_v20 = vpop.xlane.xlu1 %1099 }
 0x73b   :  { %v5838_v16 = vpop.eup %5837  ;;  %5847 = vrcp.f32 %v1100_v20 }
 0x73c   :  { %v1103_v22 = vpop.xlane.xlu0 %1102  ;;  %v1257_v6 = vmul.f32 %v5838_v16, %v5822_v23 }
 0x73d   :  { %v5840_v25 = vpop.eup %5839  ;;  %5849 = vrcp.f32 %v1103_v22 }
 0x73e   :  { %v1258_v27 = vmul.f32 %v5840_v25, %v5824_v13  ;;  %5306 = vmatprep.mubr.msk.f32.mxu0 %vm1070_vm10, %v1257_v6  ;;  %v1106_v30 = vpop.xlane.xlu1 %1105 }
 0x73f   :  { %v5842_v62 = vpop.eup %5841  ;;  %5851 = vrcp.f32 %v1106_v30 }
 0x740   :  { %v1457_v2 = vpack.c.bf16 %v1258_v27, %v1257_v6  ;;  %5307 = vmatmul.mubr.msk.f32.vlgmr.msra.gmra.mrb[12].mxu0 %vm1070_vm10, %v1258_v27  ;;  %v1259_v58 = vmul.f32 %v5842_v62, %v5826_v31 }
 0x741   :  { %v5844_v1 = vpop.eup %5843  ;;  %5581 = vmatpush3.bf16.msk.msra.mxu0 %vm7359_vm6, %v6655_v9 }
 0x742   :  { %5309 = vmatprep.mubr.msk.f32.mxu0 %vm1070_vm10, %v1259_v58  ;;  %5325 = vmatmul.mubr.msk.bf16.vlgmr.msra.gmra.mrb[20].mxu1 %vm1070_vm10, %v1457_v2  ;;  %v1260_v23 = vmul.f32 %v5844_v1, %v5828_v33 }
 0x743   :  { %v5846_v13 = vpop.eup %5845  ;;  %5329 = vmatpush3.bf16.msra.mxu1 %v1456_v48  ;;  %5346 = vmatprep.subr.bf16.mxu0 %v6653_v59  ;;  %v864_v48 = vsel %vm7199_vm12, 0.35355338, %v6653_v59 }
 0x744   :  { %5310 = vmatmul.mubr.msk.f32.gmra.mrb[14].mxu0 %vm1070_vm10, %v1260_v23  ;;  %v1115_v31 = vmul.f32 %v5846_v13, %v5830_v36  ;;  %5330 = vmatprep.mubr.msk.bf16.mxu1 %vm6654_vm1, %v6653_v59  ;;  %v1458_v36 = vpack.c.bf16 %v1260_v23, %v1259_v58 }
 0x745   :  { %v5848_v38 = vpop.eup %5847  ;;  %5334 = vmatprep.subr.bf16.mxu1 %v6653_v59 }
 0x746   :  { %v1116_v41 = vmul.f32 %v5848_v38, %v5832_v37  ;;  %5316 = vmatprep.mubr.msk.f32.mxu0 %vm1070_vm10, %v1115_v31  ;;  %v865_v37 = vpack.c.bf16 %v864_v48, %v864_v48 }
 0x747   :  { %v5850_v33 = vpop.eup %5849 }
 0x748   :  { %5317 = vmatmul.mubr.msk.f32.vlgmr.msra.gmra.mrb[12].mxu0 %vm1070_vm10, %v1116_v41  ;;  %v1117_v28 = vmul.f32 %v5850_v33, %v7335_v40  ;;  %v1635_v15 = vmul.bf16 %v7175_v8, %v865_v37  ;;  %v1121_v40 = vpack.c.bf16 %v1116_v41, %v1115_v31 }
 0x749   :  { %v5852_v52 = vpop.eup %5851 }
 0x74a   :  { %5347 = vmatpush3.bf16.xpose.msra.mxu0 %v7184_v12  ;;  %5319 = vmatprep.mubr.msk.f32.mxu0 %vm1070_vm10, %v1117_v28  ;;  %v1118_v3 = vmul.f32 %v5852_v52, %v7339_v45 }
 0x74b   :  { %5331 = vmatmul.mubr.msk.bf16.vlgmr.msra.gmra.mrb[24].mxu1 %vm1070_vm10, %v1458_v36  ;;  %5352 = vmatprep.subr.bf16.mxu0 %v6653_v59 }
 0x74c   :  { %5335 = vmatpush3.bf16.msra.mxu1 %v1119_v53  ;;  %5320 = vmatmul.mubr.msk.f32.gmra.mrb[14].mxu0 %vm1070_vm10, %v1118_v3  ;;  %v1636_v53 = vmul.bf16 %v7173_v4, %v865_v37  ;;  %v1122_v45 = vpack.c.bf16 %v1118_v3, %v1117_v28 }
 0x74d   :  { %5348 = vmatprep.mubr.msk.bf16.mxu0 %vm6654_vm1, %v6653_v59  ;;  %5336 = vmatprep.mubr.msk.bf16.mxu1 %vm6654_vm1, %v6653_v59 }
 0x74e   :  { %5340 = vmatprep.subr.bf16.mxu1 %v6653_v59 }
 0x751   :  { %5349 = vmatmul.mubr.msk.bf16.vlgmr.msra.gmra.mrb[16].mxu0 %vm427_vm0, %v1635_v15 }
 0x752   :  { %5353 = vmatpush3.bf16.xpose.msra.mxu0 %v7181_v11  ;;  %5354 = vmatprep.mubr.msk.bf16.mxu0 %vm6654_vm1, %v6653_v59 }
 0x753   :  { %5337 = vmatmul.mubr.msk.bf16.vlgmr.msra.gmra.mrb[20].mxu1 %vm1070_vm10, %v1121_v40  ;;  %v920_v40 = vadd.s32 32, %v7344_v63 }
 0x754   :  { %5341 = vmatpush3.bf16.msra.mxu1 %v1120_v49  ;;  %5342 = vmatprep.mubr.msk.bf16.mxu1 %vm6654_vm1, %v6653_v59 }
 0x755   :  { %5368 = vmatprep.subr.bf16.mxu1 %v6653_v59  ;;  %vm922_vm12 = vcmp.eq.s32.totalorder %v7170_v61, %v920_v40 }
 0x759   :  { %5355 = vmatmul.mubr.msk.bf16.vlgmr.msra.gmra.mrb[20].mxu0 %vm427_vm0, %v1636_v53  ;;  %v921_v53 = vadd.s32 32, %v7347_v0 }
 0x75b   :  { %5343 = vmatmul.mubr.msk.bf16.vlgmr.msra.gmra.mrb[24].mxu1 %vm1070_vm10, %v1122_v45  ;;  %vm923_vm8 = vcmp.eq.s32.totalorder %v7170_v61, %v921_v53 }
 0x75c   :  { %5369 = vmatpush3.bf16.msra.mxu1 %v1874_v5  ;;  %5370 = vmatprep.mubr.msk.bf16.mxu1 %vm6654_vm1, %v6653_v59  ;;  %vm5582_vm11 = vmpackc.low %vm923_vm8, %vm922_vm12 }
 0x75d   :  { %5374 = vmatprep.subr.bf16.mxu1 %v6653_v59  ;;  %5583 = vmatprep.subr.msk.bf16.mxu0 %vm5582_vm11, %v6655_v9 }
 0x75e   :  { %5585 = vmatpush3.bf16.msk.msra.mxu0 %vm5582_vm11, %v6655_v9 }
 0x75f   :  { %5380 = vmatprep.subr.bf16.mxu0 %v6653_v59 }
 0x824   :  { %v1674_v29 = vpop.f32.mrb[16].mxu0 }
 0x825   :  { %v5350_v49 = vpop.f32.mrb[17].mxu0  ;;  %v1725_v60 = vsel %vm1070_vm10, %v1674_v29, -inf }
 0x826   :  { %1726 = vmax.xlane.f32.xlu0 %v1725_v60  ;;  %v1677_v10 = vpop.f32.mrb[18].mxu0 }
 0x827   :  { %v5351_v14 = vpop.f32.mrb[19].mxu0  ;;  %v1728_v17 = vsel %vm1070_vm10, %v1677_v10, -inf }
 0x828   :  { %1729 = vmax.xlane.f32.xlu1 %v1728_v17 }
 0x82c   :  { %v1718_v19 = vpop.f32.mrb[20].mxu0 }
 0x82d   :  { %v5356_v7 = vpop.f32.mrb[21].mxu0  ;;  %v1731_v20 = vsel %vm1070_vm10, %v1718_v19, -inf }
 0x82e   :  { %1732 = vmax.xlane.f32.xlu0 %v1731_v20  ;;  %v1721_v16 = vpop.f32.mrb[22].mxu0  ;;  %v871_v20 = vsel %vm7207_vm15, 0.35355338, %v6653_v59 }
 0x82f   :  { %v5357_v22 = vpop.f32.mrb[23].mxu0  ;;  %v1734_v6 = vsel %vm1070_vm10, %v1721_v16, -inf }
 0x830   :  { %1735 = vmax.xlane.f32.xlu1 %v1734_v6 }
 0x8b3   :  { %v1727_v25 = vpop.xlane.xlu0 %1726 }
 0x8b4   :  { %v1737_v27 = vsub.f32 %v1674_v29, %v1727_v25  ;;  %v872_v25 = vpack.c.bf16 %v871_v20, %v871_v20 }
 0x8b5   :  { %v1730_v30 = vpop.xlane.xlu1 %1729 }
 0x8b6   :  { %v1741_v62 = vmul.f32 1.442695, %v1737_v27  ;;  %v1738_v2 = vsub.f32 %v1677_v10, %v1730_v30  ;;  %v1970_v18 = vmul.bf16 %v7175_v8, %v872_v25 }
 0x8b8   :  { %5853 = vpow2.f32 %v1741_v62  ;;  %v1743_v58 = vmul.f32 1.442695, %v1738_v2 }
 0x8ba   :  { %5855 = vpow2.f32 %v1743_v58 }
 0x8bb   :  { %v1733_v1 = vpop.xlane.xlu0 %1732 }
 0x8bc   :  { %v1739_v23 = vsub.f32 %v1718_v19, %v1733_v1 }
 0x8bd   :  { %v1736_v13 = vpop.xlane.xlu1 %1735 }
 0x8be   :  { %v1745_v31 = vmul.f32 1.442695, %v1739_v23  ;;  %v1740_v38 = vsub.f32 %v1721_v16, %v1736_v13 }
 0x8c0   :  { %5857 = vpow2.f32 %v1745_v31  ;;  %v1747_v41 = vmul.f32 1.442695, %v1740_v38 }
 0x8c2   :  { %v5854_v33 = vpop.eup %5853  ;;  %5859 = vpow2.f32 %v1747_v41 }
 0x8c3   :  { %v1749_v28 = vsel %vm1070_vm10, %v5854_v33, 0.0 }
 0x8c4   :  { %v5856_v48 = vpop.eup %5855  ;;  %1750 = vadd.xlane.f32.xlu0 %v1749_v28 }
 0x8c5   :  { %v1752_v52 = vsel %vm1070_vm10, %v5856_v48, 0.0 }
 0x8c6   :  { %1753 = vadd.xlane.f32.xlu1 %v1752_v52 }
 0x8ca   :  { %v5858_v36 = vpop.eup %5857 }
 0x8cb   :  { %v1755_v3 = vsel %vm1070_vm10, %v5858_v36, 0.0 }
 0x8cc   :  { %v5860_v37 = vpop.eup %5859  ;;  %1756 = vadd.xlane.f32.xlu0 %v1755_v3 }
 0x8cd   :  { %v1758_v15 = vsel %vm1070_vm10, %v5860_v37, 0.0 }
 0x8ce   :  { %1759 = vadd.xlane.f32.xlu1 %v1758_v15 }
 0x951   :  { %v1751_v45 = vpop.xlane.xlu0 %1750 }
 0x952   :  { %5861 = vrcp.f32 %v1751_v45 }
 0x953   :  { %v1754_v5 = vpop.xlane.xlu1 %1753 }
 0x954   :  { %5863 = vrcp.f32 %v1754_v5 }
 0x959   :  { %v1757_v29 = vpop.xlane.xlu0 %1756 }
 0x95a   :  { %5865 = vrcp.f32 %v1757_v29 }
 0x95b   :  { %v1760_v49 = vpop.xlane.xlu1 %1759 }
 0x95c   :  { %v5862_v60 = vpop.eup %5861  ;;  %5867 = vrcp.f32 %v1760_v49 }
 0x95d   :  { %v1769_v10 = vmul.f32 %v5862_v60, %v5854_v33 }
 0x95e   :  { %v5864_v14 = vpop.eup %5863 }
 0x95f   :  { %v1770_v17 = vmul.f32 %v5864_v14, %v5856_v48  ;;  %5362 = vmatprep.mubr.msk.f32.mxu0 %vm1070_vm10, %v1769_v10 }
 0x961   :  { %v1876_v19 = vpack.c.bf16 %v1770_v17, %v1769_v10  ;;  %5363 = vmatmul.mubr.msk.f32.vlgmr.msra.gmra.mrb[12].mxu0 %vm1070_vm10, %v1770_v17 }
 0x962   :  { %5381 = vmatpush3.bf16.xpose.msra.mxu0 %v7184_v12 }
 0x963   :  { %5371 = vmatmul.mubr.msk.bf16.vlgmr.msra.gmra.mrb[20].mxu1 %vm1070_vm10, %v1876_v19  ;;  %5386 = vmatprep.subr.bf16.mxu0 %v6653_v59 }
 0x964   :  { %v5866_v7 = vpop.eup %5865  ;;  %5375 = vmatpush3.bf16.msra.mxu1 %v1875_v50  ;;  %5376 = vmatprep.mubr.msk.bf16.mxu1 %vm6654_vm1, %v6653_v59  ;;  %v1971_v50 = vmul.bf16 %v7173_v4, %v872_v25 }
 0x965   :  { %v1771_v16 = vmul.f32 %v5866_v7, %v5858_v36  ;;  %5402 = vmatprep.subr.bf16.mxu1 %v6653_v59 }
 0x966   :  { %v5868_v22 = vpop.eup %5867 }
 0x967   :  { %5365 = vmatprep.mubr.msk.f32.mxu0 %vm1070_vm10, %v1771_v16  ;;  %v1772_v6 = vmul.f32 %v5868_v22, %v5860_v37  ;;  %v928_v22 = vadd.s32 48, %v7344_v63 }
 0x969   :  { %5366 = vmatmul.mubr.msk.f32.gmra.mrb[14].mxu0 %vm1070_vm10, %v1772_v6  ;;  %v1877_v27 = vpack.c.bf16 %v1772_v6, %v1771_v16  ;;  %v929_v6 = vadd.s32 48, %v7347_v0  ;;  %vm930_vm15 = vcmp.eq.s32.totalorder %v7170_v61, %v928_v22 }
 0x96a   :  { %5382 = vmatprep.mubr.msk.bf16.mxu0 %vm6654_vm1, %v6653_v59 }
 0x96b   :  { %5377 = vmatmul.mubr.msk.bf16.vlgmr.msra.gmra.mrb[24].mxu1 %vm1070_vm10, %v1877_v27  ;;  %vm931_vm13 = vcmp.eq.s32.totalorder %v7170_v61, %v929_v6 }
 0x96c   :  { %5403 = vmatpush3.bf16.msra.mxu1 %v2209_v34  ;;  %5404 = vmatprep.mubr.msk.bf16.mxu1 %vm6654_vm1, %v6653_v59  ;;  %vm5586_vm14 = vmpackc.low %vm931_vm13, %vm930_vm15 }
 0x96d   :  { %5383 = vmatmul.mubr.msk.bf16.vlgmr.msra.gmra.mrb[24].mxu0 %vm427_vm0, %v1970_v18  ;;  %5408 = vmatprep.subr.bf16.mxu1 %v6653_v59 }
 0x96e   :  { %5387 = vmatpush3.bf16.xpose.msra.mxu0 %v7181_v11  ;;  %5388 = vmatprep.mubr.msk.bf16.mxu0 %vm6654_vm1, %v6653_v59 }
 0x96f   :  { %5587 = vmatprep.subr.msk.bf16.mxu0 %vm5586_vm14, %v6655_v9 }
 0x975   :  { %5389 = vmatmul.mubr.msk.bf16.vlgmr.msra.gmra.mrb[28].mxu0 %vm427_vm0, %v1971_v50 }
 0x976   :  { %5589 = vmatpush3.bf16.msk.msra.mxu0 %vm5586_vm14, %v6655_v9 }
 0x977   :  { %5414 = vmatprep.subr.bf16.mxu0 %v6653_v59 }
 0xa40   :  { %v2009_v30 = vpop.f32.mrb[24].mxu0 }
 0xa41   :  { %v5384_v62 = vpop.f32.mrb[25].mxu0  ;;  %v2060_v2 = vsel %vm1070_vm10, %v2009_v30, -inf }
 0xa42   :  { %2061 = vmax.xlane.f32.xlu0 %v2060_v2  ;;  %v2012_v58 = vpop.f32.mrb[26].mxu0 }
 0xa43   :  { %v5385_v1 = vpop.f32.mrb[27].mxu0  ;;  %v2063_v23 = vsel %vm1070_vm10, %v2012_v58, -inf }
 0xa44   :  { %2064 = vmax.xlane.f32.xlu1 %v2063_v23  ;;  %v878_v23 = vsel %vm7218_vm5, 0.35355338, %v6653_v59 }
 0xa48   :  { %v2053_v13 = vpop.f32.mrb[28].mxu0 }
 0xa49   :  { %v5390_v31 = vpop.f32.mrb[29].mxu0  ;;  %v2066_v38 = vsel %vm1070_vm10, %v2053_v13, -inf }
 0xa4a   :  { %2067 = vmax.xlane.f32.xlu0 %v2066_v38  ;;  %v2056_v41 = vpop.f32.mrb[30].mxu0 }
 0xa4b   :  { %v5391_v33 = vpop.f32.mrb[31].mxu0  ;;  %v2069_v28 = vsel %vm1070_vm10, %v2056_v41, -inf }
 0xa4c   :  { %2070 = vmax.xlane.f32.xlu1 %v2069_v28 }
 0xacf   :  { %v2062_v48 = vpop.xlane.xlu0 %2061 }
 0xad0   :  { %v2072_v52 = vsub.f32 %v2009_v30, %v2062_v48 }
 0xad1   :  { %v2065_v36 = vpop.xlane.xlu1 %2064 }
 0xad2   :  { %v2076_v3 = vmul.f32 1.442695, %v2072_v52  ;;  %v2073_v37 = vsub.f32 %v2012_v58, %v2065_v36 }
 0xad4   :  { %5869 = vpow2.f32 %v2076_v3  ;;  %v2078_v15 = vmul.f32 1.442695, %v2073_v37 }
 0xad6   :  { %5871 = vpow2.f32 %v2078_v15 }
 0xad7   :  { %v2068_v40 = vpop.xlane.xlu0 %2067 }
 0xad8   :  { %v2074_v53 = vsub.f32 %v2053_v13, %v2068_v40 }
 0xad9   :  { %v2071_v45 = vpop.xlane.xlu1 %2070 }
 0xada   :  { %v2080_v5 = vmul.f32 1.442695, %v2074_v53  ;;  %v2075_v29 = vsub.f32 %v2056_v41, %v2071_v45  ;;  %v879_v41 = vpack.c.bf16 %v878_v23, %v878_v23  ;;  %v937_v23 = vadd.s32 64, %v7347_v0 }
 0xadc   :  { %5873 = vpow2.f32 %v2080_v5  ;;  %v2082_v49 = vmul.f32 1.442695, %v2075_v29  ;;  %v2305_v35 = vmul.bf16 %v7175_v8, %v879_v41  ;;  %v2306_v21 = vmul.bf16 %v7173_v4, %v879_v41 }
 0xadd   :  { %vm939_vm3 = vcmp.eq.s32.totalorder %v7170_v61, %v937_v23 }
 0xade   :  { %v5870_v60 = vpop.eup %5869  ;;  %5875 = vpow2.f32 %v2082_v49 }
 0xadf   :  { %v2084_v10 = vsel %vm1070_vm10, %v5870_v60, 0.0 }
 0xae0   :  { %v5872_v14 = vpop.eup %5871  ;;  %2085 = vadd.xlane.f32.xlu0 %v2084_v10 }
 0xae1   :  { %v2087_v17 = vsel %vm1070_vm10, %v5872_v14, 0.0 }
 0xae2   :  { %2088 = vadd.xlane.f32.xlu1 %v2087_v17 }
 0xae6   :  { %v5874_v19 = vpop.eup %5873 }
 0xae7   :  { %v2090_v7 = vsel %vm1070_vm10, %v5874_v19, 0.0 }
 0xae8   :  { %v5876_v20 = vpop.eup %5875  ;;  %2091 = vadd.xlane.f32.xlu0 %v2090_v7 }
 0xae9   :  { %v2093_v16 = vsel %vm1070_vm10, %v5876_v20, 0.0 }
 0xaea   :  { %2094 = vadd.xlane.f32.xlu1 %v2093_v16 }
 0xb6d   :  { %v2086_v25 = vpop.xlane.xlu0 %2085 }
 0xb6e   :  { %5877 = vrcp.f32 %v2086_v25 }
 0xb6f   :  { %v2089_v27 = vpop.xlane.xlu1 %2088 }
 0xb70   :  { %5879 = vrcp.f32 %v2089_v27 }
 0xb75   :  { %v2092_v34 = vpop.xlane.xlu0 %2091 }
 0xb76   :  { %5881 = vrcp.f32 %v2092_v34 }
 0xb77   :  { %v2095_v18 = vpop.xlane.xlu1 %2094 }
 0xb78   :  { %v5878_v50 = vpop.eup %5877  ;;  %5883 = vrcp.f32 %v2095_v18 }
 0xb79   :  { %v2104_v30 = vmul.f32 %v5878_v50, %v5870_v60 }
 0xb7a   :  { %v5880_v62 = vpop.eup %5879 }
 0xb7b   :  { %v2105_v2 = vmul.f32 %v5880_v62, %v5872_v14  ;;  %5396 = vmatprep.mubr.msk.f32.mxu0 %vm1070_vm10, %v2104_v30 }
 0xb7d   :  { %v2211_v58 = vpack.c.bf16 %v2105_v2, %v2104_v30  ;;  %5397 = vmatmul.mubr.msk.f32.vlgmr.msra.gmra.mrb[12].mxu0 %vm1070_vm10, %v2105_v2 }
 0xb7e   :  { %5415 = vmatpush3.bf16.xpose.msra.mxu0 %v7184_v12 }
 0xb7f   :  { %5405 = vmatmul.mubr.msk.bf16.vlgmr.msra.gmra.mrb[20].mxu1 %vm1070_vm10, %v2211_v58 }
 0xb80   :  { %v5882_v1 = vpop.eup %5881  ;;  %5409 = vmatpush3.bf16.msra.mxu1 %v2210_v51  ;;  %5410 = vmatprep.mubr.msk.bf16.mxu1 %vm6654_vm1, %v6653_v59  ;;  %v2544_v51 = vmul.bf16 %v7289_v44, %v7285_v42  ;;  %v2879_v42 = vmul.bf16 %v7289_v44, %v7287_v43 }
 0xb81   :  { %v2106_v13 = vmul.f32 %v5882_v1, %v5874_v19  ;;  %5420 = vmatprep.subr.bf16.mxu1 %v6653_v59  ;;  %v936_v1 = vadd.s32 64, %v7344_v63 }
 0xb82   :  { %v5884_v31 = vpop.eup %5883 }
 0xb83   :  { %5399 = vmatprep.mubr.msk.f32.mxu0 %vm1070_vm10, %v2106_v13  ;;  %v2107_v38 = vmul.f32 %v5884_v31, %v5876_v20  ;;  %vm938_vm5 = vcmp.eq.s32.totalorder %v7170_v61, %v936_v1 }
 0xb84   :  { %vm5590_vm4 = vmpackc.low %vm939_vm3, %vm938_vm5 }
 0xb85   :  { %5400 = vmatmul.mubr.msk.f32.gmra.mrb[14].mxu0 %vm1070_vm10, %v2107_v38  ;;  %v2212_v33 = vpack.c.bf16 %v2107_v38, %v2106_v13  ;;  %5591 = vmatprep.subr.msk.bf16.mxu0 %vm5590_vm4, %v6655_v9 }
 0xb86   :  { %5416 = vmatprep.mubr.msk.bf16.mxu0 %vm6654_vm1, %v6653_v59 }
 0xb87   :  { %5411 = vmatmul.mubr.msk.bf16.vlgmr.msra.gmra.mrb[24].mxu1 %vm1070_vm10, %v2212_v33 }
 0xb88   :  { %5422 = vmatprep.mubr.msk.bf16.mxu1 %vm6654_vm1, %v6653_v59 }
 0xb89   :  { %5421 = vmatpush3.bf16.xpose.msra.mxu1 %v7181_v11  ;;  %5417 = vmatmul.mubr.msk.bf16.vlgmr.msra.gmra.mrb[32].mxu0 %vm427_vm0, %v2305_v35 }
 0xb8a   :  { %5436 = vmatprep.subr.bf16.mxu1 %v6653_v59  ;;  %5593 = vmatpush3.bf16.msk.msra.mxu0 %vm5590_vm4, %v6655_v9 }
 0xb8b   :  { %5448 = vmatprep.subr.bf16.mxu0 %v6653_v59 }
 0xb90   :  { %5423 = vmatmul.mubr.msk.bf16.vlgmr.msra.gmra.mrb[28].mxu1 %vm427_vm0, %v2306_v21 }
 0xb91   :  { %5437 = vmatpush3.bf16.msra.mxu1 %v2544_v51  ;;  %5438 = vmatprep.mubr.msk.bf16.mxu1 %vm6654_vm1, %v6653_v59 }
 0xb92   :  { %5442 = vmatprep.subr.bf16.mxu1 %v6653_v59 }
 0xc5c   :  { %v2344_v28 = vpop.f32.mrb[32].mxu0 }
 0xc5d   :  { %v5418_v48 = vpop.f32.mrb[33].mxu0  ;;  %v2395_v52 = vsel %vm1070_vm10, %v2344_v28, -inf }
 0xc5e   :  { %2396 = vmax.xlane.f32.xlu0 %v2395_v52  ;;  %v2347_v36 = vpop.f32.mrb[34].mxu0  ;;  %v885_v52 = vsel %vm7236_vm2, 0.35355338, %v6653_v59 }
 0xc5f   :  { %v5419_v3 = vpop.f32.mrb[35].mxu0  ;;  %v2398_v37 = vsel %vm1070_vm10, %v2347_v36, -inf }
 0xc60   :  { %2399 = vmax.xlane.f32.xlu1 %v2398_v37 }
 0xc63   :  { %v2388_v15 = vpop.f32.mrb[28].mxu1 }
 0xc64   :  { %v5424_v40 = vpop.f32.mrb[29].mxu1  ;;  %v2401_v53 = vsel %vm1070_vm10, %v2388_v15, -inf }
 0xc65   :  { %2402 = vmax.xlane.f32.xlu0 %v2401_v53  ;;  %v2391_v45 = vpop.f32.mrb[30].mxu1 }
 0xc66   :  { %v5425_v5 = vpop.f32.mrb[31].mxu1  ;;  %v2404_v29 = vsel %vm1070_vm10, %v2391_v45, -inf }
 0xc67   :  { %2405 = vmax.xlane.f32.xlu1 %v2404_v29 }
 0xceb   :  { %v2397_v49 = vpop.xlane.xlu0 %2396 }
 0xcec   :  { %v2407_v60 = vsub.f32 %v2344_v28, %v2397_v49 }
 0xced   :  { %v2400_v10 = vpop.xlane.xlu1 %2399 }
 0xcee   :  { %v2411_v14 = vmul.f32 1.442695, %v2407_v60  ;;  %v2408_v17 = vsub.f32 %v2347_v36, %v2400_v10 }
 0xcf0   :  { %5885 = vpow2.f32 %v2411_v14  ;;  %v2413_v19 = vmul.f32 1.442695, %v2408_v17 }
 0xcf2   :  { %5887 = vpow2.f32 %v2413_v19  ;;  %v2403_v7 = vpop.xlane.xlu0 %2402 }
 0xcf3   :  { %v2409_v20 = vsub.f32 %v2388_v15, %v2403_v7  ;;  %v886_v15 = vpack.c.bf16 %v885_v52, %v885_v52 }
 0xcf4   :  { %v2406_v16 = vpop.xlane.xlu1 %2405 }
 0xcf5   :  { %v2415_v22 = vmul.f32 1.442695, %v2409_v20  ;;  %v2410_v6 = vsub.f32 %v2391_v45, %v2406_v16  ;;  %v2640_v24 = vmul.bf16 %v7175_v8, %v886_v15 }
 0xcf7   :  { %5889 = vpow2.f32 %v2415_v22  ;;  %v2417_v25 = vmul.f32 1.442695, %v2410_v6 }
 0xcf9   :  { %5891 = vpow2.f32 %v2417_v25 }
 0xcfa   :  { %v5886_v27 = vpop.eup %5885 }
 0xcfb   :  { %v2419_v34 = vsel %vm1070_vm10, %v5886_v27, 0.0 }
 0xcfc   :  { %v5888_v18 = vpop.eup %5887  ;;  %2420 = vadd.xlane.f32.xlu0 %v2419_v34 }
 0xcfd   :  { %v2422_v50 = vsel %vm1070_vm10, %v5888_v18, 0.0 }
 0xcfe   :  { %2423 = vadd.xlane.f32.xlu1 %v2422_v50 }
 0xd01   :  { %v5890_v30 = vpop.eup %5889 }
 0xd02   :  { %v2425_v62 = vsel %vm1070_vm10, %v5890_v30, 0.0 }
 0xd03   :  { %v5892_v2 = vpop.eup %5891  ;;  %2426 = vadd.xlane.f32.xlu0 %v2425_v62 }
 0xd04   :  { %v2428_v58 = vsel %vm1070_vm10, %v5892_v2, 0.0 }
 0xd05   :  { %2429 = vadd.xlane.f32.xlu1 %v2428_v58 }
 0xd89   :  { %v2421_v13 = vpop.xlane.xlu0 %2420 }
 0xd8a   :  { %5893 = vrcp.f32 %v2421_v13 }
 0xd8b   :  { %v2424_v31 = vpop.xlane.xlu1 %2423 }
 0xd8c   :  { %5895 = vrcp.f32 %v2424_v31 }
 0xd90   :  { %v2427_v38 = vpop.xlane.xlu0 %2426 }
 0xd91   :  { %5897 = vrcp.f32 %v2427_v38 }
 0xd92   :  { %v2430_v41 = vpop.xlane.xlu1 %2429 }
 0xd93   :  { %5899 = vrcp.f32 %v2430_v41 }
 0xd94   :  { %v5894_v33 = vpop.eup %5893 }
 0xd95   :  { %v2439_v35 = vmul.f32 %v5894_v33, %v5886_v27 }
 0xd96   :  { %v5896_v21 = vpop.eup %5895 }
 0xd97   :  { %v2440_v51 = vmul.f32 %v5896_v21, %v5888_v18  ;;  %5430 = vmatprep.mubr.msk.f32.mxu0 %vm1070_vm10, %v2439_v35  ;;  %v944_v21 = vadd.s32 80, %v7344_v63 }
 0xd99   :  { %v2546_v28 = vpack.c.bf16 %v2440_v51, %v2439_v35  ;;  %5431 = vmatmul.mubr.msk.f32.vlgmr.msra.gmra.mrb[12].mxu0 %vm1070_vm10, %v2440_v51  ;;  %v945_v51 = vadd.s32 80, %v7347_v0  ;;  %vm946_vm2 = vcmp.eq.s32.totalorder %v7170_v61, %v944_v21 }
 0xd9a   :  { %5449 = vmatpush3.bf16.xpose.msra.mxu0 %v7184_v12 }
 0xd9b   :  { %v5898_v48 = vpop.eup %5897  ;;  %5439 = vmatmul.mubr.msk.bf16.vlgmr.msra.gmra.mrb[20].mxu1 %vm1070_vm10, %v2546_v28  ;;  %5454 = vmatprep.subr.bf16.mxu0 %v6653_v59  ;;  %vm947_vm6 = vcmp.eq.s32.totalorder %v7170_v61, %v945_v51 }
 0xd9c   :  { %5443 = vmatpush3.bf16.msra.mxu1 %v2545_v54  ;;  %v2441_v36 = vmul.f32 %v5898_v48, %v5890_v30  ;;  %5444 = vmatprep.mubr.msk.bf16.mxu1 %vm6654_vm1, %v6653_v59  ;;  %v2641_v54 = vmul.bf16 %v7173_v4, %v886_v15  ;;  %vm5594_vm12 = vmpackc.low %vm947_vm6, %vm946_vm2 }
 0xd9d   :  { %v5900_v3 = vpop.eup %5899  ;;  %5470 = vmatprep.subr.bf16.mxu1 %v6653_v59 }
 0xd9e   :  { %5433 = vmatprep.mubr.msk.f32.mxu0 %vm1070_vm10, %v2441_v36  ;;  %v2442_v37 = vmul.f32 %v5900_v3, %v5892_v2 }
 0xda0   :  { %5434 = vmatmul.mubr.msk.f32.gmra.mrb[14].mxu0 %vm1070_vm10, %v2442_v37  ;;  %v2547_v40 = vpack.c.bf16 %v2442_v37, %v2441_v36 }
 0xda1   :  { %5450 = vmatprep.mubr.msk.bf16.mxu0 %vm6654_vm1, %v6653_v59 }
 0xda3   :  { %5445 = vmatmul.mubr.msk.bf16.vlgmr.msra.gmra.mrb[24].mxu1 %vm1070_vm10, %v2547_v40 }
 0xda4   :  { %5451 = vmatmul.mubr.msk.bf16.vlgmr.msra.gmra.mrb[36].mxu0 %vm427_vm0, %v2640_v24  ;;  %5471 = vmatpush3.bf16.msra.mxu1 %v2879_v42 }
 0xda5   :  { %5455 = vmatpush3.bf16.xpose.msra.mxu0 %v7181_v11  ;;  %5456 = vmatprep.mubr.msk.bf16.mxu0 %vm6654_vm1, %v6653_v59 }
 0xda6   :  { %5472 = vmatprep.mubr.msk.bf16.mxu1 %vm6654_vm1, %v6653_v59  ;;  %5476 = vmatprep.subr.bf16.mxu1 %v6653_v59 }
 0xda7   :  { %5595 = vmatprep.subr.msk.bf16.mxu0 %vm5594_vm12, %v6655_v9 }
 0xdac   :  { %5457 = vmatmul.mubr.msk.bf16.vlgmr.msra.gmra.mrb[40].mxu0 %vm427_vm0, %v2641_v54  ;;  %v892_v54 = vsel %vm7247_vm7, 0.35355338, %v6653_v59 }
 0xdad   :  { %5597 = vmatpush3.bf16.msk.msra.mxu0 %vm5594_vm12, %v6655_v9 }
 0xdae   :  { %5482 = vmatprep.subr.bf16.mxu0 %v6653_v59 }
 0xe77   :  { %v2679_v53 = vpop.f32.mrb[36].mxu0 }
 0xe78   :  { %v5452_v45 = vpop.f32.mrb[37].mxu0  ;;  %v2730_v5 = vsel %vm1070_vm10, %v2679_v53, -inf }
 0xe79   :  { %2731 = vmax.xlane.f32.xlu0 %v2730_v5  ;;  %v2682_v29 = vpop.f32.mrb[38].mxu0 }
 0xe7a   :  { %v5453_v49 = vpop.f32.mrb[39].mxu0  ;;  %v2733_v60 = vsel %vm1070_vm10, %v2682_v29, -inf }
 0xe7b   :  { %2734 = vmax.xlane.f32.xlu1 %v2733_v60 }
 0xe7f   :  { %v2723_v10 = vpop.f32.mrb[40].mxu0 }
 0xe80   :  { %v5458_v14 = vpop.f32.mrb[41].mxu0  ;;  %v2736_v17 = vsel %vm1070_vm10, %v2723_v10, -inf }
 0xe81   :  { %2737 = vmax.xlane.f32.xlu0 %v2736_v17  ;;  %v2726_v19 = vpop.f32.mrb[42].mxu0 }
 0xe82   :  { %v5459_v7 = vpop.f32.mrb[43].mxu0  ;;  %v2739_v20 = vsel %vm1070_vm10, %v2726_v19, -inf }
 0xe83   :  { %2740 = vmax.xlane.f32.xlu1 %v2739_v20 }
 0xf06   :  { %v2732_v16 = vpop.xlane.xlu0 %2731 }
 0xf07   :  { %v2742_v22 = vsub.f32 %v2679_v53, %v2732_v16 }
 0xf08   :  { %v2735_v6 = vpop.xlane.xlu1 %2734 }
 0xf09   :  { %v2746_v25 = vmul.f32 1.442695, %v2742_v22  ;;  %v2743_v27 = vsub.f32 %v2682_v29, %v2735_v6  ;;  %v893_v29 = vpack.c.bf16 %v892_v54, %v892_v54 }
 0xf0b   :  { %5901 = vpow2.f32 %v2746_v25  ;;  %v2748_v34 = vmul.f32 1.442695, %v2743_v27  ;;  %v2975_v43 = vmul.bf16 %v7175_v8, %v893_v29  ;;  %v2976_v26 = vmul.bf16 %v7173_v4, %v893_v29 }
 0xf0d   :  { %5903 = vpow2.f32 %v2748_v34 }
 0xf0e   :  { %v2738_v18 = vpop.xlane.xlu0 %2737 }
 0xf0f   :  { %v2744_v50 = vsub.f32 %v2723_v10, %v2738_v18 }
 0xf10   :  { %v2741_v30 = vpop.xlane.xlu1 %2740 }
 0xf11   :  { %v2750_v62 = vmul.f32 1.442695, %v2744_v50  ;;  %v2745_v2 = vsub.f32 %v2726_v19, %v2741_v30 }
 0xf13   :  { %5905 = vpow2.f32 %v2750_v62  ;;  %v2752_v58 = vmul.f32 1.442695, %v2745_v2 }
 0xf15   :  { %v5902_v1 = vpop.eup %5901  ;;  %5907 = vpow2.f32 %v2752_v58 }
 0xf16   :  { %v2754_v23 = vsel %vm1070_vm10, %v5902_v1, 0.0 }
 0xf17   :  { %v5904_v13 = vpop.eup %5903  ;;  %2755 = vadd.xlane.f32.xlu0 %v2754_v23 }
 0xf18   :  { %v2757_v31 = vsel %vm1070_vm10, %v5904_v13, 0.0 }
 0xf19   :  { %2758 = vadd.xlane.f32.xlu1 %v2757_v31 }
 0xf1d   :  { %v5906_v38 = vpop.eup %5905 }
 0xf1e   :  { %v2760_v41 = vsel %vm1070_vm10, %v5906_v38, 0.0 }
 0xf1f   :  { %v5908_v33 = vpop.eup %5907  ;;  %2761 = vadd.xlane.f32.xlu0 %v2760_v41 }
 0xf20   :  { %v2763_v35 = vsel %vm1070_vm10, %v5908_v33, 0.0 }
 0xf21   :  { %2764 = vadd.xlane.f32.xlu1 %v2763_v35 }
 0xfa4   :  { %v2756_v28 = vpop.xlane.xlu0 %2755 }
 0xfa5   :  { %5909 = vrcp.f32 %v2756_v28 }
 0xfa6   :  { %v2759_v48 = vpop.xlane.xlu1 %2758 }
 0xfa7   :  { %5911 = vrcp.f32 %v2759_v48 }
 0xfac   :  { %v2762_v52 = vpop.xlane.xlu0 %2761 }
 0xfad   :  { %5913 = vrcp.f32 %v2762_v52 }
 0xfae   :  { %v2765_v36 = vpop.xlane.xlu1 %2764 }
 0xfaf   :  { %v5910_v3 = vpop.eup %5909  ;;  %5915 = vrcp.f32 %v2765_v36  ;;  %v952_v36 = vadd.s32 96, %v7344_v63 }
 0xfb0   :  { %v2774_v37 = vmul.f32 %v5910_v3, %v5902_v1  ;;  %v953_v3 = vadd.s32 96, %v7347_v0 }
 0xfb1   :  { %v5912_v15 = vpop.eup %5911  ;;  %vm954_vm7 = vcmp.eq.s32.totalorder %v7170_v61, %v952_v36 }
 0xfb2   :  { %v2775_v40 = vmul.f32 %v5912_v15, %v5904_v13  ;;  %5464 = vmatprep.mubr.msk.f32.mxu0 %vm1070_vm10, %v2774_v37  ;;  %vm955_vm8 = vcmp.eq.s32.totalorder %v7170_v61, %v953_v3 }
 0xfb3   :  { %vm5598_vm11 = vmpackc.low %vm955_vm8, %vm954_vm7 }
 0xfb4   :  { %v2881_v24 = vpack.c.bf16 %v2775_v40, %v2774_v37  ;;  %5465 = vmatmul.mubr.msk.f32.vlgmr.msra.gmra.mrb[12].mxu0 %vm1070_vm10, %v2775_v40 }
 0xfb5   :  { %5483 = vmatpush3.bf16.xpose.msra.mxu0 %v7184_v12 }
 0xfb6   :  { %5473 = vmatmul.mubr.msk.bf16.vlgmr.msra.gmra.mrb[20].mxu1 %vm1070_vm10, %v2881_v24  ;;  %5599 = vmatprep.subr.msk.bf16.mxu0 %vm5598_vm11, %v6655_v9 }
 0xfb7   :  { %v5914_v42 = vpop.eup %5913  ;;  %5477 = vmatpush3.bf16.msra.mxu1 %v2880_v55  ;;  %5478 = vmatprep.mubr.msk.bf16.mxu1 %vm6654_vm1, %v6653_v59  ;;  %v3214_v55 = vmul.bf16 %v7289_v44, %v7292_v46  ;;  %v3549_v46 = vmul.bf16 %v7289_v44, %v7294_v47  ;;  %v5747_v47 = vld [vmem:[#allocation16 + $0x18] sm:$0xff]  }
 0xfb8   :  { %v2776_v53 = vmul.f32 %v5914_v42, %v5906_v38  ;;  %5488 = vmatprep.subr.bf16.mxu1 %v6653_v59 }
 0xfb9   :  { %v5916_v45 = vpop.eup %5915 }
 0xfba   :  { %5467 = vmatprep.mubr.msk.f32.mxu0 %vm1070_vm10, %v2776_v53  ;;  %v2777_v5 = vmul.f32 %v5916_v45, %v5908_v33 }
 0xfbc   :  { %5468 = vmatmul.mubr.msk.f32.gmra.mrb[14].mxu0 %vm1070_vm10, %v2777_v5  ;;  %v2882_v49 = vpack.c.bf16 %v2777_v5, %v2776_v53 }
 0xfbd   :  { %5484 = vmatprep.mubr.msk.bf16.mxu0 %vm6654_vm1, %v6653_v59 }
 0xfbe   :  { %5479 = vmatmul.mubr.msk.bf16.vlgmr.msra.gmra.mrb[24].mxu1 %vm1070_vm10, %v2882_v49  ;;  %v899_v49 = vsel %vm7268_vm9, 0.35355338, %v6653_v59 }
 0xfbf   :  { %5490 = vmatprep.mubr.msk.bf16.mxu1 %vm6654_vm1, %v6653_v59 }
 0xfc0   :  { %5489 = vmatpush3.bf16.xpose.msra.mxu1 %v7181_v11  ;;  %5485 = vmatmul.mubr.msk.bf16.vlgmr.msra.gmra.mrb[44].mxu0 %vm427_vm0, %v2975_v43 }
 0xfc1   :  { %5504 = vmatprep.subr.bf16.mxu1 %v6653_v59  ;;  %5601 = vmatpush3.bf16.msk.msra.mxu0 %vm5598_vm11, %v6655_v9 }
 0xfc2   :  { %5516 = vmatprep.subr.bf16.mxu0 %v6653_v59 }
 0xfc7   :  { %5491 = vmatmul.mubr.msk.bf16.vlgmr.msra.gmra.mrb[32].mxu1 %vm427_vm0, %v2976_v26 }
 0xfc8   :  { %5505 = vmatpush3.bf16.msra.mxu1 %v3214_v55  ;;  %5506 = vmatprep.mubr.msk.bf16.mxu1 %vm6654_vm1, %v6653_v59  ;;  %v900_v55 = vpack.c.bf16 %v899_v49, %v899_v49  ;;  %v5743_v49 = vld [vmem:[#allocation16 + $0x8] sm:$0xff]  }
 0xfc9   :  { %5510 = vmatprep.subr.bf16.mxu1 %v6653_v59 }
 0xfca   :  { %v3310_v32 = vmul.bf16 %v7175_v8, %v900_v55  ;;  %v3311_v8 = vmul.bf16 %v7173_v4, %v900_v55 }
0x1093   :  { %v3014_v60 = vpop.f32.mrb[44].mxu0 }
0x1094   :  { %v5486_v10 = vpop.f32.mrb[45].mxu0  ;;  %v3065_v14 = vsel %vm1070_vm10, %v3014_v60, -inf }
0x1095   :  { %3066 = vmax.xlane.f32.xlu0 %v3065_v14  ;;  %v3017_v17 = vpop.f32.mrb[46].mxu0 }
0x1096   :  { %v5487_v19 = vpop.f32.mrb[47].mxu0  ;;  %v3068_v7 = vsel %vm1070_vm10, %v3017_v17, -inf }
0x1097   :  { %3069 = vmax.xlane.f32.xlu1 %v3068_v7 }
0x109a   :  { %v3058_v20 = vpop.f32.mrb[32].mxu1 }
0x109b   :  { %v5492_v16 = vpop.f32.mrb[33].mxu1  ;;  %v3071_v22 = vsel %vm1070_vm10, %v3058_v20, -inf }
0x109c   :  { %3072 = vmax.xlane.f32.xlu0 %v3071_v22  ;;  %v3061_v6 = vpop.f32.mrb[34].mxu1 }
0x109d   :  { %v5493_v25 = vpop.f32.mrb[35].mxu1  ;;  %v3074_v27 = vsel %vm1070_vm10, %v3061_v6, -inf }
0x109e   :  { %3075 = vmax.xlane.f32.xlu1 %v3074_v27 }
0x1122   :  { %v3067_v34 = vpop.xlane.xlu0 %3066 }
0x1123   :  { %v3077_v18 = vsub.f32 %v3014_v60, %v3067_v34 }
0x1124   :  { %v3070_v50 = vpop.xlane.xlu1 %3069 }
0x1125   :  { %v3081_v30 = vmul.f32 1.442695, %v3077_v18  ;;  %v3078_v62 = vsub.f32 %v3017_v17, %v3070_v50 }
0x1127   :  { %5917 = vpow2.f32 %v3081_v30  ;;  %v3083_v2 = vmul.f32 1.442695, %v3078_v62 }
0x1129   :  { %5919 = vpow2.f32 %v3083_v2  ;;  %v3073_v58 = vpop.xlane.xlu0 %3072 }
0x112a   :  { %v3079_v1 = vsub.f32 %v3058_v20, %v3073_v58 }
0x112b   :  { %v3076_v23 = vpop.xlane.xlu1 %3075 }
0x112c   :  { %v3085_v13 = vmul.f32 1.442695, %v3079_v1  ;;  %v3080_v31 = vsub.f32 %v3061_v6, %v3076_v23 }
0x112e   :  { %5921 = vpow2.f32 %v3085_v13  ;;  %v3087_v38 = vmul.f32 1.442695, %v3080_v31 }
0x1130   :  { %5923 = vpow2.f32 %v3087_v38 }
0x1131   :  { %v5918_v41 = vpop.eup %5917 }
0x1132   :  { %v3089_v33 = vsel %vm1070_vm10, %v5918_v41, 0.0 }
0x1133   :  { %v5920_v35 = vpop.eup %5919  ;;  %3090 = vadd.xlane.f32.xlu0 %v3089_v33 }
0x1134   :  { %v3092_v21 = vsel %vm1070_vm10, %v5920_v35, 0.0 }
0x1135   :  { %3093 = vadd.xlane.f32.xlu1 %v3092_v21 }
0x1138   :  { %v5922_v51 = vpop.eup %5921 }
0x1139   :  { %v3095_v28 = vsel %vm1070_vm10, %v5922_v51, 0.0 }
0x113a   :  { %v5924_v48 = vpop.eup %5923  ;;  %3096 = vadd.xlane.f32.xlu0 %v3095_v28  ;;  %v960_v28 = vadd.s32 112, %v7344_v63 }
0x113b   :  { %v3098_v52 = vsel %vm1070_vm10, %v5924_v48, 0.0 }
0x113c   :  { %3099 = vadd.xlane.f32.xlu1 %v3098_v52  ;;  %vm962_vm9 = vcmp.eq.s32.totalorder %v7170_v61, %v960_v28  ;;  %v5741_v52 = vld [vmem:[#allocation16] sm:$0xff]  }
0x11c0   :  { %v3091_v37 = vpop.xlane.xlu0 %3090 }
0x11c1   :  { %5925 = vrcp.f32 %v3091_v37 }
0x11c2   :  { %v3094_v15 = vpop.xlane.xlu1 %3093 }
0x11c3   :  { %5927 = vrcp.f32 %v3094_v15 }
0x11c7   :  { %v3097_v40 = vpop.xlane.xlu0 %3096 }
0x11c8   :  { %5929 = vrcp.f32 %v3097_v40 }
0x11c9   :  { %v3100_v24 = vpop.xlane.xlu1 %3099 }
0x11ca   :  { %5931 = vrcp.f32 %v3100_v24 }
0x11cb   :  { %v5926_v42 = vpop.eup %5925 }
0x11cc   :  { %v3109_v54 = vmul.f32 %v5926_v42, %v5918_v41 }
0x11cd   :  { %v5928_v53 = vpop.eup %5927 }
0x11ce   :  { %v3110_v45 = vmul.f32 %v5928_v53, %v5920_v35  ;;  %5498 = vmatprep.mubr.msk.f32.mxu0 %vm1070_vm10, %v3109_v54 }
0x11d0   :  { %v3216_v5 = vpack.c.bf16 %v3110_v45, %v3109_v54  ;;  %5499 = vmatmul.mubr.msk.f32.vlgmr.msra.gmra.mrb[12].mxu0 %vm1070_vm10, %v3110_v45 }
0x11d1   :  { %5517 = vmatpush3.bf16.xpose.msra.mxu0 %v7184_v12 }
0x11d2   :  { %v5930_v29 = vpop.eup %5929  ;;  %5507 = vmatmul.mubr.msk.bf16.vlgmr.msra.gmra.mrb[20].mxu1 %vm1070_vm10, %v3216_v5  ;;  %5522 = vmatprep.subr.bf16.mxu0 %v6653_v59 }
0x11d3   :  { %5511 = vmatpush3.bf16.msra.mxu1 %v3215_v56  ;;  %v3111_v43 = vmul.f32 %v5930_v29, %v5922_v51  ;;  %5512 = vmatprep.mubr.msk.bf16.mxu1 %vm6654_vm1, %v6653_v59 }
0x11d4   :  { %v5932_v26 = vpop.eup %5931  ;;  %5538 = vmatprep.subr.bf16.mxu1 %v6653_v59 }
0x11d5   :  { %5501 = vmatprep.mubr.msk.f32.mxu0 %vm1070_vm10, %v3111_v43  ;;  %v3112_v12 = vmul.f32 %v5932_v26, %v5924_v48  ;;  %v961_v48 = vadd.s32 112, %v7347_v0 }
0x11d7   :  { %5502 = vmatmul.mubr.msk.f32.gmra.mrb[14].mxu0 %vm1070_vm10, %v3112_v12  ;;  %v3217_v60 = vpack.c.bf16 %v3112_v12, %v3111_v43  ;;  %vm963_vm15 = vcmp.eq.s32.totalorder %v7170_v61, %v961_v48  ;;  %v5744_v43 = vld [vmem:[#allocation19 + $0x8] sm:$0xff]  }
0x11d8   :  { %5518 = vmatprep.mubr.msk.bf16.mxu0 %vm6654_vm1, %v6653_v59  ;;  %vm5602_vm13 = vmpackc.low %vm963_vm15, %vm962_vm9 }
0x11da   :  { %5513 = vmatmul.mubr.msk.bf16.vlgmr.msra.gmra.mrb[24].mxu1 %vm1070_vm10, %v3217_v60 }
0x11db   :  { %5519 = vmatmul.mubr.msk.bf16.vlgmr.msra.gmra.mrb[48].mxu0 %vm427_vm0, %v3310_v32  ;;  %5539 = vmatpush3.bf16.msra.mxu1 %v3549_v46 }
0x11dc   :  { %5523 = vmatpush3.bf16.xpose.msra.mxu0 %v7181_v11  ;;  %5524 = vmatprep.mubr.msk.bf16.mxu0 %vm6654_vm1, %v6653_v59 }
0x11dd   :  { %5540 = vmatprep.mubr.msk.bf16.mxu1 %vm6654_vm1, %v6653_v59  ;;  %5544 = vmatprep.subr.bf16.mxu1 %v6653_v59 }
0x11de   :  { %5603 = vmatprep.subr.msk.bf16.mxu0 %vm5602_vm13, %v6655_v9 }
0x11e3   :  { %5525 = vmatmul.mubr.msk.bf16.vlgmr.msra.gmra.mrb[52].mxu0 %vm427_vm0, %v3311_v8 }
0x11e4   :  { %5605 = vmatpush3.bf16.msk.msra.mxu0 %vm5602_vm13, %v6655_v9  ;;  %v5742_v9 = vld [vmem:[#allocation19] sm:$0xff]  }
0x11e5   :  { %5550 = vmatprep.subr.bf16.mxu0 %v5741_v52 }
0x12ae   :  { %v3349_v44 = vpop.f32.mrb[48].mxu0 }
0x12af   :  { %v5520_v56 = vpop.f32.mrb[49].mxu0  ;;  %v3400_v10 = vsel %vm1070_vm10, %v3349_v44, -inf }
0x12b0   :  { %3401 = vmax.xlane.f32.xlu0 %v3400_v10  ;;  %v3352_v14 = vpop.f32.mrb[50].mxu0 }
0x12b1   :  { %v5521_v17 = vpop.f32.mrb[51].mxu0  ;;  %v3403_v11 = vsel %vm1070_vm10, %v3352_v14, -inf }
0x12b2   :  { %3404 = vmax.xlane.f32.xlu1 %v3403_v11 }
0x12b6   :  { %v3393_v19 = vpop.f32.mrb[52].mxu0 }
0x12b7   :  { %v5526_v7 = vpop.f32.mrb[53].mxu0  ;;  %v3406_v20 = vsel %vm1070_vm10, %v3393_v19, -inf }
0x12b8   :  { %3407 = vmax.xlane.f32.xlu0 %v3406_v20  ;;  %v3396_v16 = vpop.f32.mrb[54].mxu0  ;;  %v4954_v7 = vld [vmem:[#allocation17] ss:$0 sm:$0xff] }
0x12b9   :  { %v5527_v22 = vpop.f32.mrb[55].mxu0  ;;  %v3409_v4 = vsel %vm1070_vm10, %v3396_v16, -inf }
0x12ba   :  { %3410 = vmax.xlane.f32.xlu1 %v3409_v4 }
0x133d   :  { %v3402_v6 = vpop.xlane.xlu0 %3401 }
0x133e   :  { %v3412_v25 = vsub.f32 %v3349_v44, %v3402_v6 }
0x133f   :  { %v3405_v27 = vpop.xlane.xlu1 %3404 }
0x1340   :  { %v3416_v34 = vmul.f32 1.442695, %v3412_v25  ;;  %v3413_v18 = vsub.f32 %v3352_v14, %v3405_v27 }
0x1342   :  { %5933 = vpow2.f32 %v3416_v34  ;;  %v3418_v50 = vmul.f32 1.442695, %v3413_v18 }
0x1344   :  { %5935 = vpow2.f32 %v3418_v50 }
0x1345   :  { %v3408_v30 = vpop.xlane.xlu0 %3407 }
0x1346   :  { %v3414_v62 = vsub.f32 %v3393_v19, %v3408_v30  ;;  %v5997_v30 = vld [vmem:[#allocation2] sm:$0xff] }
0x1347   :  { %v3411_v2 = vpop.xlane.xlu1 %3410 }
0x1348   :  { %v3420_v58 = vmul.f32 1.442695, %v3414_v62  ;;  %v3415_v1 = vsub.f32 %v3396_v16, %v3411_v2 }
0x134a   :  { %5937 = vpow2.f32 %v3420_v58  ;;  %v3422_v23 = vmul.f32 1.442695, %v3415_v1  ;;  %v5998_v1 = vld [vmem:[#allocation2 + $0x10] sm:$0xff] }
0x134c   :  { %v5934_v13 = vpop.eup %5933  ;;  %5939 = vpow2.f32 %v3422_v23 }
0x134d   :  { %v3424_v31 = vsel %vm1070_vm10, %v5934_v13, 0.0 }
0x134e   :  { %v5936_v38 = vpop.eup %5935  ;;  %3425 = vadd.xlane.f32.xlu0 %v3424_v31 }
0x134f   :  { %v3427_v41 = vsel %vm1070_vm10, %v5936_v38, 0.0 }
0x1350   :  { %3428 = vadd.xlane.f32.xlu1 %v3427_v41  ;;  %v4961_v41 = vld [vmem:[#allocation20] ss:$0 sm:$0xff] }
0x1354   :  { %v5938_v33 = vpop.eup %5937 }
0x1355   :  { %v3430_v35 = vsel %vm1070_vm10, %v5938_v33, 0.0 }
0x1356   :  { %v5940_v21 = vpop.eup %5939  ;;  %3431 = vadd.xlane.f32.xlu0 %v3430_v35 }
0x1357   :  { %v3433_v51 = vsel %vm1070_vm10, %v5940_v21, 0.0 }
0x1358   :  { %3434 = vadd.xlane.f32.xlu1 %v3433_v51 }
0x13db   :  { %v3426_v36 = vpop.xlane.xlu0 %3425 }
0x13dc   :  { %5941 = vrcp.f32 %v3426_v36 }
0x13dd   :  { %v3429_v3 = vpop.xlane.xlu1 %3428 }
0x13de   :  { %5943 = vrcp.f32 %v3429_v3 }
0x13e3   :  { %v3432_v37 = vpop.xlane.xlu0 %3431 }
0x13e4   :  { %5945 = vrcp.f32 %v3432_v37 }
0x13e5   :  { %v3435_v15 = vpop.xlane.xlu1 %3434 }
0x13e6   :  { %v5942_v40 = vpop.eup %5941  ;;  %5947 = vrcp.f32 %v3435_v15 }
0x13e7   :  { %v3444_v0 = vmul.f32 %v5942_v40, %v5934_v13  ;;  %v5999_v13 = vld [vmem:[#allocation2 + $0x8] sm:$0xff] }
0x13e8   :  { %v5944_v24 = vpop.eup %5943 }
0x13e9   :  { %v3445_v42 = vmul.f32 %v5944_v24, %v5936_v38  ;;  %5532 = vmatprep.mubr.msk.f32.mxu0 %vm1070_vm10, %v3444_v0 }
0x13eb   :  { %v3551_v61 = vpack.c.bf16 %v3445_v42, %v3444_v0  ;;  %5533 = vmatmul.mubr.msk.f32.vlgmr.msra.gmra.mrb[12].mxu0 %vm1070_vm10, %v3445_v42 }
0x13ec   :  { %5551 = vmatpush3.bf16.msra.mxu0 %v5741_v52 }
0x13ed   :  { %5541 = vmatmul.mubr.msk.bf16.vlgmr.msra.gmra.mrb[20].mxu1 %vm1070_vm10, %v3551_v61  ;;  %5552 = vmatprep.subr.bf16.mxu0 %v5743_v49 }
0x13ee   :  { %v5946_v54 = vpop.eup %5945  ;;  %5545 = vmatpush3.bf16.msra.mxu1 %v3550_v57  ;;  %5546 = vmatprep.mubr.msk.bf16.mxu1 %vm6654_vm1, %v6653_v59  ;;  %v5746_v59 = vld [vmem:[#allocation19 + $0x10] sm:$0xff]   ;;  %v5748_v57 = vld [vmem:[#allocation19 + $0x18] sm:$0xff]  }
0x13ef   :  { %v3446_v53 = vmul.f32 %v5946_v54, %v5938_v33  ;;  %5562 = vmatprep.subr.bf16.mxu1 %v5742_v9  ;;  %v6000_v33 = vld [vmem:[#allocation2 + $0x18] sm:$0xff] }
0x13f0   :  { %v5948_v45 = vpop.eup %5947  ;;  %5553 = vmatpush3.bf16.msra.mxu0 %v5743_v49 }
0x13f1   :  { %5535 = vmatprep.mubr.msk.f32.mxu0 %vm1070_vm10, %v3446_v53  ;;  %v3447_v5 = vmul.f32 %v5948_v45, %v5940_v21  ;;  %5554 = vmatprep.subr.bf16.mxu0 %v5745_v39 }
0x13f3   :  { %5536 = vmatmul.mubr.msk.f32.gmra.mrb[14].mxu0 %vm1070_vm10, %v3447_v5  ;;  %v3552_v29 = vpack.c.bf16 %v3447_v5, %v3446_v53 }
0x13f4   :  { %5555 = vmatpush3.bf16.msra.mxu0 %v5745_v39 }
0x13f5   :  { %5547 = vmatmul.mubr.msk.bf16.vlgmr.msra.gmra.mrb[24].mxu1 %vm1070_vm10, %v3552_v29  ;;  %5556 = vmatprep.subr.bf16.mxu0 %v5747_v47 }
0x13f6   :  { %5563 = vmatpush3.bf16.msra.mxu1 %v5742_v9 }
0x13f7   :  { %5564 = vmatprep.subr.bf16.mxu1 %v5744_v43 }
0x13f8   :  { %5557 = vmatpush3.bf16.msra.mxu0 %v5747_v47 }
0x13fa   :  { %5565 = vmatpush3.bf16.msra.mxu1 %v5744_v43 }
0x13fb   :  { %5566 = vmatprep.subr.bf16.mxu1 %v5746_v59 }
0x13fe   :  { %5567 = vmatpush3.bf16.msra.mxu1 %v5746_v59 }
0x13ff   :  { %5568 = vmatprep.subr.bf16.mxu1 %v5748_v57 }
0x1402   :  { %5569 = vmatpush3.bf16.msra.mxu1 %v5748_v57 }
0x14be   :  { %v5534_v26 = vpop.f32.mrb[12].mxu0 }
0x14bf   :  { %3646 = vst [vmem:[#allocation43 + $0x8] sm:$0xff] %v5534_v26  ;;  %v3526_v12 = vpop.f32.mrb[13].mxu0 }
0x14c0   :  { %3645 = vst [vmem:[#allocation43] sm:$0xff] %v3526_v12  ;;  %v3590_v55 = vpop.f32.mrb[20].mxu1 }
0x14c1   :  { %v5542_v60 = vpop.f32.mrb[21].mxu1 }
0x14c2   :  { %v3593_v32 = vpop.f32.mrb[22].mxu1 }
0x14c3   :  { %v3649_v46 = vpack.c.bf16 %v3593_v32, %v3590_v55  ;;  %v5543_v8 = vpop.f32.mrb[23].mxu1 }
0x14c5   :  { %5558 = vmatprep.mubr.msk.bf16.mxu0 %vm427_vm0, %v3649_v46  ;;  %5570 = vmatprep.mubr.msk.bf16.mxu1 %vm427_vm0, %v3649_v46 }
0x14c6   :  { %v5537_v44 = vpop.f32.mrb[14].mxu0 }
0x14c7   :  { %3648 = vst [vmem:[#allocation43 + $0x18] sm:$0xff] %v5537_v44  ;;  %v3536_v56 = vpop.f32.mrb[15].mxu0 }
0x14c8   :  { %3647 = vst [vmem:[#allocation43 + $0x10] sm:$0xff] %v3536_v56  ;;  %v3634_v10 = vpop.f32.mrb[24].mxu1 }
0x14c9   :  { %v5548_v14 = vpop.f32.mrb[25].mxu1 }
0x14ca   :  { %v3637_v17 = vpop.f32.mrb[26].mxu1 }
0x14cb   :  { %v3650_v11 = vpack.c.bf16 %v3637_v17, %v3634_v10  ;;  %v5549_v19 = vpop.f32.mrb[27].mxu1 }
0x14cd   :  { %5559 = vmatmul.mubr.msk.bf16.vlgmr.msra.gmra.mrb[56].mxu0 %vm427_vm0, %v3650_v11  ;;  %5571 = vmatmul.mubr.msk.bf16.vlgmr.msra.gmra.mrb[36].mxu1 %vm427_vm0, %v3650_v11 }
0x15a0   :  { %v5560_v20 = vpop.f32.mrb[56].mxu0  ;;  %v5572_v16 = vpop.f32.mrb[36].mxu1 }
0x15a1   :  { %v3730_v22 = vpop.f32.mrb[57].mxu0  ;;  %v3818_v4 = vpop.f32.mrb[37].mxu1  ;;  %v3739_v6 = vadd.f32 %v5560_v20, %v4954_v7  ;;  %v7700_v36 = vadd.f32 %v5572_v16, %v4961_v41 }
0x15a2   :  { %v3731_v25 = vadd.f32 %v4954_v7, %v3730_v22  ;;  %v5561_v27 = vpop.f32.mrb[58].mxu0  ;;  %v5573_v34 = vpop.f32.mrb[38].mxu1  ;;  %v7692_v51 = vadd.f32 %v4961_v41, %v3818_v4 }
0x15a3   :  { %v3733_v18 = vpop.f32.mrb[59].mxu0  ;;  %v3821_v50 = vpop.f32.mrb[39].mxu1  ;;  %v3742_v2 = vadd.f32 %v5561_v27, %v4954_v7  ;;  %v7682_v23 = vadd.f32 %v5998_v1, %v3739_v6  ;;  %v7704_v37 = vadd.f32 %v5573_v34, %v4961_v41  ;;  %v4308_v40 = vsel %vm427_vm0, %v7700_v36, 0.0  ;;  %v5752_v1 = vld [vmem:[#allocation28 + $0x10] ss:$8 sps:$4 sm:$0xff]  }
0x15a4   :  { %v7680_v62 = vadd.f32 %v5997_v30, %v3731_v25  ;;  %v3734_v58 = vadd.f32 %v4954_v7, %v3733_v18  ;;  %v7696_v48 = vadd.f32 %v4961_v41, %v3821_v50  ;;  %v4302_v3 = vsel %vm427_vm0, %v7692_v51, 0.0  ;;  %v5751_v30 = vld [vmem:[#allocation28 + $0x4] ss:$8 sps:$4 sm:$0xff]   ;;  %v5760_v41 = vld [vmem:[#allocation28 + $0x34] ss:$8 sps:$4 sm:$0xff]  }
0x15a5   :  { %v7688_v35 = vadd.f32 %v6000_v33, %v3742_v2  ;;  %v3845_v28 = vsel %vm427_vm0, %v7682_v23, 0.0  ;;  %v4311_v0 = vsel %vm427_vm0, %v7704_v37, 0.0  ;;  %v5749_v2 = vld [vmem:[#allocation28] ss:$8 sps:$4 sm:$0xff]   ;;  %3979 = vmatprep.subr.bf16.mxu0 %v5751_v30  ;;  %v5758_v33 = vld [vmem:[#allocation28 + $0x30] ss:$8 sps:$4 sm:$0xff]  }
0x15a6   :  { %v7684_v31 = vadd.f32 %v5999_v13, %v3734_v58  ;;  %v3839_v38 = vsel %vm427_vm0, %v7680_v62, 0.0  ;;  %v4305_v15 = vsel %vm427_vm0, %v7696_v48, 0.0  ;;  %3980 = vmatpush1.bf16.msra.mxu0 %v5749_v2  ;;  %v5754_v58 = vld [vmem:[#allocation28 + $0x14] ss:$8 sps:$4 sm:$0xff]   ;;  %v5757_v13 = vld [vmem:[#allocation28 + $0x24] ss:$8 sps:$4 sm:$0xff]  }
0x15a7   :  { %3840 = vadd.xlane.f32.xlu0 %v3839_v38  ;;  %v3848_v52 = vsel %vm427_vm0, %v7688_v35, 0.0  ;;  %3981 = vmatprep.subr.bf16.mxu0 %v5754_v58  ;;  %v5755_v38 = vld [vmem:[#allocation28 + $0x20] ss:$8 sps:$4 sm:$0xff]  }
0x15a8   :  { %v3842_v21 = vsel %vm427_vm0, %v7684_v31, 0.0  ;;  %v5766_v58 = vld [vmem:[#allocation34 + $0x14] ss:$8 sps:$4 sm:$0xff]  }
0x15a9   :  { %3843 = vadd.xlane.f32.xlu1 %v3842_v21  ;;  %v5763_v21 = vld [vmem:[#allocation34 + $0x4] ss:$8 sps:$4 sm:$0xff]  }
0x15aa   :  { %3982 = vmatpush1.bf16.msra.mxu0 %v5752_v1 }
0x15ab   :  { %3846 = vadd.xlane.f32.xlu0 %v3845_v28  ;;  %3983 = vmatprep.subr.bf16.mxu0 %v5757_v13  ;;  %v6656_v28 = vmov 0  }
0x15ac   :  { %4011 = vmatprep.mubr.bf16.mxu0 %v6656_v28 }
0x15ad   :  { %3849 = vadd.xlane.f32.xlu1 %v3848_v52 }
0x15ae   :  { %3984 = vmatpush1.bf16.msra.mxu0 %v5755_v38 }
0x15af   :  { %4303 = vadd.xlane.f32.xlu0 %v4302_v3  ;;  %3985 = vmatprep.subr.bf16.mxu0 %v5760_v41  ;;  %v5764_v41 = vld [vmem:[#allocation34 + $0x10] ss:$8 sps:$4 sm:$0xff]  }
0x15b1   :  { %4306 = vadd.xlane.f32.xlu1 %v4305_v15 }
0x15b2   :  { %3986 = vmatpush1.bf16.msra.mxu0 %v5758_v33  ;;  %v5769_v33 = vld [vmem:[#allocation34 + $0x24] ss:$8 sps:$4 sm:$0xff]  }
0x15b3   :  { %4309 = vadd.xlane.f32.xlu0 %v4308_v40  ;;  %4442 = vmatprep.subr.bf16.mxu0 %v5763_v21 }
0x15b5   :  { %4312 = vadd.xlane.f32.xlu1 %v4311_v0 }
0x1634   :  { %v3841_v24 = vpop.xlane.xlu0 %3840 }
0x1635   :  { %v3851_v42 = vmul.f32 0.015625, %v3841_v24 }
0x1636   :  { %v3844_v61 = vpop.xlane.xlu1 %3843 }
0x1637   :  { %v7713_v9 = vsub.f32 %v7680_v62, %v3851_v42  ;;  %v3852_v54 = vmul.f32 0.015625, %v3844_v61 }
0x1638   :  { %v3847_v53 = vpop.xlane.xlu0 %3846 }
0x1639   :  { %v7716_v45 = vsub.f32 %v7684_v31, %v3852_v54  ;;  %v3853_v5 = vmul.f32 0.015625, %v3847_v53  ;;  %v3859_v29 = vmul.f32 %v7713_v9, %v7713_v9 }
0x163a   :  { %v3850_v49 = vpop.xlane.xlu1 %3849 }
0x163b   :  { %v7721_v43 = vsub.f32 %v7682_v23, %v3853_v5  ;;  %v3854_v39 = vmul.f32 0.015625, %v3850_v49  ;;  %v3863_v59 = vsel %vm427_vm0, %v3859_v29, 0.0  ;;  %v3860_v47 = vmul.f32 %v7716_v45, %v7716_v45 }
0x163c   :  { %3864 = vadd.xlane.f32.xlu0 %v3863_v59  ;;  %v4304_v57 = vpop.xlane.xlu0 %4303 }
0x163d   :  { %v7727_v26 = vsub.f32 %v7688_v35, %v3854_v39  ;;  %v4314_v12 = vmul.f32 0.015625, %v4304_v57  ;;  %v3866_v55 = vsel %vm427_vm0, %v3860_v47, 0.0  ;;  %v3861_v60 = vmul.f32 %v7721_v43, %v7721_v43 }
0x163e   :  { %3867 = vadd.xlane.f32.xlu1 %v3866_v55  ;;  %v4307_v32 = vpop.xlane.xlu1 %4306 }
0x163f   :  { %v7733_v46 = vsub.f32 %v7692_v51, %v4314_v12  ;;  %v4315_v8 = vmul.f32 0.015625, %v4307_v32  ;;  %v3869_v44 = vsel %vm427_vm0, %v3861_v60, 0.0  ;;  %v3862_v56 = vmul.f32 %v7727_v26, %v7727_v26 }
0x1640   :  { %3870 = vadd.xlane.f32.xlu0 %v3869_v44  ;;  %v4310_v10 = vpop.xlane.xlu0 %4309 }
0x1641   :  { %v7739_v14 = vsub.f32 %v7696_v48, %v4315_v8  ;;  %v4316_v17 = vmul.f32 0.015625, %v4310_v10  ;;  %v3872_v11 = vsel %vm427_vm0, %v3862_v56, 0.0  ;;  %v4322_v19 = vmul.f32 %v7733_v46, %v7733_v46  ;;  %v4968_v8 = vld [vmem:[#allocation22] ss:$0 sm:$0xff] }
0x1642   :  { %3873 = vadd.xlane.f32.xlu1 %v3872_v11  ;;  %v4313_v7 = vpop.xlane.xlu1 %4312 }
0x1643   :  { %v7745_v20 = vsub.f32 %v7700_v36, %v4316_v17  ;;  %v4317_v16 = vmul.f32 0.015625, %v4313_v7  ;;  %v4326_v22 = vsel %vm427_vm0, %v4322_v19, 0.0  ;;  %v4323_v4 = vmul.f32 %v7739_v14, %v7739_v14 }
0x1644   :  { %4327 = vadd.xlane.f32.xlu0 %v4326_v22  ;;  %v4969_v22 = vld [vmem:[#allocation23] ss:$0 sm:$0xff] }
0x1645   :  { %v7751_v6 = vsub.f32 %v7704_v37, %v4317_v16  ;;  %v4329_v25 = vsel %vm427_vm0, %v4323_v4, 0.0  ;;  %v4324_v27 = vmul.f32 %v7745_v20, %v7745_v20 }
0x1646   :  { %4330 = vadd.xlane.f32.xlu1 %v4329_v25 }
0x1647   :  { %v4332_v34 = vsel %vm427_vm0, %v4324_v27, 0.0  ;;  %v4325_v18 = vmul.f32 %v7751_v6, %v7751_v6 }
0x1648   :  { %4333 = vadd.xlane.f32.xlu0 %v4332_v34 }
0x1649   :  { %v4335_v50 = vsel %vm427_vm0, %v4325_v18, 0.0 }
0x164a   :  { %4336 = vadd.xlane.f32.xlu1 %v4335_v50 }
0x16c9   :  { %v3865_v52 = vpop.xlane.xlu0 %3864 }
0x16ca   :  { %v3875_v3 = vmul.f32 0.015625, %v3865_v52 }
0x16cb   :  { %v3868_v15 = vpop.xlane.xlu1 %3867 }
0x16cc   :  { %v3879_v40 = vadd.f32 1e-05, %v3875_v3  ;;  %v3876_v0 = vmul.f32 0.015625, %v3868_v15  ;;  %v4997_v3 = vld [vmem:[#allocation25] ss:$0 sm:$0xff] }
0x16cd   :  { %v3871_v24 = vpop.xlane.xlu0 %3870  ;;  %v5767_v15 = vld [vmem:[#allocation34 + $0x20] ss:$8 sps:$4 sm:$0xff]  }
0x16ce   :  { %5949 = vrsqrt.f32 %v3879_v40  ;;  %v3880_v42 = vadd.f32 1e-05, %v3876_v0  ;;  %v3877_v61 = vmul.f32 0.015625, %v3871_v24  ;;  %v5772_v24 = vld [vmem:[#allocation34 + $0x34] ss:$8 sps:$4 sm:$0xff]  }
0x16cf   :  { %v3874_v54 = vpop.xlane.xlu1 %3873 }
0x16d0   :  { %5951 = vrsqrt.f32 %v3880_v42  ;;  %v3881_v53 = vadd.f32 1e-05, %v3877_v61  ;;  %v3878_v5 = vmul.f32 0.015625, %v3874_v54 }
0x16d1   :  { %v4328_v29 = vpop.xlane.xlu0 %4327 }
0x16d2   :  { %5953 = vrsqrt.f32 %v3881_v53  ;;  %v3882_v49 = vadd.f32 1e-05, %v3878_v5  ;;  %v4338_v39 = vmul.f32 0.015625, %v4328_v29  ;;  %v4998_v53 = vld [vmem:[#allocation26] ss:$0 sm:$0xff] }
0x16d3   :  { %v4331_v59 = vpop.xlane.xlu1 %4330 }
0x16d4   :  { %5955 = vrsqrt.f32 %v3882_v49  ;;  %v4339_v47 = vmul.f32 0.015625, %v4331_v59  ;;  %v4342_v57 = vadd.f32 1e-05, %v4338_v39 }
0x16d5   :  { %v4334_v55 = vpop.xlane.xlu0 %4333 }
0x16d6   :  { %v4343_v12 = vadd.f32 1e-05, %v4339_v47  ;;  %v4340_v17 = vmul.f32 0.015625, %v4334_v55 }
0x16d7   :  { %v4337_v60 = vpop.xlane.xlu1 %4336 }
0x16d8   :  { %v5950_v32 = vpop.eup %5949  ;;  %5957 = vrsqrt.f32 %v4343_v12  ;;  %v4341_v44 = vmul.f32 0.015625, %v4337_v60  ;;  %v4344_v27 = vadd.f32 1e-05, %v4340_v17  ;;  %v5773_v60 = vld [vmem:[#allocation31 + $0x40] sm:$0xff]  }
0x16d9   :  { %v3887_v56 = vmul.f32 %v5950_v32, %v7713_v9  ;;  %5959 = vrsqrt.f32 %v4342_v57  ;;  %v5761_v9 = vld [vmem:[#allocation34] ss:$8 sps:$4 sm:$0xff]   ;;  %5174 = vmatprep.subr.bf16.mxu1 %v5773_v60 }
0x16da   :  { %v5952_v10 = vpop.eup %5951  ;;  %v4345_v16 = vadd.f32 1e-05, %v4341_v44  ;;  %v5774_v32 = vld [vmem:[#allocation31] sm:$0xff]   ;;  %v5778_v44 = vld [vmem:[#allocation31 + $0x10] sm:$0xff]  }
0x16db   :  { %v3897_v11 = vmul.f32 %v4968_v8, %v3887_v56  ;;  %v3888_v19 = vmul.f32 %v5952_v10, %v7716_v45  ;;  %5175 = vmatpush3.bf16.msra.mxu1 %v5774_v32  ;;  %v5779_v56 = vld [vmem:[#allocation31 + $0x58] sm:$0xff]   ;;  %v5782_v17 = vld [vmem:[#allocation37 + $0x40] sm:$0xff]  }
0x16dc   :  { %v5954_v7 = vpop.eup %5953  ;;  %5961 = vrsqrt.f32 %v4345_v16  ;;  %v5780_v10 = vld [vmem:[#allocation31 + $0x18] sm:$0xff]   ;;  %v5786_v16 = vld [vmem:[#allocation37 + $0x48] sm:$0xff]  }
0x16dd   :  { %v3898_v4 = vmul.f32 %v4968_v8, %v3888_v19  ;;  %v3889_v34 = vmul.f32 %v5954_v7, %v7721_v43  ;;  %v3907_v50 = vadd.f32 %v4969_v22, %v3897_v11  ;;  %5963 = vrsqrt.f32 %v4344_v27  ;;  %v5783_v11 = vld [vmem:[#allocation31 + $0x20] sm:$0xff]   ;;  %v5785_v7 = vld [vmem:[#allocation31 + $0x68] sm:$0xff]   ;;  %v5790_v27 = vld [vmem:[#allocation37 + $0x50] sm:$0xff]  }
0x16de   :  { %v5956_v25 = vpop.eup %5955  ;;  %v5784_v19 = vld [vmem:[#allocation37] sm:$0xff]  }
0x16df   :  { %v3890_v18 = vmul.f32 %v5956_v25, %v7727_v26  ;;  %v3908_v30 = vadd.f32 %v4969_v22, %v3898_v4  ;;  %v3899_v45 = vmul.f32 %v4968_v8, %v3889_v34  ;;  %v5788_v4 = vld [vmem:[#allocation37 + $0x8] sm:$0xff]  }
0x16e0   :  { %v5789_v25 = vld [vmem:[#allocation31 + $0x70] sm:$0xff]  }
0x16e1   :  { %v3911_v2 = vpack.c.bf16 %v3908_v30, %v3907_v50  ;;  %v3900_v1 = vmul.f32 %v4968_v8, %v3890_v18  ;;  %v3909_v52 = vadd.f32 %v4969_v22, %v3899_v45  ;;  %v5776_v8 = vld [vmem:[#allocation31 + $0x8] sm:$0xff]   ;;  %v5791_v34 = vld [vmem:[#allocation31 + $0x30] sm:$0xff]   ;;  %v5793_v50 = vld [vmem:[#allocation31 + $0x78] sm:$0xff]  }
0x16e2   :  { %v5958_v13 = vpop.eup %5957  ;;  %v5792_v18 = vld [vmem:[#allocation37 + $0x10] sm:$0xff]   ;;  %v5794_v30 = vld [vmem:[#allocation37 + $0x58] sm:$0xff]   ;;  %v5800_v45 = vld [vmem:[#allocation37 + $0x28] sm:$0xff]  }
0x16e3   :  { %4978 = vmatmul.mubr.msk.bf16.vlgmr.msra.gmra.mrb[60].mxu0 %vm427_vm0, %v3911_v2  ;;  %v5960_v38 = vpop.eup %5959  ;;  %v4351_v43 = vmul.f32 %v5958_v13, %v7739_v14  ;;  %v3910_v26 = vadd.f32 %v4969_v22, %v3900_v1  ;;  %v5770_v14 = vld [vmem:[#allocation34 + $0x30] ss:$8 sps:$4 sm:$0xff]   ;;  %v5787_v22 = vld [vmem:[#allocation31 + $0x28] sm:$0xff]  }
0x16e4   :  { %4443 = vmatpush1.bf16.msra.mxu0 %v5761_v9  ;;  %4021 = vmatprep.mubr.bf16.mxu0 %v6656_v28  ;;  %v4350_v21 = vmul.f32 %v5960_v38, %v7733_v46  ;;  %v5795_v9 = vld [vmem:[#allocation31 + $0x38] sm:$0xff]   ;;  %v5798_v1 = vld [vmem:[#allocation37 + $0x20] sm:$0xff]   ;;  %v5799_v13 = vld [vmem:[#allocation37 + $0x68] sm:$0xff]  }
0x16e5   :  { %4444 = vmatprep.subr.bf16.mxu0 %v5766_v58  ;;  %v4361_v40 = vmul.f32 %v4997_v3, %v4351_v43  ;;  %v3912_v0 = vpack.c.bf16 %v3910_v26, %v3909_v52  ;;  %v5796_v2 = vld [vmem:[#allocation37 + $0x18] sm:$0xff]   ;;  %v5797_v58 = vld [vmem:[#allocation37 + $0x60] sm:$0xff]   ;;  %v5801_v38 = vld [vmem:[#allocation37 + $0x70] sm:$0xff]   ;;  %v3929_v52 = vsub.s32 1, %v7344_v63 }
0x16e6   :  { %v5962_v42 = vpop.eup %5961  ;;  %v4360_v61 = vmul.f32 %v4997_v3, %v4350_v21  ;;  %v5803_v43 = vld [vmem:[#allocation37 + $0x78] sm:$0xff]  }
0x16e7   :  { %v5964_v54 = vpop.eup %5963  ;;  %v4371_v5 = vadd.f32 %v4998_v53, %v4361_v40  ;;  %v4353_v46 = vmul.f32 %v5962_v42, %v7751_v6  ;;  %v5775_v6 = vld [vmem:[#allocation31 + $0x48] sm:$0xff]   ;;  %v5804_v26 = vld [vmem:[#allocation37 + $0x38] sm:$0xff]  }
0x16e8   :  { %4445 = vmatpush1.bf16.msra.mxu0 %v5764_v41  ;;  %v4370_v29 = vadd.f32 %v4998_v53, %v4360_v61  ;;  %v4352_v49 = vmul.f32 %v5964_v54, %v7745_v20  ;;  %5176 = vmatprep.subr.bf16.mxu1 %v5775_v6  ;;  %v5777_v20 = vld [vmem:[#allocation31 + $0x50] sm:$0xff]   ;;  %v3921_v21 = vld [vmem:[#allocation29] sm:$0x3] }
0x16e9   :  { %4446 = vmatprep.subr.bf16.mxu0 %v5769_v33  ;;  %v4363_v59 = vmul.f32 %v4997_v3, %v4353_v46  ;;  %5177 = vmatpush3.bf16.msra.mxu1 %v5776_v8  ;;  %v5802_v41 = vld [vmem:[#allocation37 + $0x30] sm:$0xff]   ;;  %v3925_v33 = vsub.s32 0, %v7344_v63 }
0x16ea   :  { %v4374_v39 = vpack.c.bf16 %v4371_v5, %v4370_v29  ;;  %v4362_v47 = vmul.f32 %v4997_v3, %v4352_v49  ;;  %5178 = vmatprep.subr.bf16.mxu1 %v5777_v20 }
0x16eb   :  { %4979 = vmatmul.mubr.msk.bf16.gmra.mrb[64].mxu0 %vm427_vm0, %v3912_v0  ;;  %v4373_v57 = vadd.f32 %v4998_v53, %v4363_v59  ;;  %v3926_v3 = vrot.slane %v3921_v21, %v3925_v33 }
0x16ec   :  { %4447 = vmatpush1.bf16.msra.mxu0 %v5767_v15  ;;  %4474 = vmatprep.mubr.bf16.mxu0 %v6656_v28  ;;  %v4372_v12 = vadd.f32 %v4998_v53, %v4362_v47  ;;  %v3930_v15 = vrot.slane %v3921_v21, %v3929_v52  ;;  %v4384_v47 = vld [vmem:[#allocation35] sm:$0x3] }
0x16ed   :  { %4448 = vmatprep.subr.bf16.mxu0 %v5772_v24  ;;  %5179 = vmatpush3.bf16.msra.mxu1 %v5778_v44  ;;  %v7784_v44 = vrot.slane %v4384_v47, %v3925_v33 }
0x16ee   :  { %v4375_v55 = vpack.c.bf16 %v4373_v57, %v4372_v12  ;;  %5180 = vmatprep.subr.bf16.mxu1 %v5779_v56 }
0x16f0   :  { %4449 = vmatpush1.bf16.msra.mxu0 %v5770_v14 }
0x16f1   :  { %5181 = vmatpush3.bf16.msra.mxu1 %v5780_v10  ;;  %5202 = vmatprep.subr.bf16.mxu0 %v5782_v17  ;;  %v7789_v17 = vrot.slane %v4384_v47, %v3929_v52 }
0x16f3   :  { %5007 = vmatmul.mubr.msk.bf16.vlgmr.msra.gmra.mrb[68].mxu0 %vm427_vm0, %v4374_v39 }
0x16f4   :  { %4484 = vmatprep.mubr.bf16.mxu0 %v6656_v28  ;;  %v5781_v28 = vld [vmem:[#allocation31 + $0x60] sm:$0xff]   ;;  %5203 = vmatpush3.bf16.msra.mxu0 %v5784_v19 }
0x16f5   :  { %5182 = vmatprep.subr.bf16.mxu1 %v5781_v28  ;;  %5204 = vmatprep.subr.bf16.mxu0 %v5786_v16 }
0x16f6   :  { %5183 = vmatpush3.bf16.msra.mxu1 %v5783_v11 }
0x16f7   :  { %5184 = vmatprep.subr.bf16.mxu1 %v5785_v7 }
0x16f8   :  { %5205 = vmatpush3.bf16.msra.mxu0 %v5788_v4 }
0x16f9   :  { %5206 = vmatprep.subr.bf16.mxu0 %v5790_v27 }
0x16fa   :  { %5185 = vmatpush3.bf16.msra.mxu1 %v5787_v22 }
0x16fb   :  { %5008 = vmatmul.mubr.msk.bf16.gmra.mrb[72].mxu0 %vm427_vm0, %v4375_v55  ;;  %5186 = vmatprep.subr.bf16.mxu1 %v5789_v25 }
0x16fc   :  { %5207 = vmatpush3.bf16.msra.mxu0 %v5792_v18 }
0x16fd   :  { %5208 = vmatprep.subr.bf16.mxu0 %v5794_v30 }
0x16fe   :  { %5187 = vmatpush3.bf16.msra.mxu1 %v5791_v34 }
0x16ff   :  { %5188 = vmatprep.subr.bf16.mxu1 %v5793_v50 }
0x1700   :  { %5209 = vmatpush3.bf16.msra.mxu0 %v5796_v2 }
0x1701   :  { %5210 = vmatprep.subr.bf16.mxu0 %v5797_v58 }
0x1702   :  { %5189 = vmatpush3.bf16.msra.mxu1 %v5795_v9 }
0x1704   :  { %5211 = vmatpush3.bf16.msra.mxu0 %v5798_v1 }
0x1705   :  { %5212 = vmatprep.subr.bf16.mxu0 %v5799_v13 }
0x1708   :  { %5213 = vmatpush3.bf16.msra.mxu0 %v5800_v45 }
0x1709   :  { %5214 = vmatprep.subr.bf16.mxu0 %v5801_v38 }
0x170c   :  { %5215 = vmatpush3.bf16.msra.mxu0 %v5802_v41 }
0x170d   :  { %5216 = vmatprep.subr.bf16.mxu0 %v5803_v43 }
0x1710   :  { %5217 = vmatpush3.bf16.msra.mxu0 %v5804_v26 }
0x17b6   :  { %v4013_v40 = vpop.f32.mrb[60].mxu0 }
0x17b7   :  { %v4014_v0 = vadd.f32 %v4013_v40, %v3926_v3  ;;  %v4015_v24 = vpop.f32.mrb[61].mxu0 }
0x17b8   :  { %v4016_v42 = vadd.f32 %v4015_v24, %v3930_v15  ;;  %v4017_v61 = vpop.f32.mrb[62].mxu0 }
0x17b9   :  { %v4040_v54 = vmul.f32 0.044715, %v4014_v0  ;;  %v4018_v53 = vadd.f32 %v4017_v61, %v3926_v3  ;;  %v4019_v14 = vpop.f32.mrb[63].mxu0 }
0x17ba   :  { %v4041_v5 = vmul.f32 0.044715, %v4016_v42  ;;  %v7778_v46 = vadd.f32 %v4019_v14, %v3930_v15  ;;  %v4033_v52 = vmul.f32 0.5, %v4016_v42 }
0x17bb   :  { %v4048_v29 = vmul.f32 %v4040_v54, %v4014_v0  ;;  %v4042_v49 = vmul.f32 0.044715, %v4018_v53 }
0x17bc   :  { %v4049_v39 = vmul.f32 %v4041_v5, %v4016_v42  ;;  %v4043_v59 = vmul.f32 0.044715, %v7778_v46 }
0x17bd   :  { %v4056_v63 = vmul.f32 %v4048_v29, %v4014_v0  ;;  %v4050_v57 = vmul.f32 %v4042_v49, %v4018_v53  ;;  %v4034_v49 = vmul.f32 0.5, %v4018_v53 }
0x17be   :  { %v4057_v12 = vmul.f32 %v4049_v39, %v4016_v42  ;;  %v4051_v55 = vmul.f32 %v4043_v59, %v7778_v46  ;;  %v4023_v60 = vpop.f32.mrb[64].mxu0 }
0x17bf   :  { %v4064_v32 = vadd.f32 %v4056_v63, %v4014_v0  ;;  %v4058_v6 = vmul.f32 %v4050_v57, %v4018_v53  ;;  %v7782_v8 = vadd.f32 %v4023_v60, %v3926_v3  ;;  %v4025_v20 = vpop.f32.mrb[65].mxu0 }
0x17c0   :  { %v4059_v56 = vmul.f32 %v4051_v55, %v7778_v46  ;;  %v7787_v10 = vadd.f32 %v4025_v20, %v3930_v15  ;;  %v4027_v28 = vpop.f32.mrb[66].mxu0  ;;  %v4065_v11 = vadd.f32 %v4057_v12, %v4016_v42  ;;  %v4035_v12 = vmul.f32 0.5, %v7778_v46 }
0x17c1   :  { %v4072_v19 = vmul.f32 0.7978846, %v4064_v32  ;;  %v4066_v7 = vadd.f32 %v4058_v6, %v4018_v53  ;;  %v4044_v16 = vmul.f32 0.044715, %v7782_v8  ;;  %v7792_v22 = vadd.f32 %v4027_v28, %v3926_v3  ;;  %v4029_v4 = vpop.f32.mrb[67].mxu0 }
0x17c2   :  { %v4045_v25 = vmul.f32 0.044715, %v7787_v10  ;;  %v7795_v27 = vadd.f32 %v4029_v4, %v3930_v15  ;;  %v4067_v34 = vadd.f32 %v4059_v56, %v7778_v46  ;;  %v4073_v18 = vmul.f32 0.7978846, %v4065_v11 }
0x17c3   :  { %5965 = vtanh.f32 %v4072_v19  ;;  %v4074_v50 = vmul.f32 0.7978846, %v4066_v7  ;;  %v4052_v30 = vmul.f32 %v4044_v16, %v7782_v8  ;;  %v4046_v9 = vmul.f32 0.044715, %v7792_v22 }
0x17c4   :  { %v4053_v2 = vmul.f32 %v4045_v25, %v7787_v10  ;;  %v4047_v58 = vmul.f32 0.044715, %v7795_v27  ;;  %v4075_v1 = vmul.f32 0.7978846, %v4067_v34  ;;  %5967 = vtanh.f32 %v4073_v18 }
0x17c5   :  { %5969 = vtanh.f32 %v4074_v50  ;;  %v4060_v13 = vmul.f32 %v4052_v30, %v7782_v8  ;;  %v4054_v45 = vmul.f32 %v4046_v9, %v7792_v22  ;;  %v4032_v3 = vmul.f32 0.5, %v4014_v0 }
0x17c6   :  { %v4061_v38 = vmul.f32 %v4053_v2, %v7787_v10  ;;  %v4055_v41 = vmul.f32 %v4047_v58, %v7795_v27  ;;  %v4476_v43 = vpop.f32.mrb[68].mxu0  ;;  %5971 = vtanh.f32 %v4075_v1 }
0x17c7   :  { %v4062_v26 = vmul.f32 %v4054_v45, %v7792_v22  ;;  %v7808_v33 = vadd.f32 %v4476_v43, %v7784_v44  ;;  %v4478_v21 = vpop.f32.mrb[69].mxu0  ;;  %v4068_v54 = vadd.f32 %v4060_v13, %v7782_v8 }
0x17c8   :  { %v4063_v15 = vmul.f32 %v4055_v41, %v7795_v27  ;;  %v7812_v40 = vadd.f32 %v4478_v21, %v7789_v17  ;;  %v4480_v24 = vpop.f32.mrb[70].mxu0  ;;  %v4069_v61 = vadd.f32 %v4061_v38, %v7787_v10 }
0x17c9   :  { %v4503_v14 = vmul.f32 0.044715, %v7808_v33  ;;  %v7818_v5 = vadd.f32 %v4480_v24, %v7784_v44  ;;  %v4482_v29 = vpop.f32.mrb[71].mxu0  ;;  %v4070_v42 = vadd.f32 %v4062_v26, %v7792_v22  ;;  %v4076_v55 = vmul.f32 0.7978846, %v4068_v54 }
0x17ca   :  { %v4504_v0 = vmul.f32 0.044715, %v7812_v40  ;;  %v7823_v39 = vadd.f32 %v4482_v29, %v7789_v17  ;;  %v4071_v59 = vadd.f32 %v4063_v15, %v7795_v27  ;;  %v4077_v47 = vmul.f32 0.7978846, %v4069_v61 }
0x17cb   :  { %v4511_v63 = vmul.f32 %v4503_v14, %v7808_v33  ;;  %v4505_v57 = vmul.f32 0.044715, %v7818_v5  ;;  %v4078_v28 = vmul.f32 0.7978846, %v4070_v42 }
0x17cc   :  { %v4512_v60 = vmul.f32 %v4504_v0, %v7812_v40  ;;  %v4506_v53 = vmul.f32 0.044715, %v7823_v39  ;;  %v4079_v32 = vmul.f32 0.7978846, %v4071_v59  ;;  %5973 = vtanh.f32 %v4077_v47 }
0x17cd   :  { %v5966_v6 = vpop.eup %5965  ;;  %v4519_v20 = vmul.f32 %v4511_v63, %v7808_v33  ;;  %v4513_v56 = vmul.f32 %v4505_v57, %v7818_v5  ;;  %5975 = vtanh.f32 %v4076_v55 }
0x17ce   :  { %v5968_v11 = vpop.eup %5967  ;;  %v4520_v19 = vmul.f32 %v4512_v60, %v7812_v40  ;;  %v4514_v7 = vmul.f32 %v4506_v53, %v7823_v39  ;;  %v4486_v46 = vpop.f32.mrb[72].mxu0  ;;  %v4088_v16 = vadd.f32 1.0, %v5966_v6  ;;  %5977 = vtanh.f32 %v4079_v32 }
0x17cf   :  { %v5970_v4 = vpop.eup %5969  ;;  %v4527_v25 = vadd.f32 %v4519_v20, %v7808_v33  ;;  %v4521_v34 = vmul.f32 %v4513_v56, %v7818_v5  ;;  %v7838_v18 = vadd.f32 %v4486_v46, %v7784_v44  ;;  %v4488_v50 = vpop.f32.mrb[73].mxu0  ;;  %v4089_v30 = vadd.f32 1.0, %v5968_v11 }
0x17d0   :  { %v5972_v9 = vpop.eup %5971  ;;  %v4522_v2 = vmul.f32 %v4514_v7, %v7823_v39  ;;  %v7842_v58 = vadd.f32 %v4488_v50, %v7789_v17  ;;  %v4490_v1 = vpop.f32.mrb[74].mxu0  ;;  %v4090_v13 = vadd.f32 1.0, %v5970_v4  ;;  %v4096_v45 = vmul.f32 %v4088_v16, %v4032_v3 }
0x17d1   :  { %v4535_v38 = vmul.f32 0.7978846, %v4527_v25  ;;  %v4529_v41 = vadd.f32 %v4521_v34, %v7818_v5  ;;  %v4507_v43 = vmul.f32 0.044715, %v7838_v18  ;;  %v7847_v26 = vadd.f32 %v4490_v1, %v7784_v44  ;;  %v4492_v21 = vpop.f32.mrb[75].mxu0 }
0x17d2   :  { %v4508_v15 = vmul.f32 0.044715, %v7842_v58  ;;  %v7851_v24 = vadd.f32 %v4492_v21, %v7789_v17  ;;  %v4091_v61 = vadd.f32 1.0, %v5972_v9  ;;  %v4097_v54 = vmul.f32 %v4089_v30, %v4033_v52 }
0x17d3   :  { %5979 = vtanh.f32 %v4535_v38  ;;  %v4537_v14 = vmul.f32 0.7978846, %v4529_v41  ;;  %v4515_v3 = vmul.f32 %v4507_v43, %v7838_v18  ;;  %v4509_v29 = vmul.f32 0.044715, %v7847_v26 }
0x17d4   :  { %v4516_v42 = vmul.f32 %v4508_v15, %v7842_v58  ;;  %v4510_v0 = vmul.f32 0.044715, %v7851_v24  ;;  %v4099_v44 = vmul.f32 %v4091_v61, %v4035_v12  ;;  %v4098_v59 = vmul.f32 %v4090_v13, %v4034_v49 }
0x17d5   :  { %5981 = vtanh.f32 %v4537_v14  ;;  %v4517_v47 = vmul.f32 %v4509_v29, %v7847_v26  ;;  %v4523_v53 = vmul.f32 %v4515_v3, %v7838_v18  ;;  %v4528_v12 = vadd.f32 %v4520_v19, %v7812_v40 }
0x17d6   :  { %v5974_v63 = vpop.eup %5973  ;;  %v4524_v17 = vmul.f32 %v4516_v42, %v7842_v58  ;;  %v4518_v52 = vmul.f32 %v4510_v0, %v7851_v24  ;;  %v4105_v57 = vpack.c.bf16 %v4099_v44, %v4097_v54  ;;  %v4104_v55 = vpack.c.bf16 %v4098_v59, %v4096_v45 }
0x17d7   :  { %v5976_v60 = vpop.eup %5975  ;;  %v4093_v32 = vadd.f32 1.0, %v5974_v63  ;;  %5983 = vtanh.f32 %v4078_v28  ;;  %v4525_v20 = vmul.f32 %v4517_v47, %v7847_v26  ;;  %v4530_v56 = vadd.f32 %v4522_v2, %v7823_v39 }
0x17d8   :  { %v5978_v6 = vpop.eup %5977  ;;  %v4526_v49 = vmul.f32 %v4518_v52, %v7851_v24  ;;  %4268 = vmatprep.mubr.bf16.mxu1 %v4105_v57  ;;  %v4037_v11 = vmul.f32 0.5, %v7787_v10  ;;  %v4039_v7 = vmul.f32 0.5, %v7795_v27  ;;  %v4536_v16 = vmul.f32 0.7978846, %v4528_v12 }
0x17d9   :  { %4269 = vmatmul.mubr.bf16.vlgmr.msra.gmra.mrb[40].mxu1 %v4104_v55  ;;  %v4095_v46 = vadd.f32 1.0, %v5978_v6  ;;  %v4538_v4 = vmul.f32 0.7978846, %v4530_v56  ;;  %v4532_v28 = vadd.f32 %v4524_v17, %v7842_v58  ;;  %v4531_v19 = vadd.f32 %v4523_v53, %v7838_v18 }
0x17da   :  { %v4101_v25 = vmul.f32 %v4093_v32, %v4037_v11  ;;  %v4534_v50 = vadd.f32 %v4526_v49, %v7851_v24  ;;  %5985 = vtanh.f32 %v4536_v16  ;;  %v4533_v9 = vadd.f32 %v4525_v20, %v7847_v26 }
0x17db   :  { %v4103_v34 = vmul.f32 %v4095_v46, %v4039_v7  ;;  %v4540_v30 = vmul.f32 0.7978846, %v4532_v28  ;;  %5987 = vtanh.f32 %v4538_v4  ;;  %v4539_v13 = vmul.f32 0.7978846, %v4531_v19 }
0x17dc   :  { %v4542_v10 = vmul.f32 0.7978846, %v4534_v50  ;;  %v4541_v45 = vmul.f32 0.7978846, %v4533_v9  ;;  %v4495_v41 = vmul.f32 0.5, %v7808_v33  ;;  %v4497_v43 = vmul.f32 0.5, %v7818_v5 }
0x17dd   :  { %v5980_v2 = vpop.eup %5979  ;;  %v4107_v1 = vpack.c.bf16 %v4103_v34, %v4101_v25  ;;  %5989 = vtanh.f32 %v4540_v30  ;;  %v4092_v21 = vadd.f32 1.0, %v5976_v60  ;;  %v4036_v54 = vmul.f32 0.5, %v7782_v8 }
0x17de   :  { %v4551_v27 = vadd.f32 1.0, %v5980_v2  ;;  %5991 = vtanh.f32 %v4542_v10  ;;  %v4038_v14 = vmul.f32 0.5, %v7792_v22  ;;  %v4496_v52 = vmul.f32 0.5, %v7812_v40 }
0x17df   :  { %v5982_v38 = vpop.eup %5981  ;;  %4276 = vmatprep.mubr.bf16.mxu1 %v4107_v1  ;;  %5993 = vtanh.f32 %v4539_v13  ;;  %v4100_v0 = vmul.f32 %v4092_v21, %v4036_v54  ;;  %v4498_v57 = vmul.f32 0.5, %v7823_v39  ;;  %v4500_v22 = vmul.f32 0.5, %v7842_v58 }
0x17e0   :  { %v4553_v15 = vadd.f32 1.0, %v5982_v38  ;;  %5995 = vtanh.f32 %v4541_v45  ;;  %v4559_v29 = vmul.f32 %v4551_v27, %v4495_v41  ;;  %v4502_v20 = vmul.f32 0.5, %v7851_v24 }
0x17e1   :  { %v5984_v61 = vpop.eup %5983  ;;  %v4499_v56 = vmul.f32 0.5, %v7838_v18  ;;  %v4501_v11 = vmul.f32 0.5, %v7847_v26  ;;  %v4996_v18 = vld [vmem:[#allocation32] ss:$0 sm:$0xff] }
0x17e2   :  { %v4094_v3 = vadd.f32 1.0, %v5984_v61  ;;  %v4561_v42 = vmul.f32 %v4553_v15, %v4497_v43 }
0x17e4   :  { %v4102_v44 = vmul.f32 %v4094_v3, %v4038_v14  ;;  %v4567_v59 = vpack.c.bf16 %v4561_v42, %v4559_v29  ;;  %v5986_v33 = vpop.eup %5985  ;;  %v5025_v29 = vld [vmem:[#allocation38] ss:$0 sm:$0xff] }
0x17e5   :  { %v5988_v63 = vpop.eup %5987  ;;  %v4552_v17 = vadd.f32 1.0, %v5986_v33 }
0x17e6   :  { %v4106_v47 = vpack.c.bf16 %v4102_v44, %v4100_v0  ;;  %v4554_v8 = vadd.f32 1.0, %v5988_v63 }
0x17e7   :  { %v5990_v5 = vpop.eup %5989  ;;  %v4560_v32 = vmul.f32 %v4552_v17, %v4496_v52 }
0x17e8   :  { %4277 = vmatmul.mubr.bf16.gmra.mrb[44].mxu1 %v4106_v47  ;;  %v5992_v55 = vpop.eup %5991  ;;  %v4556_v60 = vadd.f32 1.0, %v5990_v5  ;;  %v4562_v6 = vmul.f32 %v4554_v8, %v4498_v57 }
0x17e9   :  { %v5994_v53 = vpop.eup %5993  ;;  %v4558_v49 = vadd.f32 1.0, %v5992_v55 }
0x17ea   :  { %v5996_v12 = vpop.eup %5995  ;;  %v4555_v7 = vadd.f32 1.0, %v5994_v53  ;;  %v4568_v40 = vpack.c.bf16 %v4562_v6, %v4560_v32  ;;  %v4564_v46 = vmul.f32 %v4556_v60, %v4500_v22 }
0x17eb   :  { %v4566_v39 = vmul.f32 %v4558_v49, %v4502_v20  ;;  %v4557_v16 = vadd.f32 1.0, %v5996_v12 }
0x17ec   :  { %4731 = vmatprep.mubr.bf16.mxu0 %v4568_v40  ;;  %v4563_v58 = vmul.f32 %v4555_v7, %v4499_v56 }
0x17ed   :  { %v4570_v4 = vpack.c.bf16 %v4566_v39, %v4564_v46  ;;  %v4565_v28 = vmul.f32 %v4557_v16, %v4501_v11  ;;  %4732 = vmatmul.mubr.bf16.vlgmr.msra.gmra.mrb[76].mxu0 %v4567_v59 }
0x17ef   :  { %4739 = vmatprep.mubr.bf16.mxu0 %v4570_v4  ;;  %v4569_v25 = vpack.c.bf16 %v4565_v28, %v4563_v58 }
0x17f5   :  { %4740 = vmatmul.mubr.bf16.gmra.mrb[80].mxu0 %v4569_v25 }
0x18ac   :  { %v5190_v24 = vpop.f32.mrb[40].mxu1 }
0x18ad   :  { %v5191_v34 = vpop.f32.mrb[41].mxu1 }
0x18ae   :  { %v5192_v50 = vadd.f32 %v5191_v34, %v5190_v24  ;;  %v5193_v30 = vpop.f32.mrb[42].mxu1 }
0x18af   :  { %v5194_v19 = vpop.f32.mrb[43].mxu1 }
0x18b0   :  { %v4285_v26 = vadd.f32 %v5192_v50, %v7680_v62  ;;  %v5195_v9 = vadd.f32 %v5194_v19, %v5193_v30 }
0x18b2   :  { %v4296_v2 = vadd.f32 %v4996_v18, %v4285_v26  ;;  %v4286_v1 = vadd.f32 %v5195_v9, %v7684_v31 }
0x18b4   :  { %4763 = vst.msk [vmem:[#allocation40] sm:$0xff] %vm427_vm0, %v4296_v2  ;;  %v4297_v10 = vadd.f32 %v4996_v18, %v4286_v1 }
0x18b6   :  { %4764 = vst.msk [vmem:[#allocation40 + $0x8] sm:$0xff] %vm427_vm0, %v4297_v10 }
0x18bb   :  { %v5196_v27 = vpop.f32.mrb[44].mxu1 }
0x18bc   :  { %v5197_v13 = vpop.f32.mrb[45].mxu1 }
0x18bd   :  { %v5198_v45 = vadd.f32 %v5197_v13, %v5196_v27  ;;  %v5199_v38 = vpop.f32.mrb[46].mxu1 }
0x18be   :  { %v5200_v41 = vpop.f32.mrb[47].mxu1 }
0x18bf   :  { %v4287_v43 = vadd.f32 %v5198_v45, %v7682_v23  ;;  %v5201_v21 = vadd.f32 %v5200_v41, %v5199_v38 }
0x18c0   :  { %v5218_v61 = vpop.f32.mrb[76].mxu0 }
0x18c1   :  { %v4298_v62 = vadd.f32 %v4996_v18, %v4287_v43  ;;  %v4288_v15 = vadd.f32 %v5201_v21, %v7688_v35  ;;  %v5219_v54 = vpop.f32.mrb[77].mxu0 }
0x18c2   :  { %v5220_v14 = vadd.f32 %v5219_v54, %v5218_v61  ;;  %v5221_v3 = vpop.f32.mrb[78].mxu0 }
0x18c3   :  { %4765 = vst.msk [vmem:[#allocation40 + $0x10] sm:$0xff] %vm427_vm0, %v4298_v62  ;;  %v4299_v31 = vadd.f32 %v4996_v18, %v4288_v15  ;;  %v5222_v42 = vpop.f32.mrb[79].mxu0 }
0x18c4   :  { %v4748_v23 = vadd.f32 %v5220_v14, %v7692_v51  ;;  %v5223_v0 = vadd.f32 %v5222_v42, %v5221_v3 }
0x18c5   :  { %4766 = vst.msk [vmem:[#allocation40 + $0x18] sm:$0xff] %vm427_vm0, %v4299_v31 }
0x18c6   :  { %6540 = shalt.err (!%p6537_p0)
}
0x18c7   :  { %s8029_s25 = sld [smem:[#allocation70_spill]] }
0x18cd   :  { %s6541_s29 = scalar_lea.hbm %s8029_s25, 512 }
0x18ce   :  { %p6542_p1 = scmp.ne.s32.totalorder %s8029_s25, %s6541_s29  ;;  %p6545_p2 = scmp.lt.u32.totalorder %s6541_s29, %s8029_s25 }
0x18d0   :  { %p6547_p3 = pnand %p6545_p2, %p6542_p1 }
0x18d2   :  { %6550 = shalt.err (!%p6547_p3)
}
0x18d3   :  { %4782 = dma.vmem_to_hbm [thread:$0]  %s4777_s10, 512, %s8029_s25, [#allocation4], %s6639_s21, %s6639_s21, %s6640_s27   ;;  %v4759_v35 = vadd.f32 %v5025_v29, %v4748_v23  ;;  %v4749_v51 = vadd.f32 %v5223_v0, %v7696_v48  ;;  %v5224_v59 = vpop.f32.mrb[80].mxu0 }
0x18d4   :  { %v5225_v33 = vpop.f32.mrb[81].mxu0  ;;  %s6658_s30 = smov [#allocation41]   ;;  %s6659_s20 = smov [#allocation43]  }
0x18d5   :  { %4767 = vst.msk [vmem:[#allocation41] sm:$0xff] %vm427_vm0, %v4759_v35  ;;  %v4760_v44 = vadd.f32 %v5025_v29, %v4749_v51  ;;  %v5226_v47 = vadd.f32 %v5225_v33, %v5224_v59  ;;  %v5227_v63 = vpop.f32.mrb[82].mxu0  ;;  %s4788_s16 = sshll.u32 %s6658_s30, 4  ;;  %s4800_s0 = sshll.u32 %s6659_s20, 4  ;;  %s4789_s16 = int_to_ptr.vmem [resolvable:$true] %s4788_s16  ;;  %s7911_s0 = int_to_ptr.vmem [resolvable:$true] %s4800_s0 }
0x18d6   :  { %v5228_v17 = vpop.f32.mrb[83].mxu0  ;;  %s6551_s1 = scalar_lea.vmem %s4789_s16, 512  ;;  %p6556_p5 = scmp.lt.s32.totalorder %s4789_s16, %s4789_s16 }
0x18d7   :  { %4768 = vst.msk [vmem:[#allocation41 + $0x8] sm:$0xff] %vm427_vm0, %v4760_v44  ;;  %v4750_v5 = vadd.f32 %v5226_v47, %v7700_v36  ;;  %v5229_v52 = vadd.f32 %v5228_v17, %v5227_v63  ;;  %p6552_p4 = scmp.ne.s32.totalorder %s4789_s16, %s6551_s1  ;;  %p6557_p6 = scmp.lt.s32.totalorder %s6551_s1, %s6551_s1 }
0x18d9   :  { %v4761_v57 = vadd.f32 %v5025_v29, %v4750_v5  ;;  %v4751_v8 = vadd.f32 %v5229_v52, %v7704_v37  ;;  %p6558_p7 = por %p6557_p6, %p6556_p5 }
0x18db   :  { %4769 = vst.msk [vmem:[#allocation41 + $0x10] sm:$0xff] %vm427_vm0, %v4761_v57  ;;  %v4762_v48 = vadd.f32 %v5025_v29, %v4751_v8  ;;  %p6559_p8 = pnand %p6558_p7, %p6552_p4 }
0x18dd   :  { %4770 = vst.msk [vmem:[#allocation41 + $0x18] sm:$0xff] %vm427_vm0, %v4762_v48 }
0x18de   :  { %6562 = shalt.err (!%p6559_p8)
}
0x18df   :  { %s8030_s7 = sld [smem:[#allocation71_spill]] }
0x18e5   :  { %s6563_s26 = scalar_lea.hbm %s8030_s7, 512 }
0x18e6   :  { %p6564_p9 = scmp.ne.s32.totalorder %s8030_s7, %s6563_s26  ;;  %p6567_p10 = scmp.lt.u32.totalorder %s6563_s26, %s8030_s7 }
0x18e8   :  { %p6569_p11 = pnand %p6567_p10, %p6564_p9 }
0x18ea   :  { %6572 = shalt.err (!%p6569_p11)
}
0x18eb   :  { %4794 = dma.vmem_to_hbm [thread:$0]  %s4789_s16, 512, %s8030_s7, [#allocation42], %s6639_s21, %s6639_s21, %s6640_s27  }
0x18ec   :  { %s6573_s5 = scalar_lea.vmem %s7911_s0, 512  ;;  %p6578_p13 = scmp.lt.s32.totalorder %s7911_s0, %s7911_s0 }
0x18ed   :  { %p6574_p12 = scmp.ne.s32.totalorder %s7911_s0, %s6573_s5  ;;  %p6579_p0 = scmp.lt.s32.totalorder %s6573_s5, %s6573_s5 }
0x18ef   :  { %p6580_p1 = por %p6579_p0, %p6578_p13 }
0x18f1   :  { %p6581_p2 = pnand %p6580_p1, %p6574_p12 }
0x18f3   :  { %6584 = shalt.err (!%p6581_p2)
}
0x18f4   :  { %s8031_s18 = sld [smem:[#allocation72_spill]] }
0x18fa   :  { %s6585_s19 = scalar_lea.hbm %s8031_s18, 512 }
0x18fb   :  { %p6586_p3 = scmp.ne.s32.totalorder %s8031_s18, %s6585_s19  ;;  %p6589_p4 = scmp.lt.u32.totalorder %s6585_s19, %s8031_s18 }
0x18fd   :  { %p6591_p5 = pnand %p6589_p4, %p6586_p3 }
0x18ff   :  { %6594 = shalt.err (!%p6591_p5)
}
0x1900   :  { %4806 = dma.vmem_to_hbm [thread:$0]  %s7911_s0, 512, %s8031_s18, [#allocation42], %s6639_s21, %s6639_s21, %s6640_s27  }
0x1901   :  { %6621 = dma.done.wait [#allocation4], 512  }
0x1902   :  { %6622 = vsyncadd [#allocation4], 4294966784 }
0x1903   :  { %6623 = dma.done.wait [#allocation42], 1024  }
0x1904   :  { %6624 = vsyncadd [#allocation42], 4294966272 }
0x1905   :  { %4816 = vsyncpa [#allocation3], 1 }
0x1906   :  { %4817 = vsyncpa [#allocation6], 1 }
0x1907   :  { %4818 = vsyncpa [#allocation9], 1 }
0x1908   :  { %4819 = vsyncpa [#allocation12], 1 }
0x1909   :  { %4820 = vsyncpa [#allocation15], 1 }
0x190a   :  { %4821 = vsyncpa [#allocation18], 1 }
0x190b   :  { %4822 = vsyncpa [#allocation21], 1 }
0x190c   :  { %4823 = vsyncpa [#allocation24], 1 }
0x190d   :  { %4824 = vsyncpa [#allocation27], 1 }
0x190e   :  { %4825 = vsyncpa [#allocation30], 1 }
0x190f   :  { %4826 = vsyncpa [#allocation33], 1 }
0x1910   :  { %4827 = vsyncpa [#allocation36], 1 }
0x1911   :  { %4828 = vsyncpa [#allocation39], 1 }
0x1912   :  { %4829 = vsyncpa [#allocation4], 1 }
0x1913   :  { %4830 = vsyncpa [#allocation42], 1 }

</bundles_post_ra>
